<compile_context>
chip_gen: v5e
topology: v5e:2x2
jax: 0.10.0
libtpu: 0.0.40
codegen_flags: <defaults>
</compile_context>

<pallas_src>
import math

import jax
import jax.numpy as jnp
from jax.experimental import pallas as pl
from jax.experimental.pallas import tpu as pltpu


def _round_up(x, m):
    return (x + m - 1) // m * m


def _pick_tile(dim, preferred):
    """Largest preferred tile that evenly divides dim, else the full dim."""
    for t in preferred:
        if dim >= t and dim % t == 0:
            return t
    return dim


def _vmem_capacity_bytes():
    """Chip-derived physical VMEM capacity (conservative fallback: v7x 64 MiB)."""
    try:
        info = pltpu.get_tpu_info()
        cap = getattr(info, "vmem_capacity_bytes", None)
        if cap:
            return int(cap)
    except Exception:
        pass
    return 64 * 2**20


# ---------------------------- kernels ----------------------------------------

def _sine_kernel_single_k(x_ref, w_ref, b_ref, o_ref):
    # Whole contraction in one block: no accumulator scratch, no RMW.
    # Bias add + sine in f32; single cast on the (lane-dense) store.
    o_ref[...] = jnp.sin(
        jnp.dot(x_ref[...], w_ref[...], preferred_element_type=jnp.float32)
        + b_ref[...]
    ).astype(o_ref.dtype)


def _sine_kernel_multi_k(x_ref, w_ref, b_ref, o_ref, acc_ref):
    # K split across the (last, "arbitrary") grid axis; f32 VMEM accumulator.
    k = pl.program_id(2)
    partial = jnp.dot(x_ref[...], w_ref[...], preferred_element_type=jnp.float32)

    @pl.when(k == 0)
    def _():
        acc_ref[...] = partial          # assign (no zero-init pass)

    @pl.when(k != 0)
    def _():
        acc_ref[...] += partial

    @pl.when(k == pl.num_programs(2) - 1)
    def _():
        o_ref[...] = jnp.sin(acc_ref[...] + b_ref[...]).astype(o_ref.dtype)


# ---------------------------- wrapper -----------------------------------------

def _choose_tiles(M, K, N):
    # --- K (reduction) ---
    if K <= 1024:
        tk, k_pad = K, K                      # single K block (== full dim, always legal)
    else:
        tk = 512
        k_pad = _round_up(K, tk)              # zero-pad ragged large K (bounded tiles)
    gk = k_pad // tk

    # --- M (rows) ---
    if M <= 512:
        tm = _round_up(M, 16)                 # single block; 16 = bf16 sublane packing
    else:
        prefer = (512, 256, 128) if gk == 1 else (256, 128)
        tm = next((t for t in prefer if M % t == 0), 128)
    m_pad = _round_up(M, tm)
    gm = m_pad // tm

    # --- N (lanes): lane-dense output stores (multiple of 128) where possible ---
    tn = _pick_tile(N, (512, 256, 128))
    gn = N // tn

    # v7x has 2 TensorCores sharded over the "parallel" grid axes; make sure
    # there are >= 2 parallel blocks when a lane-dense split of N is free.
    if gm * gn == 1:
        for cand in (N // 2, 256, 128):
            if 128 <= cand < N and cand % 128 == 0 and N % cand == 0:
                tn = cand
                gn = N // tn
                break

    return tm, tk, tn, m_pad, k_pad, gm, gn, gk


def sine_layer(x, w_t, b, *, use_bf16_matmul=True, out_dtype=None):
    """y = sin(x @ w_t + b).

    x:   (M, K) float32
    w_t: (K, N) float32   (PyTorch weight, pre-transposed)
    b:   (N,)   float32

    Recommendations:
      * hidden layers: out_dtype=jnp.bfloat16 (next layer casts to bf16 anyway).
      * is_first layers: use_bf16_matmul=False (omega_0-scaled weights give
        O(10) rad pre-activations; bf16 rounding becomes visible phase error).
    """
    M, K = x.shape
    K2, N = w_t.shape
    assert K == K2 and b.shape == (N,)
    out_dtype = out_dtype or x.dtype
    mm_dtype = jnp.bfloat16 if use_bf16_matmul else x.dtype

    tm, tk, tn, m_pad, k_pad, gm, gn, gk = _choose_tiles(M, K, N)

    # Zero-padding along M / K does not change sin(x @ W^T + b) on the real rows.
    if m_pad != M or k_pad != K:
        x = jnp.pad(x, ((0, m_pad - M), (0, k_pad - K)))
    if k_pad != K:
        w_t = jnp.pad(w_t, ((0, k_pad - K), (0, 0)))

    x_mm = x.astype(mm_dtype)
    w_mm = w_t.astype(mm_dtype)
    b2d = b.reshape(1, N).astype(jnp.float32)

    # ---- VMEM budget: chip-derived physical capacity, ~75% cap --------------
    mm_bytes = jnp.dtype(mm_dtype).itemsize
    out_bytes = jnp.dtype(out_dtype).itemsize
    block_io = (tm * tk + tk * tn) * mm_bytes + tn * 4 + tm * tn * out_bytes
    resident = 2 * block_io + (tm * tn * 4 if gk > 1 else 0)   # dbl-buffered + acc
    cap = _vmem_capacity_bytes()
    vmem_limit = int(min(0.75 * cap, max(2 * resident, 16 * 2**20)))

    cost = pl.CostEstimate(
        flops=2 * m_pad * k_pad * N,
        transcendentals=m_pad * N,                 # one sin per output element
        bytes_accessed=(
            m_pad * k_pad * mm_bytes + k_pad * N * mm_bytes
            + N * 4 + m_pad * N * out_bytes
        ),
    )

    if gk == 1:
        kernel = _sine_kernel_single_k
        grid = (gm, gn)
        in_specs = [
            pl.BlockSpec((tm, tk), lambda i, j: (i, 0)),
            pl.BlockSpec((tk, tn), lambda i, j: (0, j)),
            pl.BlockSpec((1, tn), lambda i, j: (0, j)),
        ]
        out_specs = pl.BlockSpec((tm, tn), lambda i, j: (i, j))
        scratch = []
        semantics = ("parallel", "parallel")
    else:
        kernel = _sine_kernel_multi_k
        grid = (gm, gn, gk)
        in_specs = [
            pl.BlockSpec((tm, tk), lambda i, j, k: (i, k)),
            pl.BlockSpec((tk, tn), lambda i, j, k: (k, j)),
            pl.BlockSpec((1, tn), lambda i, j, k: (0, j)),
        ]
        out_specs = pl.BlockSpec((tm, tn), lambda i, j, k: (i, j))
        scratch = [pltpu.VMEM((tm, tn), jnp.float32)]
        semantics = ("parallel", "parallel", "arbitrary")

    out = pl.pallas_call(
        kernel,
        out_shape=jax.ShapeDtypeStruct((m_pad, N), out_dtype),
        grid_spec=pltpu.PrefetchScalarGridSpec(
            num_scalar_prefetch=0,
            grid=grid,
            in_specs=in_specs,
            out_specs=out_specs,
            scratch_shapes=scratch,
        ),
        compiler_params=pltpu.CompilerParams(
            dimension_semantics=semantics,
            vmem_limit_bytes=vmem_limit,
        ),
        cost_estimate=cost,
    )(x_mm, w_mm, b2d)

    return out[:M] if m_pad != M else out


def init_sine_layer_params(key, in_features, out_features, *, is_first=False,
                           omega_0=30.0, bias=True):
    """Deterministic re-implementation of SineLayer.__init__ weight init."""
    kw, kb = jax.random.split(key)
    if is_first:
        bound = 1.0 / in_features
        w = jax.random.uniform(kw, (out_features, in_features),
                               minval=-bound, maxval=bound, dtype=jnp.float32)
        w = w * omega_0
    else:
        bound = math.sqrt(6.0 / in_features) / omega_0
        w = jax.random.uniform(kw, (out_features, in_features),
                               minval=-bound, maxval=bound, dtype=jnp.float32)
    if bias:
        b_bound = 1.0 / math.sqrt(in_features)
        b = jax.random.uniform(kb, (out_features,),
                               minval=-b_bound, maxval=b_bound, dtype=jnp.float32)
    else:
        b = jnp.zeros((out_features,), dtype=jnp.float32)
    return w, b


if __name__ == "__main__":
    key = jax.random.PRNGKey(0)
    k_x, k_p = jax.random.split(key)

    batch = 200          # deliberately NOT a multiple of 128 (pads to 208, not 256)
    in_features = 64
    out_features = 256

    x = jax.random.normal(k_x, (batch, in_features), dtype=jnp.float32)
    w, b = init_sine_layer_params(k_p, in_features, out_features,
                                  is_first=True, omega_0=30.0)
    w_t = w.T  # pre-transpose PyTorch-layout weight once (glue; matmul in-kernel)

    # is_first layer -> keep the matmul in f32 (omega_0 baked into the weights).
    out_f32 = jax.block_until_ready(sine_layer(x, w_t, b, use_bf16_matmul=False))
    assert out_f32.shape == (batch, out_features)
    ref_hi = jnp.sin(jnp.dot(x, w_t, precision=jax.lax.Precision.HIGHEST) + b)
    assert jnp.max(jnp.abs(out_f32 - ref_hi)) < 2e-2

    # bf16 fast path (recommended for hidden layers): compare at matched precision.
    out_bf = jax.block_until_ready(sine_layer(x, w_t, b, use_bf16_matmul=True))
    ref_same = jnp.sin(
        jnp.dot(x.astype(jnp.bfloat16), w_t.astype(jnp.bfloat16),
                preferred_element_type=jnp.float32) + b)
    assert jnp.max(jnp.abs(out_bf - ref_same)) < 1e-3

    print("KERNEL_OK")
</pallas_src>

<mosaic_0001>
module attributes {stable_mosaic.version = 11 : i64} {
  func.func @_sine_kernel_single_k(%arg0: i32, %arg1: i32, %arg2: memref<208x64xf32, #tpu.memory_space<vmem>>, %arg3: memref<64x128xf32, #tpu.memory_space<vmem>>, %arg4: memref<1x128xf32, #tpu.memory_space<vmem>>, %arg5: memref<208x128xf32, #tpu.memory_space<vmem>>) attributes {dimension_semantics = [#tpu.dimension_semantics<parallel>, #tpu.dimension_semantics<parallel>], iteration_bounds = array<i64: 1, 2>, scalar_prefetch = 0 : i64, scratch_operands = 0 : i64, tpu.core_type = #tpu.core_type<tc>, window_params = [{transform_indices = @transform_0, window_bounds = array<i64: 208, 64>}, {transform_indices = @transform_1, window_bounds = array<i64: 64, 128>}, {transform_indices = @transform_2, window_bounds = array<i64: 1, 128>}, {transform_indices = @transform_3, window_bounds = array<i64: 208, 128>}]} {
    %c0 = arith.constant 0 : index
    %c0_0 = arith.constant 0 : index
    %0 = vector.load %arg2[%c0, %c0_0] : memref<208x64xf32, #tpu.memory_space<vmem>>, vector<208x64xf32>
    %c0_1 = arith.constant 0 : index
    %c0_2 = arith.constant 0 : index
    %1 = vector.load %arg3[%c0_1, %c0_2] : memref<64x128xf32, #tpu.memory_space<vmem>>, vector<64x128xf32>
    %cst = arith.constant dense<0.000000e+00> : vector<208x128xf32>
    %2 = tpu.matmul %0, %1, %cst {dimension_numbers = #tpu.dot_dimension_numbers<[1], [0], [0], [1], [0, 0, 1, 1], [], []>} : vector<208x64xf32>, vector<64x128xf32>, vector<208x128xf32> -> vector<208x128xf32>
    %c0_3 = arith.constant 0 : index
    %c0_4 = arith.constant 0 : index
    %3 = vector.load %arg4[%c0_3, %c0_4] : memref<1x128xf32, #tpu.memory_space<vmem>>, vector<1x128xf32>
    %4 = vector.broadcast %3 : vector<1x128xf32> to vector<208x128xf32>
    %5 = arith.addf %2, %4 : vector<208x128xf32>
    %6 = math.sin %5 : vector<208x128xf32>
    %c0_5 = arith.constant 0 : index
    %c0_6 = arith.constant 0 : index
    %7 = vector.load %arg5[%c0_5, %c0_6] : memref<208x128xf32, #tpu.memory_space<vmem>>, vector<208x128xf32>
    tpu.vector_store %arg5[%c0_5, %c0_6], %6 {strides = array<i32>} : memref<208x128xf32, #tpu.memory_space<vmem>>, vector<208x128xf32>,
    return
  }
  func.func @transform_0(%arg0: i32, %arg1: i32) -> (i32, i32) {
    %c0_i32 = arith.constant 0 : i32
    %c0_i32_0 = arith.constant 0 : i32
    return %arg0, %c0_i32 : i32, i32
  }
  func.func @transform_1(%arg0: i32, %arg1: i32) -> (i32, i32) {
    %c0_i32 = arith.constant 0 : i32
    %c0_i32_0 = arith.constant 0 : i32
    return %c0_i32, %arg1 : i32, i32
  }
  func.func @transform_2(%arg0: i32, %arg1: i32) -> (i32, i32) {
    %c0_i32 = arith.constant 0 : i32
    %c0_i32_0 = arith.constant 0 : i32
    return %c0_i32, %arg1 : i32, i32
  }
  func.func @transform_3(%arg0: i32, %arg1: i32) -> (i32, i32) {
    %c0_i32 = arith.constant 0 : i32
    return %arg0, %arg1 : i32, i32
  }
}

</mosaic_0001>

<bundles_post_ra>
// kernel: tpu_custom_call.1
= control target key start
LH: loop header
LB: loop body
LE: loop exit
PB: predicated region body
PF: predicated region fallthrough
CT: control target
= control target key end

     0   :  { %8 = vsyncpa [#allocation4], 0  ;;  %s8082_s0 = inlined_call_operand.vmem [shape: f32[208,64], index: 0, kind: input, shape index: {}]   ;;  %s8083_s1 = inlined_call_operand.vmem [shape: f32[64,256], index: 1, kind: input, shape index: {}]   ;;  %s8084_s2 = inlined_call_operand.vmem [shape: f32[1,256], index: 2, kind: input, shape index: {}]   ;;  %s8085_s3 = inlined_call_operand.hbm [shape: f32[208,256], index: 3, kind: output, shape index: {}]  }
   0x1   :  { %10 = vsyncpa [#allocation4 + $0x1], 0  ;;  %s4994_s12 = smov 0   ;;  %s4996_s13 = smov 0  }
   0x2   :  { %s4998_s14 = smov 0   ;;  %s5000_s15 = smov 0  }
   0x3   :  { %s5002_s16 = smov 0   ;;  %s5004_s17 = smov 0  }
   0x4 LB: > { %s4671_s18 = sadd.s32 4294967295, %s4962_s17   ;;  %s4672_s19 = sadd.s32 4294967294, %s4962_s17   ;;  %s4962_s17 = sphi %s5004_s17, %s16_s17   ;;  %s4958_s16 = sphi %s5002_s16, %s8130_s16   ;;  %s4954_s15 = sphi %s5000_s15, %s8129_s15   ;;  %s4950_s14 = sphi %s4998_s14, %s8128_s14   ;;  %s4946_s13 = sphi %s4996_s13, %s8127_s13   ;;  %s4942_s12 = sphi %s4994_s12, %s8126_s12  }
   0x5   : > { %s25_s20 = sadd.s32 1, %s4958_s16  ;;  %s61_s21 = sadd.s32 1, %s4950_s14 }
   0x6   : > { %p26_p0 = scmp.ge.s32.totalorder %s25_s20, 2  ;;  %p68_p1 = scmp.ne.s32.totalorder %s4950_s14, %s4946_s13 }
   0x7   : > { %p69_p2 = scmp.eq.s32.totalorder %s4962_s17, 0  ;;  %p126_p3 = scmp.eq.s32.totalorder %s4671_s18, 1 }
   0x8   : > { %s8132_s20 = smov (%p26_p0, %s25_s20), 0  ;;  %p131_p6 = scmp.ne.s32.totalorder %s4946_s13, %s4942_s12 }
   0x9   : > { %p70_p4 = por %p69_p2, %p68_p1  ;;  %p5033_p5 = por %p126_p3, %p68_p1 }
   0xa   : > { %s58_s23 = ssub.s32 %s4958_s16, %s8132_s20  ;;  %p132_p8 = scmp.eq.s32.totalorder %s4672_s19, 1 }
   0xb   : > { %p59_p7 = scmp.eq.s32.totalorder %s58_s23, 0  ;;  %p4675_p10 = scmp.ge.s32.totalorder %s4962_s17, 2 }
   0xc   : > { %p5044_p9 = por %p132_p8, %p131_p6 }
   0xd   : > { %s5042_s24 = scalar_select %p59_p7, %s4950_s14, %s61_s21  }
   0xe   : > { %157 = sbr.rel (%p4675_p10) target bundleno = 31 (0x1f), region = 20 }
  0x13   : > { %160 = sbr.rel (!%p70_p4) target bundleno = 31 (0x1f), region = 24  ;;  %s162_s26 = sand.u32 (%p70_p4), 1, %s4950_s14  }
  0x14   : > { %s4677_s27 = sshll.u32 (%p70_p4), %s4958_s16, 3  ;;  %s4676_s28 = sshll.u32 (%p70_p4), %s162_s26, 6 }
  0x15   : > { %s166_s4 = scalar_lea.vmem (%p70_p4), %s8083_s1, %s4677_s27  ;;  %s164_s5 = scalar_lea.vmem (%p70_p4), [#allocation2], %s4676_s28 }
  0x16   : > { %v209_v0 = vld [vmem:[%s166_s4] sm:$0xff] (%p70_p4)  ;;  %v211_v1 = vld [vmem:[%s166_s4 + $0x10] sm:$0xff] (%p70_p4) }
  0x17   : > { %v213_v2 = vld [vmem:[%s166_s4 + $0x20] sm:$0xff] (%p70_p4)  ;;  %210 = vst [vmem:[%s164_s5] sm:$0xff] (%p70_p4), %v209_v0  ;;  %v215_v3 = vld [vmem:[%s166_s4 + $0x30] sm:$0xff] (%p70_p4) }
  0x18   : > { %212 = vst [vmem:[%s164_s5 + $0x8] sm:$0xff] %v211_v1  ;;  %v217_v4 = vld [vmem:[%s166_s4 + $0x40] sm:$0xff]  ;;  %v219_v5 = vld [vmem:[%s166_s4 + $0x50] sm:$0xff] }
  0x19   : > { %214 = vst [vmem:[%s164_s5 + $0x10] sm:$0xff] %v213_v2  ;;  %v221_v6 = vld [vmem:[%s166_s4 + $0x60] sm:$0xff]  ;;  %v223_v7 = vld [vmem:[%s166_s4 + $0x70] sm:$0xff] }
  0x1a   : > { %216 = vst [vmem:[%s164_s5 + $0x18] sm:$0xff] %v215_v3 }
  0x1b   : > { %218 = vst [vmem:[%s164_s5 + $0x20] sm:$0xff] %v217_v4 }
  0x1c   : > { %220 = vst [vmem:[%s164_s5 + $0x28] sm:$0xff] %v219_v5 }
  0x1d   : > { %222 = vst [vmem:[%s164_s5 + $0x30] sm:$0xff] %v221_v6 }
  0x1e   : > { %224 = vst [vmem:[%s164_s5 + $0x38] sm:$0xff] %v223_v7 }
  0x1f PF: > { %p4678_p11 = scmp.ge.s32.totalorder %s4962_s17, 1  ;;  %p235_p12 = scmp.lt.s32.totalorder %s4962_s17, 3 }
  0x21   : > { %p236_p13 = pnand %p4678_p11, %p235_p12 }
  0x22   : > { %s5059_s6 = sand.u32 (!%p236_p13), 1, %s4946_s13   ;;  %p279_p0 = scmp.lt.s32.totalorder (!%p236_p13), %s4954_s15, 1 }
  0x23   : > { %239 = sbr.rel (%p236_p13) target bundleno = 1201 (0x4b1), region = 66  ;;  %s4679_s7 = sshll.u32 (!%p236_p13), %s5059_s6, 6 }
  0x24   : > { %s5063_s8 = scalar_lea.vmem (!%p236_p13), [#allocation2], %s4679_s7  ;;  %s4811_s30 = smul.u32 (!%p236_p13), 208, %s5059_s6 }
  0x25   : > { %s4904_s26 = scalar_lea.hbm (!%p236_p13), %s8085_s3, 416 }
  0x26   : > { %s5494_s4 = scalar_lea.vmem (!%p236_p13), [#allocation3], %s4811_s30 }
  0x28   : > { %v316_v8 = vld [vmem:[%s5063_s8 + $0x38] sm:$0xff]  ;;  %v315_v9 = vld [vmem:[%s5063_s8 + $0x30] sm:$0xff]  ;;  %s280_s9 = scalar_select %p279_p0, %s4954_s15, 1  ;;  %v314_v10 = vld [vmem:[%s5063_s8 + $0x28] sm:$0xff]  ;;  %vm321_vm0 = vcmask 523264  }
  0x29   : > { %408 = vmatpush.msra.mxu0 %v316_v8  ;;  %4787 = vmatpush.msra.mxu1 %v316_v8  ;;  %v313_v11 = vld [vmem:[%s5063_s8 + $0x20] sm:$0xff]  ;;  %v312_v12 = vld [vmem:[%s5063_s8 + $0x18] sm:$0xff]  ;;  %v311_v13 = vld [vmem:[%s5063_s8 + $0x10] sm:$0xff]  ;;  %v4964_v7 = vmov 683565275  }
  0x2a   : > { %4788 = vmatpush.msra.mxu2 %v316_v8  ;;  %4789 = vmatpush.msra.mxu3 %v316_v8  ;;  %s5072_s18 = scalar_lea.vmem %s8084_s2, %s280_s9  ;;  %v310_v14 = vld [vmem:[%s5063_s8 + $0x8] sm:$0xff]  ;;  %v309_v15 = vld [vmem:[%s5063_s8] sm:$0xff]  ;;  %v289_v17 = vld [vmem:[%s8082_s0 + $0x30] sm:$0xff]  ;;  %s4566_s9 = sshll.u32 %s5494_s4, 4  ;;  %s8043_s9 = int_to_ptr.vmem [resolvable:$true] %s4566_s9 }
  0x2b   : > { %409 = vmatpush.msra.mxu0 %v315_v9  ;;  %4790 = vmatpush.msra.mxu1 %v315_v9  ;;  %v283_v16 = vld [vmem:[%s8082_s0] sm:$0xff]  ;;  %v302_v19 = vld [vmem:[%s8082_s0 + $0x98] sm:$0xff]  ;;  %v284_v20 = vld [vmem:[%s8082_s0 + $0x8] sm:$0xff] }
  0x2c   : > { %4791 = vmatpush.msra.mxu2 %v315_v9  ;;  %4792 = vmatpush.msra.mxu3 %v315_v9  ;;  %v295_v18 = vld [vmem:[%s8082_s0 + $0x60] sm:$0xff]  ;;  %v290_v21 = vld [vmem:[%s8082_s0 + $0x38] sm:$0xff]  ;;  %v296_v22 = vld [vmem:[%s8082_s0 + $0x68] sm:$0xff]  ;;  %v4965_v9 = vmov 2475754826  }
  0x2d   : > { %410 = vmatpush.msra.mxu0 %v314_v10  ;;  %4793 = vmatpush.msra.mxu1 %v314_v10  ;;  %v303_v23 = vld [vmem:[%s8082_s0 + $0xa0] sm:$0xff]  ;;  %v285_v24 = vld [vmem:[%s8082_s0 + $0x10] sm:$0xff]  ;;  %v304_v27 = vld [vmem:[%s8082_s0 + $0xa8] sm:$0xff] }
  0x2e   : > { %4794 = vmatpush.msra.mxu2 %v314_v10  ;;  %4795 = vmatpush.msra.mxu3 %v314_v10  ;;  %v291_v25 = vld [vmem:[%s8082_s0 + $0x40] sm:$0xff]  ;;  %v297_v26 = vld [vmem:[%s8082_s0 + $0x70] sm:$0xff]  ;;  %v286_v28 = vld [vmem:[%s8082_s0 + $0x18] sm:$0xff] }
  0x2f   : > { %411 = vmatpush.msra.mxu0 %v313_v11  ;;  %4796 = vmatpush.msra.mxu1 %v313_v11  ;;  %v292_v29 = vld [vmem:[%s8082_s0 + $0x48] sm:$0xff]  ;;  %v298_v30 = vld [vmem:[%s8082_s0 + $0x78] sm:$0xff]  ;;  %v305_v31 = vld [vmem:[%s8082_s0 + $0xb0] sm:$0xff] }
  0x30   : > { %4797 = vmatpush.msra.mxu2 %v313_v11  ;;  %4798 = vmatpush.msra.mxu3 %v313_v11  ;;  %v287_v32 = vld [vmem:[%s8082_s0 + $0x20] sm:$0xff]  ;;  %v293_v33 = vld [vmem:[%s8082_s0 + $0x50] sm:$0xff]  ;;  %v306_v35 = vld [vmem:[%s8082_s0 + $0xb8] sm:$0xff]  ;;  %v4966_v11 = vmov 2131351028  }
  0x31   : > { %412 = vmatpush.msra.mxu0 %v312_v12  ;;  %4799 = vmatpush.msra.mxu1 %v312_v12  ;;  %v299_v34 = vld [vmem:[%s8082_s0 + $0x80] sm:$0xff]  ;;  %v288_v36 = vld [vmem:[%s8082_s0 + $0x28] sm:$0xff]  ;;  %v294_v37 = vld [vmem:[%s8082_s0 + $0x58] sm:$0xff] }
  0x32   : > { %4800 = vmatpush.msra.mxu2 %v312_v12  ;;  %4801 = vmatpush.msra.mxu3 %v312_v12  ;;  %v300_v38 = vld [vmem:[%s8082_s0 + $0x88] sm:$0xff]  ;;  %v307_v39 = vld [vmem:[%s8082_s0 + $0xc0] sm:$0xff]  ;;  %v301_v40 = vld [vmem:[%s8082_s0 + $0x90] sm:$0xff] }
  0x33   : > { %413 = vmatpush.msra.mxu0 %v311_v13  ;;  %4802 = vmatpush.msra.mxu1 %v311_v13  ;;  %v308_v41 = vld [vmem:[%s8082_s0 + $0xc8] sm:$0xff]  ;;  %v5184_v42 = vld [vmem:[%s5072_s18] ss:$0 sm:$0xff] }
  0x34   : > { %4803 = vmatpush.msra.mxu2 %v311_v13  ;;  %4804 = vmatpush.msra.mxu3 %v311_v13  ;;  %v4967_v13 = vmov 2102212464  }
  0x35   : > { %414 = vmatpush.msra.mxu0 %v310_v14  ;;  %4805 = vmatpush.msra.mxu1 %v310_v14 }
  0x36   : > { %4806 = vmatpush.msra.mxu2 %v310_v14  ;;  %4807 = vmatpush.msra.mxu3 %v310_v14 }
  0x37   : > { %415 = vmatpush.msra.mxu0 %v309_v15  ;;  %4808 = vmatpush.msra.mxu1 %v309_v15 }
  0x38   : > { %4809 = vmatpush.msra.mxu2 %v309_v15  ;;  %4810 = vmatpush.msra.mxu3 %v309_v15  ;;  %v4968_v15 = vmov 920167782  }
  0x39   : > { %4680 = vmatmul.msk.f32.vlgmr.msra.gmra.mxu0 %vm321_vm0, %v283_v16  ;;  %4686 = vmatmul.msk.f32.vlgmr.msra.gmra.mxu1 %vm321_vm0, %v289_v17 }
  0x3a   : > { %4692 = vmatmul.msk.f32.vlgmr.msra.gmra.mxu2 %vm321_vm0, %v295_v18  ;;  %4699 = vmatmul.msk.f32.vlgmr.msra.gmra.mxu3 %vm321_vm0, %v302_v19 }
  0x41   : > { %4681 = vmatmul.msk.f32.gmra.mxu0 %vm321_vm0, %v284_v20  ;;  %4687 = vmatmul.msk.f32.gmra.mxu1 %vm321_vm0, %v290_v21 }
  0x42   : > { %4693 = vmatmul.msk.f32.gmra.mxu2 %vm321_vm0, %v296_v22  ;;  %4700 = vmatmul.msk.f32.gmra.mxu3 %vm321_vm0, %v303_v23 }
  0x49   : > { %4682 = vmatmul.msk.f32.gmra.mxu0 %vm321_vm0, %v285_v24  ;;  %4688 = vmatmul.msk.f32.gmra.mxu1 %vm321_vm0, %v291_v25  ;;  %v4969_v24 = vmov 1326507024  }
  0x4a   : > { %4694 = vmatmul.msk.f32.gmra.mxu2 %vm321_vm0, %v297_v26  ;;  %4701 = vmatmul.msk.f32.gmra.mxu3 %vm321_vm0, %v304_v27 }
  0x51   : > { %4683 = vmatmul.msk.f32.gmra.mxu0 %vm321_vm0, %v286_v28  ;;  %4689 = vmatmul.msk.f32.gmra.mxu1 %vm321_vm0, %v292_v29 }
  0x52   : > { %4695 = vmatmul.msk.f32.gmra.mxu2 %vm321_vm0, %v298_v30  ;;  %4702 = vmatmul.msk.f32.gmra.mxu3 %vm321_vm0, %v305_v31 }
  0x59   : > { %4684 = vmatmul.msk.f32.gmra.mxu0 %vm321_vm0, %v287_v32  ;;  %4690 = vmatmul.msk.f32.gmra.mxu1 %vm321_vm0, %v293_v33 }
  0x5a   : > { %4696 = vmatmul.msk.f32.gmra.mxu2 %vm321_vm0, %v299_v34  ;;  %4703 = vmatmul.msk.f32.gmra.mxu3 %vm321_vm0, %v306_v35 }
  0x61   : > { %4685 = vmatmul.msk.f32.gmra.mxu0 %vm321_vm0, %v288_v36  ;;  %4691 = vmatmul.msk.f32.gmra.mxu1 %vm321_vm0, %v294_v37 }
  0x62   : > { %4697 = vmatmul.msk.f32.gmra.mxu2 %vm321_vm0, %v300_v38  ;;  %4704 = vmatmul.msk.f32.gmra.mxu3 %vm321_vm0, %v307_v39 }
  0x6a   : > { %4698 = vmatmul.msk.f32.gmra.mxu2 %vm321_vm0, %v301_v40  ;;  %4705 = vmatmul.msk.f32.gmra.mxu3 %vm321_vm0, %v308_v41 }
  0xb6   : > { %v417_v43 = vpop.f32.mrf.mxu0  ;;  %v435_v44 = vpop.f32.mrf.mxu1 }
  0xb7   : > { %v5187_v45 = vadd.f32 %v5184_v42, %v417_v43  ;;  %v5190_v46 = vadd.f32 %v5184_v42, %v435_v44 }
  0xb9   : > { %v495_v47 = vand.u32 2147483647, %v5187_v45  ;;  %v498_v48 = vand.u32 2139095040, %v5187_v45  ;;  %v1425_v49 = vand.u32 2147483647, %v5190_v46  ;;  %v1428_v50 = vand.u32 2139095040, %v5190_v46 }
  0xbb   : > { %v499_v51 = vshrl.u32 %v498_v48, 23  ;;  %v502_v52 = vand.u32 8388607, %v495_v47  ;;  %v1429_v53 = vshrl.u32 %v1428_v50, 23  ;;  %v1432_v54 = vand.u32 8388607, %v1425_v49 }
  0xbd   : > { %v4706_v55 = vadd.s32 4294967169, %v499_v51  ;;  %v503_v56 = vor.u32 8388608, %v502_v52  ;;  %v4724_v57 = vadd.s32 4294967169, %v1429_v53  ;;  %v1433_v59 = vor.u32 8388608, %v1432_v54  ;;  %v453_v61 = vpop.f32.mrf.mxu2 }
  0xbe   : > { %v5203_v2 = vadd.f32 %v5184_v42, %v453_v61 }
  0xbf   : > { %v505_v58 = vadd.s32 1, %v4706_v55  ;;  %v1435_v60 = vadd.s32 1, %v4724_v57  ;;  %v5200_v63 = vshll.u32 %v503_v56, 8  ;;  %v5209_v5 = vshll.u32 %v1433_v59, 8 }
  0xc0   : > { %v2358_v22 = vand.u32 2139095040, %v5203_v2 }
  0xc1   : > { %vm506_vm1 = vcmp.gt.s32.totalorder %v505_v58, 0  ;;  %vm1436_vm2 = vcmp.gt.s32.totalorder %v1435_v60, 0  ;;  %v544_v17 = vand.u32 65535, %v5200_v63  ;;  %v545_v18 = vshrl.u32 %v5200_v63, 16 }
  0xc2   : > { %v507_v62 = vsel %vm506_vm1, %v505_v58, 0  ;;  %v1437_v1 = vsel %vm1436_vm2, %v1435_v60, 0  ;;  %v5231_v32 = vand.u32 65535, %v5209_v5  ;;  %v5262_v52 = vshrl.u32 %v5209_v5, 16 }
  0xc3   : > { %v509_v0 = vand.u32 31, %v507_v62  ;;  %v5205_v3 = vshrl.u32 %v507_v62, 5  ;;  %v5207_v4 = vand.u32 31, %v1437_v1  ;;  %v5268_v59 = vshrl.u32 %v1437_v1, 5 }
  0xc5   : > { %v510_v6 = vsub.s32 32, %v509_v0  ;;  %v512_v8 = vshll.u32 %v4964_v7, %v509_v0  ;;  %v515_v10 = vshll.u32 %v4965_v9, %v509_v0  ;;  %v518_v12 = vshll.u32 %v4966_v11, %v509_v0 }
  0xc6   : > { %v521_v14 = vshll.u32 %v4967_v13, %v509_v0  ;;  %v524_v16 = vshll.u32 %v4968_v15, %v509_v0  ;;  %vm527_vm3 = vcmp.lt.s32.totalorder %v5205_v3, 1  ;;  %vm530_vm4 = vcmp.lt.s32.totalorder %v5205_v3, 4 }
  0xc7   : > { %v513_v19 = vshrl.u32 %v4965_v9, %v510_v6  ;;  %v516_v20 = vshrl.u32 %v4966_v11, %v510_v6  ;;  %v519_v21 = vshrl.u32 %v4967_v13, %v510_v6  ;;  %v522_v23 = vshrl.u32 %v4968_v15, %v510_v6 }
  0xc8   : > { %v525_v25 = vshrl.u32 %v4969_v24, %v510_v6  ;;  %v5227_v29 = vsub.s32 32, %v5207_v4  ;;  %vm529_vm5 = vcmp.lt.s32.totalorder %v5205_v3, 3  ;;  %v511_v33 = vshrl.u32 %v4964_v7, %v510_v6 }
  0xc9   : > { %v514_v26 = vor.u32 %v513_v19, %v512_v8  ;;  %v517_v27 = vor.u32 %v516_v20, %v515_v10  ;;  %v520_v28 = vor.u32 %v519_v21, %v518_v12  ;;  %v523_v30 = vor.u32 %v522_v23, %v521_v14 }
  0xca   : > { %v526_v31 = vor.u32 %v525_v25, %v524_v16  ;;  %vm528_vm6 = vcmp.lt.s32.totalorder %v5205_v3, 2  ;;  %v1442_v38 = vshll.u32 %v4964_v7, %v5207_v4  ;;  %v1445_v39 = vshll.u32 %v4965_v9, %v5207_v4 }
  0xcb   : > { %v535_v34 = vsel %vm527_vm3, %v514_v26, %v517_v27  ;;  %v539_v35 = vsel %vm527_vm3, %v517_v27, %v520_v28  ;;  %v536_v36 = vsel %vm530_vm4, %v523_v30, 920167782  ;;  %v532_v40 = vsel %vm530_vm4, %v520_v28, 2102212464 }
  0xcc   : > { %v540_v37 = vsel %vm530_vm4, %v526_v31, 1326507024  ;;  %v537_v41 = vsel %vm529_vm5, %v520_v28, %v536_v36  ;;  %v1443_v44 = vshrl.u32 %v4965_v9, %v5227_v29  ;;  %v1446_v51 = vshrl.u32 %v4966_v11, %v5227_v29 }
  0xcd   : > { %v541_v43 = vsel %vm529_vm5, %v523_v30, %v540_v37  ;;  %v538_v48 = vsel %vm528_vm6, %v535_v34, %v537_v41  ;;  %v531_v57 = vsel %vm527_vm3, %v511_v33, %v514_v26  ;;  %v533_v58 = vsel %vm529_vm5, %v517_v27, %v532_v40 }
  0xce   : > { %v542_v50 = vsel %vm528_vm6, %v539_v35, %v541_v43  ;;  %v568_v55 = vand.u32 65535, %v538_v48  ;;  %v569_v56 = vshrl.u32 %v538_v48, 16  ;;  %v5270_v60 = vor.u32 %v1443_v44, %v1442_v38 }
  0xcf   : > { %v546_v53 = vand.u32 65535, %v542_v50  ;;  %v547_v54 = vshrl.u32 %v542_v50, 16  ;;  %v5272_v6 = vor.u32 %v1446_v51, %v1445_v39  ;;  %v1448_v14 = vshll.u32 %v4966_v11, %v5207_v4 }
  0xd0   : > { %v570_v8 = vmul.u32 %v568_v55, %v544_v17  ;;  %v571_v10 = vmul.u32 %v569_v56, %v544_v17  ;;  %v572_v12 = vmul.u32 %v568_v55, %v545_v18  ;;  %v1449_v1 = vshrl.u32 %v4967_v13, %v5227_v29 }
  0xd1   : > { %v548_v61 = vmul.u32 %v546_v53, %v544_v17  ;;  %v549_v62 = vmul.u32 %v547_v54, %v544_v17  ;;  %v550_v0 = vmul.u32 %v546_v53, %v545_v18  ;;  %v551_v16 = vmul.u32 %v547_v54, %v545_v18 }
  0xd2   : > { %v573_v23 = vmul.u32 %v569_v56, %v545_v18  ;;  %v574_v25 = vshll.u32 %v571_v10, 16  ;;  %v576_v26 = vshll.u32 %v572_v12, 16  ;;  %v1451_v17 = vshll.u32 %v4967_v13, %v5207_v4 }
  0xd3   : > { %v552_v19 = vshll.u32 %v549_v62, 16  ;;  %v554_v20 = vshll.u32 %v550_v0, 16  ;;  %v553_v21 = vshrl.u32 %v549_v62, 16  ;;  %v555_v27 = vshrl.u32 %v550_v0, 16 }
  0xd4   : > { %v4970_v30 = vmov 0   ;;  %vm578_vm8 = vc.u32 %v570_v8, %v574_v25  ;;  %v580_v33 = vadd.s32 %v574_v25, %v570_v8  ;;  %v1452_v34 = vshrl.u32 %v4968_v15, %v5227_v29 }
  0xd5   : > { %vm556_vm7 = vc.u32 %v548_v61, %v552_v19  ;;  %v558_v28 = vadd.s32 %v552_v19, %v548_v61  ;;  %v579_v18 = vsel %vm578_vm8, 1, %v4970_v30  ;;  %v1454_v36 = vshll.u32 %v4968_v15, %v5207_v4 }
  0xd6   : > { %v557_v31 = vsel %vm556_vm7, 1, %v4970_v30  ;;  %v581_v38 = vadd.s32 %v579_v18, %v573_v23  ;;  %vm582_vm10 = vc.u32 %v580_v33, %v576_v26  ;;  %v1450_v39 = vor.u32 %v1449_v1, %v1448_v14 }
  0xd7   : > { %v559_v35 = vadd.s32 %v557_v31, %v551_v16  ;;  %vm560_vm9 = vc.u32 %v558_v28, %v554_v20  ;;  %v583_v41 = vsel %vm582_vm10, 1, %v4970_v30  ;;  %v1453_v43 = vor.u32 %v1452_v34, %v1451_v17 }
  0xd8   : > { %v561_v37 = vsel %vm560_vm9, 1, %v4970_v30  ;;  %v1455_v44 = vshrl.u32 %v4969_v24, %v5227_v29  ;;  %v575_v48 = vshrl.u32 %v571_v10, 16  ;;  %v585_v50 = vadd.s32 %v583_v41, %v581_v38 }
  0xd9   : > { %v563_v40 = vadd.s32 %v561_v37, %v559_v35  ;;  %vm1457_vm11 = vcmp.lt.s32.totalorder %v5268_v59, 1  ;;  %vm1459_vm12 = vcmp.lt.s32.totalorder %v5268_v59, 3  ;;  %vm1458_vm13 = vcmp.lt.s32.totalorder %v5268_v59, 2 }
  0xda   : > { %v1456_v4 = vor.u32 %v1455_v44, %v1454_v36  ;;  %vm1460_vm14 = vcmp.lt.s32.totalorder %v5268_v59, 4  ;;  %v577_v53 = vshrl.u32 %v572_v12, 16  ;;  %v586_v54 = vadd.s32 %v585_v50, %v575_v48 }
  0xdb   : > { %v564_v51 = vadd.s32 %v563_v40, %v553_v21  ;;  %v1465_v55 = vsel %vm1457_vm11, %v5270_v60, %v5272_v6  ;;  %v1466_v56 = vsel %vm1460_vm14, %v1453_v43, 920167782  ;;  %v5302_v62 = vadd.s32 %v580_v33, %v576_v26 }
  0xdc   : > { %v1467_v0 = vsel %vm1459_vm12, %v1450_v39, %v1466_v56  ;;  %v1469_v8 = vsel %vm1457_vm11, %v5272_v6, %v1450_v39  ;;  %v534_v10 = vsel %vm528_vm6, %v531_v57, %v533_v58  ;;  %v587_v12 = vadd.s32 %v586_v54, %v577_v53 }
  0xdd   : > { %v5300_v61 = vadd.s32 %v564_v51, %v555_v27  ;;  %v1468_v14 = vsel %vm1458_vm13, %v1465_v55, %v1467_v0  ;;  %v1470_v16 = vsel %vm1460_vm14, %v1456_v4, 1326507024  ;;  %v2355_v57 = vand.u32 2147483647, %v5203_v2 }
  0xde   : > { %v1471_v19 = vsel %vm1459_vm12, %v1453_v43, %v1470_v16  ;;  %v1498_v20 = vand.u32 65535, %v1468_v14  ;;  %v591_v1 = vadd.s32 1, %v587_v12  ;;  %v1499_v3 = vshrl.u32 %v1468_v14, 16 }
  0xdf   : > { %vm590_vm15 = vc.u32 %v5300_v61, %v5302_v62  ;;  %v1472_v21 = vsel %vm1458_vm13, %v1469_v8, %v1471_v19  ;;  %v588_v58 = vmul.u32 %v5200_v63, %v534_v10  ;;  %v2359_v31 = vshrl.u32 %v2358_v22, 23 }
  0xe0   : > { %v1476_v23 = vand.u32 65535, %v1472_v21  ;;  %v1477_v25 = vshrl.u32 %v1472_v21, 16  ;;  %v1502_v26 = vmul.u32 %v1498_v20, %v5262_v52  ;;  %v592_v27 = vsel %vm590_vm15, %v591_v1, %v587_v12 }
  0xe1   : > { %v1500_v28 = vmul.u32 %v1498_v20, %v5231_v32  ;;  %v1501_v17 = vmul.u32 %v1499_v3, %v5231_v32  ;;  %v593_v33 = vadd.s32 %v592_v27, %v588_v58  ;;  %v1441_v63 = vshrl.u32 %v4964_v7, %v5227_v29 }
  0xe2   : > { %v1478_v34 = vmul.u32 %v1476_v23, %v5231_v32  ;;  %v1479_v35 = vmul.u32 %v1477_v25, %v5231_v32  ;;  %v1480_v18 = vmul.u32 %v1476_v23, %v5262_v52  ;;  %v1462_v36 = vsel %vm1460_vm14, %v1450_v39, 2102212464 }
  0xe3   : > { %v1504_v37 = vshll.u32 %v1501_v17, 16  ;;  %v1506_v38 = vshll.u32 %v1502_v26, 16  ;;  %v594_v40 = vadd.s32 536870912, %v593_v33  ;;  %v1503_v22 = vmul.u32 %v1499_v3, %v5262_v52 }
  0xe4   : > { %v1482_v41 = vshll.u32 %v1479_v35, 16  ;;  %v1484_v43 = vshll.u32 %v1480_v18, 16  ;;  %v1481_v44 = vmul.u32 %v1477_v25, %v5262_v52  ;;  %v4742_v32 = vadd.s32 4294967169, %v2359_v31 }
  0xe5   : > { %vm1508_vm0 = vc.u32 %v1500_v28, %v1504_v37  ;;  %v1510_v48 = vadd.s32 %v1504_v37, %v1500_v28  ;;  %v595_v50 = vshrl.u32 %v594_v40, 30  ;;  %v2362_v53 = vand.u32 8388607, %v2355_v57 }
  0xe6   : > { %vm1486_vm1 = vc.u32 %v1478_v34, %v1482_v41  ;;  %v1488_v51 = vadd.s32 %v1482_v41, %v1478_v34  ;;  %v1509_v29 = vsel %vm1508_vm0, 1, %v4970_v30  ;;  %v1461_v52 = vsel %vm1457_vm11, %v1441_v63, %v5270_v60 }
  0xe7   : > { %v1487_v4 = vsel %vm1486_vm1, 1, %v4970_v30  ;;  %v1511_v39 = vadd.s32 %v1509_v29, %v1503_v22  ;;  %vm1512_vm2 = vc.u32 %v1510_v48, %v1506_v38  ;;  %v596_v54 = vshll.u32 %v595_v50, 30 }
  0xe8   : > { %v1489_v55 = vadd.s32 %v1487_v4, %v1481_v44  ;;  %vm1490_vm3 = vc.u32 %v1488_v51, %v1484_v43  ;;  %v1463_v56 = vsel %vm1459_vm12, %v5272_v6, %v1462_v36  ;;  %v1513_v8 = vsel %vm1512_vm2, 1, %v4970_v30 }
  0xe9   : > { %v1491_v0 = vsel %vm1490_vm3, 1, %v4970_v30  ;;  %v2365_v10 = vadd.s32 1, %v4742_v32  ;;  %v597_v12 = vsub.s32 %v593_v33, %v596_v54  ;;  %v1483_v14 = vshrl.u32 %v1479_v35, 16 }
  0xea   : > { %v1493_v16 = vadd.s32 %v1491_v0, %v1489_v55  ;;  %v1515_v19 = vadd.s32 %v1513_v8, %v1511_v39  ;;  %vm497_vm4 = vcmp.lt.s32.totalorder %v5187_v45, 0  ;;  %v619_v20 = vsub.s32 4, %v595_v50 }
  0xeb   : > { %v1505_v1 = vshrl.u32 %v1501_v17, 16  ;;  %vm2366_vm5 = vcmp.gt.s32.totalorder %v2365_v10, 0  ;;  %vm598_vm6 = vcmp.lt.s32.totalorder %v597_v12, 0  ;;  %v599_v60 = vsub.s32 0, %v597_v12 }
  0xec   : > { %v1485_v21 = vshrl.u32 %v1480_v18, 16  ;;  %v1494_v3 = vadd.s32 %v1493_v16, %v1483_v14  ;;  %v1464_v6 = vsel %vm1458_vm13, %v1461_v52, %v1463_v56  ;;  %v1507_v58 = vshrl.u32 %v1502_v26, 16 }
  0xed   : > { %v1516_v23 = vadd.s32 %v1515_v19, %v1505_v1  ;;  %v2367_v25 = vsel %vm2366_vm5, %v2365_v10, 0  ;;  %v600_v27 = vsel %vm598_vm6, %v599_v60, %v597_v12  ;;  %v5354_v31 = vadd.s32 %v1510_v48, %v1506_v38 }
  0xee   : > { %v5352_v28 = vadd.s32 %v1494_v3, %v1485_v21  ;;  %v2363_v33 = vor.u32 8388608, %v2362_v53  ;;  %v601_v34 = vclz %v600_v27  ;;  %v620_v17 = vsel %vm497_vm4, %v619_v20, %v595_v50 }
  0xef   : > { %v1517_v35 = vadd.s32 %v1516_v23, %v1507_v58  ;;  %v2369_v63 = vand.u32 31, %v2367_v25  ;;  %vm5360_vm7 = vcmp.le.f32.partialorder %v495_v47, 0.7853982  ;;  %v589_v26 = vadd.s32 %v5302_v62, %v5300_v61 }
  0xf0   : > { %v1518_v18 = vmul.u32 %v5209_v5, %v1464_v6  ;;  %v4707_v36 = vadd.s32 4294967294, %v601_v34  ;;  %vm1520_vm8 = vc.u32 %v5352_v28, %v5354_v31  ;;  %v622_v40 = vsel %vm5360_vm7, 0, %v620_v17 }
  0xf1   : > { %v1521_v37 = vadd.s32 1, %v1517_v35  ;;  %v2370_v38 = vsub.s32 32, %v2369_v63  ;;  %v5371_v41 = vshrl.u32 %v2367_v25, 5  ;;  %v2372_v47 = vshll.u32 %v4964_v7, %v2369_v63 }
  0xf2   : > { %v5374_v43 = vshll.u32 %v2363_v33, 8  ;;  %vm4708_vm9 = vcmp.lt.s32.totalorder %v4707_v36, 0  ;;  %v2375_v5 = vshll.u32 %v4965_v9, %v2369_v63  ;;  %v2378_v32 = vshll.u32 %v4966_v11, %v2369_v63 }
  0xf3   : > { %v1522_v22 = vsel %vm1520_vm8, %v1521_v37, %v1517_v35  ;;  %v2373_v61 = vshrl.u32 %v4965_v9, %v2370_v38  ;;  %v604_v62 = vsel %vm4708_vm9, 0, %v4707_v36  ;;  %v2376_v48 = vshrl.u32 %v4966_v11, %v2370_v38 }
  0xf4   : > { %v1523_v44 = vadd.s32 %v1522_v22, %v1518_v18  ;;  %v605_v50 = vsub.s32 32, %v604_v62  ;;  %v609_v51 = vsub.s32 4294967266, %v604_v62  ;;  %v2379_v29 = vshrl.u32 %v4967_v13, %v2370_v38  ;;  %v474_v22 = vpop.f32.mrf.mxu3 }
  0xf5   : > { %v2381_v4 = vshll.u32 %v4967_v13, %v2369_v63  ;;  %v606_v39 = vshll.u32 %v597_v12, %v604_v62  ;;  %v2374_v54 = vor.u32 %v2373_v61, %v2372_v47  ;;  %v2382_v52 = vshrl.u32 %v4968_v15, %v2370_v38 }
  0xf6   : > { %v1524_v53 = vadd.s32 536870912, %v1523_v44  ;;  %v607_v55 = vshrl.u32 %v589_v26, %v605_v50  ;;  %v610_v56 = vadd.s32 127, %v609_v51  ;;  %v2377_v0 = vor.u32 %v2376_v48, %v2375_v5 }
  0xf7   : > { %v2385_v8 = vshrl.u32 %v4969_v24, %v2370_v38  ;;  %v639_v10 = vadd.s32 3, %v622_v40  ;;  %v2383_v16 = vor.u32 %v2382_v52, %v2381_v4  ;;  %v2380_v1 = vor.u32 %v2379_v29, %v2378_v32 }
  0xf8   : > { %v1525_v14 = vshrl.u32 %v1524_v53, 30  ;;  %v608_v19 = vor.u32 %v607_v55, %v606_v39  ;;  %v611_v20 = vshll.u32 %v610_v56, 23  ;;  %v2384_v60 = vshll.u32 %v4968_v15, %v2369_v63 }
  0xf9   : > { %vm1427_vm10 = vcmp.lt.s32.totalorder %v5190_v46, 0  ;;  %vm2387_vm11 = vcmp.lt.s32.totalorder %v5371_v41, 1  ;;  %v2404_v21 = vand.u32 65535, %v5374_v43  ;;  %v2405_v3 = vshrl.u32 %v5374_v43, 16 }
  0xfa   : > { %v1526_v12 = vshll.u32 %v1525_v14, 30  ;;  %v612_v6 = vor.u32 4788187, %v611_v20  ;;  %v2386_v58 = vor.u32 %v2385_v8, %v2384_v60  ;;  %vm2390_vm12 = vcmp.lt.s32.totalorder %v5371_v41, 4 }
  0xfb   : > { %v2395_v23 = vsel %vm2387_vm11, %v2374_v54, %v2377_v0  ;;  %v5392_v25 = vand.u32 3, %v639_v10  ;;  %vm2389_vm13 = vcmp.lt.s32.totalorder %v5371_v41, 3  ;;  %v2396_v33 = vsel %vm2390_vm12, %v2383_v16, 920167782 }
  0xfc   : > { %v5394_v27 = vsub.s32 %v1523_v44, %v1526_v12  ;;  %v613_v34 = vand.u32 2147483647, %v612_v6  ;;  %v615_v17 = vcvt.s32.f32 %v608_v19  ;;  %vm2388_vm14 = vcmp.lt.s32.totalorder %v5371_v41, 2 }
  0xfd   : > { %v2397_v35 = vsel %vm2389_vm13, %v2380_v1, %v2396_v33  ;;  %v2371_v26 = vshrl.u32 %v4964_v7, %v2370_v38  ;;  %v1549_v37 = vsub.s32 4, %v1525_v14  ;;  %v2399_v40 = vsel %vm2387_vm11, %v2377_v0, %v2380_v1 }
  0xfe   : > { %vm1528_vm15 = vcmp.lt.s32.totalorder %v5394_v27, 0  ;;  %v1529_v63 = vsub.s32 0, %v5394_v27  ;;  %v2398_v18 = vsel %vm2388_vm14, %v2395_v23, %v2397_v35  ;;  %v616_v36 = vmul.f32 %v615_v17, %v613_v34 }
  0xff   : > { %v2400_v47 = vsel %vm2390_vm12, %v2386_v58, 1326507024  ;;  %v2392_v5 = vsel %vm2390_vm12, %v2380_v1, 2102212464  ;;  %v2428_v62 = vand.u32 65535, %v2398_v18  ;;  %v2429_v50 = vshrl.u32 %v2398_v18, 16 }
 0x100   : > { %v1530_v61 = vsel %vm1528_vm15, %v1529_v63, %v5394_v27  ;;  %v2401_v38 = vsel %vm2389_vm13, %v2383_v16, %v2400_v47  ;;  %v617_v44 = vxor.u32 2147483648, %v616_v36  ;;  %v1519_v51 = vadd.s32 %v5354_v31, %v5352_v28 }
 0x101   : > { %v1531_v48 = vclz %v1530_v61  ;;  %v2402_v32 = vsel %vm2388_vm14, %v2399_v40, %v2401_v38  ;;  %v5422_v29 = vsel %vm2387_vm11, %v2371_v26, %v2374_v54  ;;  %v5425_v39 = vadd.f32 %v5184_v42, %v474_v22 }
 0x102   : > { %v2406_v4 = vand.u32 65535, %v2402_v32  ;;  %v618_v53 = vsel %vm497_vm4, %v617_v44, %v616_v36  ;;  %v5431_v55 = vsel %vm1427_vm10, %v1549_v37, %v1525_v14  ;;  %v2407_v56 = vshrl.u32 %v2402_v32, 16 }
 0x103   : > { %v4725_v52 = vadd.s32 4294967294, %v1531_v48  ;;  %v5436_v28 = vsel %vm5360_vm7, %v5187_v45, %v618_v53  ;;  %v5440_v31 = vsel %vm2389_vm13, %v2377_v0, %v2392_v5  ;;  %v2430_v8 = vmul.u32 %v2428_v62, %v2404_v21 }
 0x104   : > { %v2410_v54 = vmul.u32 %v2406_v4, %v2405_v3  ;;  %v623_v10 = vmul.f32 %v5436_v28, %v5436_v28  ;;  %v2409_v16 = vmul.u32 %v2407_v56, %v2404_v21  ;;  %v5444_v19 = vmul.u32 %v2429_v50, %v2404_v21 }
 0x105   : > { %vm4726_vm0 = vcmp.lt.s32.totalorder %v4725_v52, 0  ;;  %v2408_v20 = vmul.u32 %v2406_v4, %v2404_v21  ;;  %v2411_v1 = vmul.u32 %v2407_v56, %v2405_v3  ;;  %v5446_v60 = vmul.u32 %v2428_v62, %v2405_v3 }
 0x106   : > { %v1534_v14 = vsel %vm4726_vm0, 0, %v4725_v52  ;;  %v624_v59 = vmul.f32 -0.001358992, %v623_v10  ;;  %v631_v12 = vmul.f32 -0.00019511016, %v623_v10  ;;  %v2414_v58 = vshll.u32 %v2410_v54, 16 }
 0x107   : > { %v1535_v6 = vsub.s32 32, %v1534_v14  ;;  %v1539_v0 = vsub.s32 4294967266, %v1534_v14  ;;  %v2412_v23 = vshll.u32 %v2409_v16, 16  ;;  %v2415_v33 = vshrl.u32 %v2410_v54, 16 }
 0x108   : > { %v2433_v34 = vmul.u32 %v2429_v50, %v2405_v3  ;;  %v625_v17 = vadd.f32 0.041655596, %v624_v59  ;;  %v632_v35 = vadd.f32 0.008332121, %v631_v12  ;;  %v1536_v63 = vshll.u32 %v5394_v27, %v1534_v14 }
 0x109   : > { %v1537_v26 = vshrl.u32 %v1519_v51, %v1535_v6  ;;  %v1540_v18 = vadd.s32 127, %v1539_v0  ;;  %vm2416_vm1 = vc.u32 %v2408_v20, %v2412_v23  ;;  %v2418_v36 = vadd.s32 %v2412_v23, %v2408_v20 }
 0x10a   : > { %v2434_v21 = vshll.u32 %v5444_v19, 16  ;;  %v626_v37 = vmul.f32 %v625_v17, %v623_v10  ;;  %v633_v40 = vmul.f32 %v632_v35, %v623_v10  ;;  %v2417_v22 = vsel %vm2416_vm1, 1, %v4970_v30 }
 0x10b   : > { %v1538_v47 = vor.u32 %v1537_v26, %v1536_v63  ;;  %vm5453_vm2 = vcmp.le.f32.partialorder %v1425_v49, 0.7853982  ;;  %v1541_v3 = vshll.u32 %v1540_v18, 23  ;;  %v2413_v5 = vshrl.u32 %v2409_v16, 16 }
 0x10c   : > { %v2419_v27 = vadd.s32 %v2417_v22, %v2411_v1  ;;  %vm2420_vm3 = vc.u32 %v2418_v36, %v2414_v58  ;;  %v627_v38 = vadd.f32 -0.4999988, %v626_v37  ;;  %v634_v62 = vadd.f32 -0.16666654, %v633_v40 }
 0x10d   : > { %v2421_v44 = vsel %vm2420_vm3, 1, %v4970_v30  ;;  %v2436_v48 = vshll.u32 %v5446_v60, 16  ;;  %vm642_vm4 = vcmp.eq.s32.totalorder %v5392_v25, 0  ;;  %v1542_v32 = vor.u32 4788187, %v1541_v3 }
 0x10e   : > { %v2423_v50 = vadd.s32 %v2421_v44, %v2419_v27  ;;  %vm2438_vm5 = vc.u32 %v2430_v8, %v2434_v21  ;;  %v2440_v51 = vadd.s32 %v2434_v21, %v2430_v8  ;;  %v628_v49 = vmul.f32 %v627_v38, %v623_v10 }
 0x10f   : > { %v635_v4 = vmul.f32 %v634_v62, %v623_v10  ;;  %vm641_vm6 = vcmp.lt.s32.totalorder %v5392_v25, 2  ;;  %v1545_v53 = vcvt.s32.f32 %v1538_v47  ;;  %v2439_v52 = vsel %vm2438_vm5, 1, %v4970_v30 }
 0x110   : > { %vm638_vm7 = vweird.f32 %v5187_v45  ;;  %v1543_v56 = vand.u32 2147483647, %v1542_v32  ;;  %v2424_v54 = vadd.s32 %v2423_v50, %v2413_v5  ;;  %v2441_v16 = vadd.s32 %v2439_v52, %v2433_v34 }
 0x111   : > { %vm2442_vm8 = vc.u32 %v2440_v51, %v2436_v48  ;;  %v629_v14 = vadd.f32 1.0, %v628_v49  ;;  %v636_v20 = vadd.f32 1.0, %v635_v4  ;;  %v2435_v1 = vshrl.u32 %v5444_v19, 16 }
 0x112   : > { %v2443_v8 = vsel %vm2442_vm8, 1, %v4970_v30  ;;  %v1546_v59 = vmul.f32 %v1545_v53, %v1543_v56  ;;  %v2425_v10 = vadd.s32 %v2424_v54, %v2415_v33  ;;  %v3440_v6 = vand.u32 2147483647, %v5425_v39 }
 0x113   : > { %v2445_v12 = vadd.s32 %v2443_v8, %v2441_v16  ;;  %v637_v58 = vmul.f32 %v636_v20, %v5436_v28  ;;  %vm645_vm9 = vcmp.eq.s32.totalorder %v5392_v25, 2  ;;  %v646_v0 = vxor.u32 2147483648, %v629_v14  ;;  %v420_v25 = vpop.f32.mrf.mxu0 }
 0x114   : > { %v3443_v23 = vand.u32 2139095040, %v5425_v39  ;;  %v1547_v34 = vxor.u32 2147483648, %v1546_v59  ;;  %v2437_v17 = vshrl.u32 %v5446_v60, 16  ;;  %v2444_v35 = vadd.s32 %v2440_v51, %v2436_v48 }
 0x115   : > { %v2446_v19 = vadd.s32 %v2445_v12, %v2435_v1  ;;  %v643_v63 = vxor.u32 2147483648, %v637_v58  ;;  %v1552_v33 = vsel %vm5453_vm2, 0, %v5431_v55  ;;  %v2394_v28 = vsel %vm2388_vm14, %v5422_v29, %v5440_v31 }
 0x116   : > { %v3444_v26 = vshrl.u32 %v3443_v23, 23  ;;  %v1548_v18 = vsel %vm1427_vm10, %v1547_v34, %v1546_v59  ;;  %vm2450_vm11 = vc.u32 %v2425_v10, %v2444_v35  ;;  %v3447_v60 = vand.u32 8388607, %v3440_v6 }
 0x117   : > { %v2447_v36 = vadd.s32 %v2446_v19, %v2437_v17  ;;  %v644_v21 = vsel %vm642_vm4, %v629_v14, %v643_v63  ;;  %v647_v55 = vsel %vm645_vm9, %v646_v0, %v637_v58  ;;  %v1551_v41 = vsel %vm5453_vm2, %v5190_v46, %v1548_v18 }
 0x118   : > { %v4763_v29 = vadd.s32 4294967169, %v3444_v26  ;;  %v648_v31 = vsel %vm641_vm6, %v644_v21, %v647_v55  ;;  %v1553_v37 = vmul.f32 %v1551_v41, %v1551_v41  ;;  %v1569_v40 = vadd.s32 3, %v1552_v33 }
 0x119   : > { %v2451_v47 = vadd.s32 1, %v2447_v36  ;;  %v649_v22 = vsel %vm638_vm7, nan, %v648_v31  ;;  %v2448_v3 = vmul.u32 %v5374_v43, %v2394_v28  ;;  %v3448_v5 = vor.u32 8388608, %v3447_v60 }
 0x11a   : > { %v3450_v27 = vadd.s32 1, %v4763_v29  ;;  %4525 = vst [vmem:[%s5494_s4] sm:$0xff] %v649_v22  ;;  %v1554_v61 = vmul.f32 -0.001358992, %v1553_v37  ;;  %v1561_v38 = vmul.f32 -0.00019511016, %v1553_v37  ;;  %v1570_v50 = vand.u32 3, %v1569_v40 }
 0x11b   : > { %v2452_v62 = vsel %vm2450_vm11, %v2451_v47, %v2447_v36  ;;  %v5498_v43 = vshll.u32 %v3448_v5, 8  ;;  %v5501_v4 = vadd.f32 %v5184_v42, %v420_v25  ;;  %vm2357_vm12 = vcmp.lt.s32.totalorder %v5203_v2, 0 }
 0x11c   : > { %v2453_v44 = vadd.s32 %v2452_v62, %v2448_v3  ;;  %vm3451_vm10 = vcmp.gt.s32.totalorder %v3450_v27, 0  ;;  %v1555_v48 = vadd.f32 0.041655596, %v1554_v61  ;;  %v1562_v32 = vadd.f32 0.008332121, %v1561_v38 }
 0x11d   : > { %v3452_v45 = vsel %vm3451_vm10, %v3450_v27, 0  ;;  %vm5508_vm13 = vcmp.le.f32.partialorder %v2355_v57, 0.7853982  ;;  %v5512_v1 = vadd.s32 %v2444_v35, %v2425_v10  ;;  %v650_v42 = vand.u32 2147483647, %v5501_v4 }
 0x11e   : > { %v2454_v51 = vadd.s32 536870912, %v2453_v44  ;;  %v3454_v49 = vand.u32 31, %v3452_v45  ;;  %v1556_v53 = vmul.f32 %v1555_v48, %v1553_v37  ;;  %v1563_v52 = vmul.f32 %v1562_v32, %v1553_v37 }
 0x11f   : > { %vm1572_vm14 = vcmp.eq.s32.totalorder %v1570_v50, 0  ;;  %vm1575_vm15 = vcmp.eq.s32.totalorder %v1570_v50, 2  ;;  %v5515_v59 = vshrl.u32 %v3452_v45, 5  ;;  %v5518_v12 = vand.u32 65535, %v5498_v43 }
 0x120   : > { %v2455_v56 = vshrl.u32 %v2454_v51, 30  ;;  %v5504_v54 = vsub.s32 32, %v3454_v49  ;;  %v1557_v16 = vadd.f32 -0.4999988, %v1556_v53  ;;  %v1564_v14 = vadd.f32 -0.16666654, %v1563_v52 }
 0x121   : > { %v653_v58 = vand.u32 2139095040, %v5501_v4  ;;  %vm1571_vm0 = vcmp.lt.s32.totalorder %v1570_v50, 2  ;;  %v5522_v34 = vshrl.u32 %v5498_v43, 16  ;;  %vm1568_vm1 = vweird.f32 %v5190_v46 }
 0x122   : > { %v2456_v8 = vshll.u32 %v2455_v56, 30  ;;  %v1558_v0 = vmul.f32 %v1557_v16, %v1553_v37  ;;  %v1565_v23 = vmul.f32 %v1564_v14, %v1553_v37  ;;  %v2479_v57 = vsub.s32 4, %v2455_v56 }
 0x123   : > { %v3457_v17 = vshll.u32 %v4964_v7, %v3454_v49  ;;  %v3458_v35 = vshrl.u32 %v4965_v9, %v5504_v54  ;;  %v3461_v19 = vshrl.u32 %v4966_v11, %v5504_v54  ;;  %v3460_v28 = vshll.u32 %v4965_v9, %v3454_v49 }
 0x124   : > { %v2457_v10 = vsub.s32 %v2453_v44, %v2456_v8  ;;  %v1559_v63 = vadd.f32 1.0, %v1558_v0  ;;  %v1566_v33 = vadd.f32 1.0, %v1565_v23  ;;  %v3467_v26 = vshrl.u32 %v4968_v15, %v5504_v54 }
 0x125   : > { %v3463_v36 = vshll.u32 %v4966_v11, %v3454_v49  ;;  %v3464_v60 = vshrl.u32 %v4967_v13, %v5504_v54  ;;  %v2480_v29 = vsel %vm2357_vm12, %v2479_v57, %v2455_v56  ;;  %v3466_v31 = vshll.u32 %v4967_v13, %v3454_v49 }
 0x126   : > { %vm2458_vm2 = vcmp.lt.s32.totalorder %v2457_v10, 0  ;;  %v2459_v18 = vsub.s32 0, %v2457_v10  ;;  %v1567_v21 = vmul.f32 %v1566_v33, %v1551_v41  ;;  %v1576_v55 = vxor.u32 2147483648, %v1559_v63 }
 0x127   : > { %v3459_v40 = vor.u32 %v3458_v35, %v3457_v17  ;;  %v3462_v47 = vor.u32 %v3461_v19, %v3460_v28  ;;  %v3470_v22 = vshrl.u32 %v4969_v24, %v5504_v54  ;;  %v3468_v27 = vor.u32 %v3467_v26, %v3466_v31 }
 0x128   : > { %v2460_v37 = vsel %vm2458_vm2, %v2459_v18, %v2457_v10  ;;  %v1573_v3 = vxor.u32 2147483648, %v1567_v21  ;;  %v654_v61 = vshrl.u32 %v653_v58, 23  ;;  %v2482_v38 = vsel %vm5508_vm13, 0, %v2480_v29 }
 0x129   : > { %v2461_v5 = vclz %v2460_v37  ;;  %v3465_v41 = vor.u32 %v3464_v60, %v3463_v36  ;;  %v3469_v62 = vshll.u32 %v4968_v15, %v3454_v49  ;;  %v5546_v25 = vand.u32 8388607, %v650_v42 }
 0x12a   : > { %v1574_v44 = vsel %vm1572_vm14, %v1559_v63, %v1573_v3  ;;  %v1577_v48 = vsel %vm1575_vm15, %v1576_v55, %v1567_v21  ;;  %vm3472_vm3 = vcmp.lt.s32.totalorder %v5515_v59, 1  ;;  %vm3475_vm4 = vcmp.lt.s32.totalorder %v5515_v59, 4 }
 0x12b   : > { %v4743_v32 = vadd.s32 4294967294, %v2461_v5  ;;  %v1578_v45 = vsel %vm1571_vm0, %v1574_v44, %v1577_v48  ;;  %v3471_v51 = vor.u32 %v3470_v22, %v3469_v62  ;;  %v3480_v53 = vsel %vm3472_vm3, %v3459_v40, %v3462_v47 }
 0x12c   : > { %v1579_v49 = vsel %vm1568_vm1, nan, %v1578_v45  ;;  %vm3474_vm6 = vcmp.lt.s32.totalorder %v5515_v59, 3  ;;  %v3481_v52 = vsel %vm3475_vm4, %v3468_v27, 920167782  ;;  %v2499_v16 = vadd.s32 3, %v2482_v38 }
 0x12d   : > { %vm4744_vm5 = vcmp.lt.s32.totalorder %v4743_v32, 0  ;;  %4531 = vst [vmem:[%s5494_s4 + $0x30] sm:$0xff] %v1579_v49  ;;  %vm3473_vm7 = vcmp.lt.s32.totalorder %v5515_v59, 2  ;;  %v3482_v50 = vsel %vm3474_vm6, %v3465_v41, %v3481_v52  ;;  %v3484_v58 = vsel %vm3472_vm3, %v3462_v47, %v3465_v41 }
 0x12e   : > { %v2464_v56 = vsel %vm4744_vm5, 0, %v4743_v32  ;;  %v3483_v46 = vsel %vm3473_vm7, %v3480_v53, %v3482_v50  ;;  %v3456_v0 = vshrl.u32 %v4964_v7, %v5504_v54  ;;  %v3485_v23 = vsel %vm3475_vm4, %v3471_v51, 1326507024 }
 0x12f   : > { %v2465_v14 = vsub.s32 32, %v2464_v56  ;;  %v2469_v8 = vsub.s32 4294967266, %v2464_v56  ;;  %v3513_v57 = vand.u32 65535, %v3483_v46  ;;  %v3514_v17 = vshrl.u32 %v3483_v46, 16 }
 0x130   : > { %v2466_v35 = vshll.u32 %v2457_v10, %v2464_v56  ;;  %v3486_v33 = vsel %vm3474_vm6, %v3468_v27, %v3485_v23  ;;  %v5575_v28 = vand.u32 3, %v2499_v16  ;;  %v3477_v26 = vsel %vm3475_vm4, %v3465_v41, 2102212464 }
 0x131   : > { %v2467_v19 = vshrl.u32 %v5512_v1, %v2465_v14  ;;  %v2470_v63 = vadd.s32 127, %v2469_v8  ;;  %v3487_v54 = vsel %vm3473_vm7, %v3484_v58, %v3486_v33  ;;  %v3516_v18 = vmul.u32 %v3514_v17, %v5518_v12 }
 0x132   : > { %v3491_v21 = vand.u32 65535, %v3487_v54  ;;  %v3492_v10 = vshrl.u32 %v3487_v54, 16  ;;  %v3476_v1 = vsel %vm3472_vm3, %v3456_v0, %v3459_v40  ;;  %v3515_v55 = vmul.u32 %v3513_v57, %v5518_v12 }
 0x133   : > { %v2468_v36 = vor.u32 %v2467_v19, %v2466_v35  ;;  %v2471_v60 = vshll.u32 %v2470_v63, 23  ;;  %v3517_v29 = vmul.u32 %v3513_v57, %v5522_v34  ;;  %v3519_v31 = vshll.u32 %v3516_v18, 16 }
 0x134   : > { %v3478_v22 = vsel %vm3474_vm6, %v3462_v47, %v3477_v26  ;;  %v3494_v3 = vmul.u32 %v3492_v10, %v5518_v12  ;;  %v4709_v5 = vadd.s32 4294967169, %v654_v61  ;;  %v3495_v38 = vmul.u32 %v3491_v21, %v5522_v34 }
 0x135   : > { %v2472_v37 = vor.u32 4788187, %v2471_v60  ;;  %v2475_v27 = vcvt.s32.f32 %v2468_v36  ;;  %v3518_v41 = vmul.u32 %v3514_v17, %v5522_v34  ;;  %vm3523_vm8 = vc.u32 %v3515_v55, %v3519_v31 }
 0x136   : > { %v3493_v40 = vmul.u32 %v3491_v21, %v5518_v12  ;;  %v3497_v44 = vshll.u32 %v3494_v3, 16  ;;  %v3524_v48 = vsel %vm3523_vm8, 1, %v4970_v30  ;;  %v3496_v32 = vmul.u32 %v3492_v10, %v5522_v34 }
 0x137   : > { %v2473_v62 = vand.u32 2147483647, %v2472_v37  ;;  %v3521_v45 = vshll.u32 %v3517_v29, 16  ;;  %v3525_v51 = vadd.s32 %v3519_v31, %v3515_v55  ;;  %v3526_v47 = vadd.s32 %v3524_v48, %v3518_v41 }
 0x138   : > { %v3499_v49 = vshll.u32 %v3495_v38, 16  ;;  %vm3501_vm9 = vc.u32 %v3493_v40, %v3497_v44  ;;  %v3503_v61 = vadd.s32 %v3497_v44, %v3493_v40  ;;  %v3479_v52 = vsel %vm3473_vm7, %v3476_v1, %v3478_v22 }
 0x139   : > { %v2476_v53 = vmul.f32 %v2475_v27, %v2473_v62  ;;  %v3502_v56 = vsel %vm3501_vm9, 1, %v4970_v30  ;;  %vm3527_vm11 = vc.u32 %v3525_v51, %v3521_v45  ;;  %v660_v16 = vadd.s32 1, %v4709_v5 }
 0x13a   : > { %v3504_v50 = vadd.s32 %v3502_v56, %v3496_v32  ;;  %vm3505_vm10 = vc.u32 %v3503_v61, %v3499_v49  ;;  %v3528_v14 = vsel %vm3527_vm11, 1, %v4970_v30  ;;  %v3520_v8 = vshrl.u32 %v3516_v18, 16 }
 0x13b   : > { %v2477_v12 = vxor.u32 2147483648, %v2476_v53  ;;  %v3506_v34 = vsel %vm3505_vm10, 1, %v4970_v30  ;;  %v3530_v46 = vadd.s32 %v3528_v14, %v3526_v47  ;;  %vm661_vm14 = vcmp.gt.s32.totalorder %v660_v16, 0 }
 0x13c   : > { %v3498_v0 = vshrl.u32 %v3494_v3, 16  ;;  %v3508_v59 = vadd.s32 %v3506_v34, %v3504_v50  ;;  %v662_v23 = vsel %vm661_vm14, %v660_v16, 0  ;;  %v3522_v17 = vshrl.u32 %v3517_v29, 16 }
 0x13d   : > { %v2478_v58 = vsel %vm2357_vm12, %v2477_v12, %v2476_v53  ;;  %v3531_v35 = vadd.s32 %v3530_v46, %v3520_v8  ;;  %v664_v19 = vand.u32 31, %v662_v23  ;;  %v3500_v33 = vshrl.u32 %v3495_v38, 16 }
 0x13e   : > { %v2481_v57 = vsel %vm5508_vm13, %v5203_v2, %v2478_v58  ;;  %v3509_v26 = vadd.s32 %v3508_v59, %v3498_v0  ;;  %v3533_v54 = vmul.u32 %v5498_v43, %v3479_v52  ;;  %v658_v36 = vor.u32 8388608, %v5546_v25 }
 0x13f   : > { %v2483_v63 = vmul.f32 %v2481_v57, %v2481_v57  ;;  %v3532_v18 = vadd.s32 %v3531_v35, %v3522_v17  ;;  %v5606_v60 = vsub.s32 32, %v664_v19  ;;  %v667_v21 = vshll.u32 %v4964_v7, %v664_v19 }
 0x140   : > { %v5609_v55 = vadd.s32 %v3509_v26, %v3500_v33  ;;  %v5611_v20 = vadd.s32 %v3525_v51, %v3521_v45  ;;  %v670_v37 = vshll.u32 %v4965_v9, %v664_v19  ;;  %v673_v3 = vshll.u32 %v4966_v11, %v664_v19 }
 0x141   : > { %v2484_v10 = vmul.f32 -0.001358992, %v2483_v63  ;;  %v2491_v1 = vmul.f32 -0.00019511016, %v2483_v63  ;;  %v3536_v29 = vadd.s32 1, %v3532_v18  ;;  %v668_v31 = vshrl.u32 %v4965_v9, %v5606_v60 }
 0x142   : > { %v671_v43 = vshrl.u32 %v4966_v11, %v5606_v60  ;;  %vm3535_vm12 = vc.u32 %v5609_v55, %v5611_v20  ;;  %v5621_v27 = vshrl.u32 %v662_v23, 5  ;;  %v674_v41 = vshrl.u32 %v4967_v13, %v5606_v60 }
 0x143   : > { %v2485_v25 = vadd.f32 0.041655596, %v2484_v10  ;;  %v2492_v22 = vadd.f32 0.008332121, %v2491_v1  ;;  %v3537_v5 = vsel %vm3535_vm12, %v3536_v29, %v3532_v18  ;;  %v5623_v38 = vor.u32 %v668_v31, %v667_v21 }
 0x144   : > { %v3538_v44 = vadd.s32 %v3537_v5, %v3533_v54  ;;  %v676_v48 = vshll.u32 %v4967_v13, %v664_v19  ;;  %v5628_v32 = vor.u32 %v671_v43, %v670_v37  ;;  %v677_v45 = vshrl.u32 %v4968_v15, %v5606_v60 }
 0x145   : > { %v2486_v62 = vmul.f32 %v2485_v25, %v2483_v63  ;;  %v2493_v40 = vmul.f32 %v2492_v22, %v2483_v63  ;;  %v679_v51 = vshll.u32 %v4968_v15, %v664_v19  ;;  %v680_v47 = vshrl.u32 %v4969_v24, %v5606_v60 }
 0x146   : > { %v3539_v61 = vadd.s32 536870912, %v3538_v44  ;;  %v5635_v52 = vor.u32 %v674_v41, %v673_v3  ;;  %v678_v56 = vor.u32 %v677_v45, %v676_v48  ;;  %vm682_vm13 = vcmp.lt.s32.totalorder %v5621_v27, 1 }
 0x147   : > { %v2487_v53 = vadd.f32 -0.4999988, %v2486_v62  ;;  %v2494_v49 = vadd.f32 -0.16666654, %v2493_v40  ;;  %v681_v16 = vor.u32 %v680_v47, %v679_v51  ;;  %vm684_vm15 = vcmp.lt.s32.totalorder %v5621_v27, 3 }
 0x148   : > { %v5639_v14 = vshrl.u32 %v3539_v61, 30  ;;  %vm685_vm0 = vcmp.lt.s32.totalorder %v5621_v27, 4  ;;  %vm2498_vm1 = vweird.f32 %v5203_v2  ;;  %v5645_v8 = vshll.u32 %v658_v36, 8 }
 0x149   : > { %v2488_v12 = vmul.f32 %v2487_v53, %v2483_v63  ;;  %v2495_v50 = vmul.f32 %v2494_v49, %v2483_v63  ;;  %v691_v34 = vsel %vm685_vm0, %v678_v56, 920167782  ;;  %vm2501_vm2 = vcmp.lt.s32.totalorder %v5575_v28, 2 }
 0x14a   : > { %v3541_v0 = vshll.u32 %v5639_v14, 30  ;;  %vm683_vm3 = vcmp.lt.s32.totalorder %v5621_v27, 2  ;;  %v690_v59 = vsel %vm682_vm13, %v5623_v38, %v5628_v32  ;;  %v692_v23 = vsel %vm684_vm15, %v5635_v52, %v691_v34 }
 0x14b   : > { %v2489_v46 = vadd.f32 1.0, %v2488_v12  ;;  %v2496_v58 = vadd.f32 1.0, %v2495_v50  ;;  %v695_v17 = vsel %vm685_vm0, %v681_v16, 1326507024  ;;  %v694_v33 = vsel %vm682_vm13, %v5628_v32, %v5635_v52 }
 0x14c   : > { %v3542_v63 = vsub.s32 %v3538_v44, %v3541_v0  ;;  %vm2505_vm4 = vcmp.eq.s32.totalorder %v5575_v28, 2  ;;  %v696_v26 = vsel %vm684_vm15, %v678_v56, %v695_v17  ;;  %v699_v54 = vand.u32 65535, %v5645_v8 }
 0x14d   : > { %v2497_v35 = vmul.f32 %v2496_v58, %v2481_v57  ;;  %v2506_v19 = vxor.u32 2147483648, %v2489_v46  ;;  %v700_v18 = vshrl.u32 %v5645_v8, 16  ;;  %v693_v57 = vsel %vm683_vm3, %v690_v59, %v692_v23 }
 0x14e   : > { %vm3543_vm5 = vcmp.lt.s32.totalorder %v3542_v63, 0  ;;  %v3544_v21 = vsub.s32 0, %v3542_v63  ;;  %vm2502_vm6 = vcmp.eq.s32.totalorder %v5575_v28, 0  ;;  %v666_v1 = vshrl.u32 %v4964_v7, %v5606_v60 }
 0x14f   : > { %v2503_v36 = vxor.u32 2147483648, %v2497_v35  ;;  %v2507_v10 = vsel %vm2505_vm4, %v2506_v19, %v2497_v35  ;;  %v697_v29 = vsel %vm683_vm3, %v694_v33, %v696_v26  ;;  %v723_v5 = vand.u32 65535, %v693_v57  ;;  %v438_v33 = vpop.f32.mrf.mxu1 }
 0x150   : > { %v3545_v37 = vsel %vm3543_vm5, %v3544_v21, %v3542_v63  ;;  %v701_v43 = vand.u32 65535, %v697_v29  ;;  %v702_v25 = vshrl.u32 %v697_v29, 16  ;;  %v724_v41 = vshrl.u32 %v693_v57, 16 }
 0x151   : > { %v2504_v31 = vsel %vm2502_vm6, %v2489_v46, %v2503_v36  ;;  %v3546_v3 = vclz %v3545_v37  ;;  %v3534_v45 = vadd.s32 %v5611_v20, %v5609_v55  ;;  %v686_v51 = vsel %vm682_vm13, %v666_v1, %v5623_v38 }
 0x152   : > { %v2508_v22 = vsel %vm2501_vm2, %v2504_v31, %v2507_v10  ;;  %v703_v40 = vmul.u32 %v701_v43, %v699_v54  ;;  %v704_v44 = vmul.u32 %v702_v25, %v699_v54  ;;  %v705_v48 = vmul.u32 %v701_v43, %v700_v18  ;;  %v5695_v31 = vld [vmem:[%s5072_s18] ss:$0 sm:$0xff]  ;;  %v456_v43 = vpop.f32.mrf.mxu2 }
 0x153   : > { %v2509_v62 = vsel %vm2498_vm1, nan, %v2508_v22  ;;  %v4764_v60 = vadd.s32 4294967294, %v3546_v3  ;;  %v725_v53 = vmul.u32 %v723_v5, %v699_v54  ;;  %v726_v49 = vmul.u32 %v724_v41, %v699_v54 }
 0x154   : > { %4537 = vst [vmem:[%s5494_s4 + $0x60] sm:$0xff] %v2509_v62  ;;  %v707_v28 = vshll.u32 %v704_v44, 16  ;;  %v709_v47 = vshll.u32 %v705_v48, 16  ;;  %v727_v61 = vmul.u32 %v723_v5, %v700_v18  ;;  %v706_v56 = vmul.u32 %v702_v25, %v700_v18 }
 0x155   : > { %vm4765_vm7 = vcmp.lt.s32.totalorder %v4764_v60, 0  ;;  %vm3442_vm9 = vcmp.lt.s32.totalorder %v5425_v39, 0  ;;  %v708_v34 = vshrl.u32 %v704_v44, 16  ;;  %v729_v38 = vshll.u32 %v726_v49, 16 }
 0x156   : > { %v3549_v2 = vsel %vm4765_vm7, 0, %v4764_v60  ;;  %vm711_vm8 = vc.u32 %v703_v40, %v707_v28  ;;  %v713_v16 = vadd.s32 %v707_v28, %v703_v40  ;;  %v731_v23 = vshll.u32 %v727_v61, 16 }
 0x157   : > { %v3550_v12 = vsub.s32 32, %v3549_v2  ;;  %v3554_v50 = vsub.s32 4294967266, %v3549_v2  ;;  %v712_v55 = vsel %vm711_vm8, 1, %v4970_v30  ;;  %v3551_v20 = vshll.u32 %v3542_v63, %v3549_v2 }
 0x158   : > { %v714_v46 = vadd.s32 %v712_v55, %v706_v56  ;;  %vm715_vm11 = vc.u32 %v713_v16, %v709_v47  ;;  %v728_v35 = vmul.u32 %v724_v41, %v700_v18  ;;  %vm733_vm10 = vc.u32 %v725_v53, %v729_v38 }
 0x159   : > { %v3552_v58 = vshrl.u32 %v3534_v45, %v3550_v12  ;;  %v3555_v0 = vadd.s32 127, %v3554_v50  ;;  %v716_v59 = vsel %vm715_vm11, 1, %v4970_v30  ;;  %v735_v19 = vadd.s32 %v729_v38, %v725_v53 }
 0x15a   : > { %v718_v17 = vadd.s32 %v716_v59, %v714_v46  ;;  %v687_v63 = vsel %vm685_vm0, %v5635_v52, 2102212464  ;;  %v734_v36 = vsel %vm733_vm10, 1, %v4970_v30  ;;  %v3564_v21 = vsub.s32 4, %v5639_v14 }
 0x15b   : > { %v3553_v26 = vor.u32 %v3552_v58, %v3551_v20  ;;  %v3556_v54 = vshll.u32 %v3555_v0, 23  ;;  %v736_v10 = vadd.s32 %v734_v36, %v728_v35  ;;  %vm737_vm14 = vc.u32 %v735_v19, %v731_v23 }
 0x15c   : > { %v719_v57 = vadd.s32 %v718_v17, %v708_v34  ;;  %v710_v29 = vshrl.u32 %v705_v48, 16  ;;  %v738_v18 = vsel %vm737_vm14, 1, %v4970_v30  ;;  %v5698_v37 = vadd.f32 %v5695_v31, %v438_v33 }
 0x15d   : > { %v3557_v1 = vor.u32 4788187, %v3556_v54  ;;  %v3560_v25 = vcvt.s32.f32 %v3553_v26  ;;  %v688_v52 = vsel %vm684_vm15, %v5628_v32, %v687_v63  ;;  %v730_v22 = vshrl.u32 %v726_v49, 16 }
 0x15e   : > { %v740_v3 = vadd.s32 %v738_v18, %v736_v10  ;;  %v720_v41 = vadd.s32 %v719_v57, %v710_v29  ;;  %v1580_v62 = vand.u32 2147483647, %v5698_v37  ;;  %v1583_v40 = vand.u32 2139095040, %v5698_v37 }
 0x15f   : > { %v3558_v5 = vand.u32 2147483647, %v3557_v1  ;;  %v3565_v44 = vsel %vm3442_vm9, %v3564_v21, %v5639_v14  ;;  %v732_v48 = vshrl.u32 %v727_v61, 16  ;;  %v5709_v45 = vadd.f32 %v5695_v31, %v456_v43 }
 0x160   : > { %v741_v60 = vadd.s32 %v740_v3, %v730_v22  ;;  %v739_v47 = vadd.s32 %v735_v19, %v731_v23  ;;  %v1584_v32 = vshrl.u32 %v1583_v40, 23  ;;  %v1587_v53 = vand.u32 8388607, %v1580_v62 }
 0x161   : > { %v3561_v28 = vmul.f32 %v3560_v25, %v3558_v5  ;;  %v689_v49 = vsel %vm683_vm3, %v686_v51, %v688_v52  ;;  %vm3441_vm12 = vcmp.le.f32.partialorder %v3440_v6, 0.7853982  ;;  %v2513_v12 = vand.u32 2139095040, %v5709_v45 }
 0x162   : > { %v742_v2 = vadd.s32 %v741_v60, %v732_v48  ;;  %vm745_vm13 = vc.u32 %v720_v41, %v739_v47  ;;  %v4727_v14 = vadd.s32 4294967169, %v1584_v32  ;;  %v3567_v61 = vsel %vm3441_vm12, 0, %v3565_v44 }
 0x163   : > { %v3562_v56 = vxor.u32 2147483648, %v3561_v28  ;;  %v743_v34 = vmul.u32 %v5645_v8, %v689_v49  ;;  %v1588_v55 = vor.u32 8388608, %v1587_v53  ;;  %v3584_v38 = vadd.s32 3, %v3567_v61 }
 0x164   : > { %v746_v16 = vadd.s32 1, %v742_v2  ;;  %v1590_v20 = vadd.s32 1, %v4727_v14  ;;  %v2510_v0 = vand.u32 2147483647, %v5709_v45  ;;  %v2514_v59 = vshrl.u32 %v2513_v12, 23 }
 0x165   : > { %v3563_v50 = vsel %vm3442_vm9, %v3562_v56, %v3561_v28  ;;  %v5723_v19 = vshll.u32 %v1588_v55, 8  ;;  %vm652_vm0 = vcmp.lt.s32.totalorder %v5501_v4, 0  ;;  %v5726_v54 = vand.u32 3, %v3584_v38 }
 0x166   : > { %v3566_v27 = vsel %vm3441_vm12, %v5425_v39, %v3563_v50  ;;  %v747_v51 = vsel %vm745_vm13, %v746_v16, %v742_v2  ;;  %vm1591_vm15 = vcmp.gt.s32.totalorder %v1590_v20, 0  ;;  %v5728_v36 = vadd.s32 %v739_v47, %v720_v41 }
 0x167   : > { %v3568_v46 = vmul.f32 %v3566_v27, %v3566_v27  ;;  %v748_v6 = vadd.s32 %v747_v51, %v743_v34  ;;  %v1592_v58 = vsel %vm1591_vm15, %v1590_v20, 0  ;;  %v4745_v57 = vadd.s32 4294967169, %v2514_v59 }
 0x168   : > { %v1594_v8 = vand.u32 31, %v1592_v58  ;;  %v5732_v10 = vand.u32 8388607, %v2510_v0  ;;  %v5735_v43 = vand.u32 65535, %v5723_v19  ;;  %vm5739_vm1 = vcmp.le.f32.partialorder %v650_v42, 0.7853982 }
 0x169   : > { %v3569_v23 = vmul.f32 -0.001358992, %v3568_v46  ;;  %v3576_v17 = vmul.f32 -0.00019511016, %v3568_v46  ;;  %v749_v35 = vadd.s32 536870912, %v748_v6  ;;  %vm3587_vm2 = vcmp.eq.s32.totalorder %v5726_v54, 0 }
 0x16a   : > { %v1595_v21 = vsub.s32 32, %v1594_v8  ;;  %v1597_v22 = vshll.u32 %v4964_v7, %v1594_v8  ;;  %v1600_v5 = vshll.u32 %v4965_v9, %v1594_v8  ;;  %vm3590_vm3 = vcmp.eq.s32.totalorder %v5726_v54, 2 }
 0x16b   : > { %v3570_v33 = vadd.f32 0.041655596, %v3569_v23  ;;  %v3577_v26 = vadd.f32 0.008332121, %v3576_v17  ;;  %v750_v63 = vshrl.u32 %v749_v35, 30  ;;  %v5751_v42 = vshrl.u32 %v1592_v58, 5 }
 0x16c   : > { %v1598_v3 = vshrl.u32 %v4965_v9, %v1595_v21  ;;  %v1601_v48 = vshrl.u32 %v4966_v11, %v1595_v21  ;;  %v1603_v60 = vshll.u32 %v4966_v11, %v1594_v8  ;;  %v1604_v28 = vshrl.u32 %v4967_v13, %v1595_v21 }
 0x16d   : > { %v3571_v1 = vmul.f32 %v3570_v33, %v3568_v46  ;;  %v3578_v29 = vmul.f32 %v3577_v26, %v3568_v46  ;;  %v751_v18 = vshll.u32 %v750_v63, 30  ;;  %v774_v52 = vsub.s32 4, %v750_v63 }
 0x16e   : > { %v5756_v47 = vshrl.u32 %v5723_v19, 16  ;;  %vm3586_vm4 = vcmp.lt.s32.totalorder %v5726_v54, 2  ;;  %vm3583_vm6 = vweird.f32 %v5425_v39  ;;  %v1599_v56 = vor.u32 %v1598_v3, %v1597_v22 }
 0x16f   : > { %v3572_v41 = vadd.f32 -0.4999988, %v3571_v1  ;;  %v3579_v40 = vadd.f32 -0.16666654, %v3578_v29  ;;  %v5746_v44 = vsub.s32 %v748_v6, %v751_v18  ;;  %v775_v2 = vsel %vm652_vm0, %v774_v52, %v750_v63 }
 0x170   : > { %v1606_v14 = vshll.u32 %v4967_v13, %v1594_v8  ;;  %v1607_v61 = vshrl.u32 %v4968_v15, %v1595_v21  ;;  %v1602_v34 = vor.u32 %v1601_v48, %v1600_v5  ;;  %v1609_v51 = vshll.u32 %v4968_v15, %v1594_v8 }
 0x171   : > { %v3573_v32 = vmul.f32 %v3572_v41, %v3568_v46  ;;  %v3580_v53 = vmul.f32 %v3579_v40, %v3568_v46  ;;  %vm753_vm5 = vcmp.lt.s32.totalorder %v5746_v44, 0  ;;  %v754_v49 = vsub.s32 0, %v5746_v44 }
 0x172   : > { %v1608_v20 = vor.u32 %v1607_v61, %v1606_v14  ;;  %v1610_v46 = vshrl.u32 %v4969_v24, %v1595_v21  ;;  %v1605_v58 = vor.u32 %v1604_v28, %v1603_v60  ;;  %vm1612_vm7 = vcmp.lt.s32.totalorder %v5751_v42, 1 }
 0x173   : > { %v3574_v16 = vadd.f32 1.0, %v3573_v32  ;;  %v3581_v12 = vadd.f32 1.0, %v3580_v53  ;;  %v755_v50 = vsel %vm753_vm5, %v754_v49, %v5746_v44  ;;  %v1596_v23 = vshrl.u32 %v4964_v7, %v1595_v21 }
 0x174   : > { %v756_v55 = vclz %v755_v50  ;;  %vm1614_vm8 = vcmp.lt.s32.totalorder %v5751_v42, 3  ;;  %v2520_v17 = vadd.s32 1, %v4745_v57  ;;  %v777_v33 = vsel %vm5739_vm1, 0, %v775_v2 }
 0x175   : > { %v3582_v38 = vmul.f32 %v3581_v12, %v3566_v27  ;;  %v3591_v6 = vxor.u32 2147483648, %v3574_v16  ;;  %vm1613_vm9 = vcmp.lt.s32.totalorder %v5751_v42, 2  ;;  %vm1615_vm11 = vcmp.lt.s32.totalorder %v5751_v42, 4 }
 0x176   : > { %v4710_v59 = vadd.s32 4294967294, %v756_v55  ;;  %v1611_v27 = vor.u32 %v1610_v46, %v1609_v51  ;;  %v1620_v8 = vsel %vm1612_vm7, %v1599_v56, %v1602_v34  ;;  %v1621_v26 = vsel %vm1615_vm11, %v1608_v20, 920167782 }
 0x177   : > { %v3588_v35 = vxor.u32 2147483648, %v3582_v38  ;;  %v3592_v21 = vsel %vm3590_vm3, %v3591_v6, %v3582_v38  ;;  %v1622_v1 = vsel %vm1614_vm8, %v1605_v58, %v1621_v26  ;;  %v1617_v22 = vsel %vm1615_vm11, %v1605_v58, 2102212464 }
 0x178   : > { %vm4711_vm10 = vcmp.lt.s32.totalorder %v4710_v59, 0  ;;  %v1623_v41 = vsel %vm1613_vm9, %v1620_v8, %v1622_v1  ;;  %v1624_v40 = vsel %vm1612_vm7, %v1602_v34, %v1605_v58  ;;  %v1625_v60 = vsel %vm1615_vm11, %v1611_v27, 1326507024 }
 0x179   : > { %v3589_v63 = vsel %vm3587_vm2, %v3574_v16, %v3588_v35  ;;  %v759_v57 = vsel %vm4711_vm10, 0, %v4710_v59  ;;  %v1653_v28 = vand.u32 65535, %v1623_v41  ;;  %v1616_v39 = vsel %vm1612_vm7, %v1596_v23, %v1599_v56 }
 0x17a   : > { %v3593_v29 = vsel %vm3586_vm4, %v3589_v63, %v3592_v21  ;;  %v760_v18 = vsub.s32 32, %v759_v57  ;;  %v764_v52 = vsub.s32 4294967266, %v759_v57  ;;  %v761_v5 = vshll.u32 %v5746_v44, %v759_v57 }
 0x17b   : > { %v3594_v3 = vsel %vm3583_vm6, nan, %v3593_v29  ;;  %v1618_v44 = vsel %vm1614_vm8, %v1602_v34, %v1617_v22  ;;  %v1626_v32 = vsel %vm1614_vm8, %v1608_v20, %v1625_v60  ;;  %v1654_v53 = vshrl.u32 %v1623_v41, 16 }
 0x17c   : > { %4544 = vst [vmem:[%s5494_s4 + $0x98] sm:$0xff] %v3594_v3  ;;  %v762_v54 = vshrl.u32 %v5728_v36, %v760_v18  ;;  %v765_v48 = vadd.s32 127, %v764_v52  ;;  %v1627_v36 = vsel %vm1613_vm9, %v1624_v40, %v1626_v32  ;;  %vm2521_vm14 = vcmp.gt.s32.totalorder %v2520_v17, 0 }
 0x17d   : > { %v1631_v14 = vand.u32 65535, %v1627_v36  ;;  %v1632_v61 = vshrl.u32 %v1627_v36, 16  ;;  %v1656_v16 = vmul.u32 %v1654_v53, %v5735_v43  ;;  %v1657_v12 = vmul.u32 %v1653_v28, %v5756_v47 }
 0x17e   : > { %v763_v49 = vor.u32 %v762_v54, %v761_v5  ;;  %v766_v2 = vshll.u32 %v765_v48, 23  ;;  %v5811_v50 = vadd.s32 3, %v777_v33  ;;  %v5815_v34 = vsel %vm1613_vm9, %v1616_v39, %v1618_v44 }
 0x17f   : > { %v1655_v55 = vmul.u32 %v1653_v28, %v5735_v43  ;;  %v1633_v20 = vmul.u32 %v1631_v14, %v5735_v43  ;;  %v1634_v51 = vmul.u32 %v1632_v61, %v5735_v43  ;;  %v1635_v46 = vmul.u32 %v1631_v14, %v5756_v47 }
 0x180   : > { %v767_v56 = vor.u32 4788187, %v766_v2  ;;  %v2522_v38 = vsel %vm2521_vm14, %v2520_v17, 0  ;;  %v770_v58 = vcvt.s32.f32 %v763_v49  ;;  %v1659_v59 = vshll.u32 %v1656_v16, 16 }
 0x181   : > { %v1661_v23 = vshll.u32 %v1657_v12, 16  ;;  %v1637_v35 = vshll.u32 %v1634_v51, 16  ;;  %v1639_v33 = vshll.u32 %v1635_v46, 16  ;;  %v1658_v27 = vmul.u32 %v1654_v53, %v5756_v47 }
 0x182   : > { %v768_v6 = vand.u32 2147483647, %v767_v56  ;;  %v1673_v42 = vmul.u32 %v5723_v19, %v5815_v34  ;;  %v1636_v26 = vmul.u32 %v1632_v61, %v5756_v47  ;;  %vm1663_vm12 = vc.u32 %v1655_v55, %v1659_v59 }
 0x183   : > { %v1665_v63 = vadd.s32 %v1659_v59, %v1655_v55  ;;  %vm1641_vm13 = vc.u32 %v1633_v20, %v1637_v35  ;;  %v1643_v43 = vadd.s32 %v1637_v35, %v1633_v20  ;;  %v1664_v17 = vsel %vm1663_vm12, 1, %v4970_v30 }
 0x184   : > { %v771_v8 = vmul.f32 %v770_v58, %v768_v6  ;;  %v2524_v21 = vand.u32 31, %v2522_v38  ;;  %v1642_v1 = vsel %vm1641_vm13, 1, %v4970_v30  ;;  %v1666_v29 = vadd.s32 %v1664_v17, %v1658_v27 }
 0x185   : > { %vm1667_vm15 = vc.u32 %v1665_v63, %v1661_v23  ;;  %v1644_v18 = vadd.s32 %v1642_v1, %v1636_v26  ;;  %vm1645_vm2 = vc.u32 %v1643_v43, %v1639_v33  ;;  %v1660_v52 = vshrl.u32 %v1656_v16, 16 }
 0x186   : > { %v772_v57 = vxor.u32 2147483648, %v771_v8  ;;  %v1668_v19 = vsel %vm1667_vm15, 1, %v4970_v30  ;;  %v1646_v22 = vsel %vm1645_vm2, 1, %v4970_v30  ;;  %v5831_v5 = vsub.s32 32, %v2524_v21 }
 0x187   : > { %v1670_v3 = vadd.s32 %v1668_v19, %v1666_v29  ;;  %v1638_v40 = vshrl.u32 %v1634_v51, 16  ;;  %v1648_v54 = vadd.s32 %v1646_v22, %v1644_v18  ;;  %v5836_v48 = vshrl.u32 %v2522_v38, 5 }
 0x188   : > { %v773_v47 = vsel %vm652_vm0, %v772_v57, %v771_v8  ;;  %v1640_v28 = vshrl.u32 %v1635_v46, 16  ;;  %v1662_v39 = vshrl.u32 %v1657_v12, 16  ;;  %v5838_v53 = vadd.s32 %v1665_v63, %v1661_v23 }
 0x189   : > { %v776_v41 = vsel %vm5739_vm1, %v5501_v4, %v773_v47  ;;  %v1671_v44 = vadd.s32 %v1670_v3, %v1660_v52  ;;  %v1649_v32 = vadd.s32 %v1648_v54, %v1638_v40  ;;  %v2527_v49 = vshll.u32 %v4964_v7, %v2524_v21 }
 0x18a   : > { %v778_v60 = vmul.f32 %v776_v41, %v776_v41  ;;  %v2530_v2 = vshll.u32 %v4965_v9, %v2524_v21  ;;  %v2528_v25 = vshrl.u32 %v4965_v9, %v5831_v5  ;;  %v2531_v56 = vshrl.u32 %v4966_v11, %v5831_v5 }
 0x18b   : > { %v1672_v61 = vadd.s32 %v1671_v44, %v1662_v39  ;;  %v5844_v16 = vadd.s32 %v1649_v32, %v1640_v28  ;;  %v2534_v12 = vshrl.u32 %v4967_v13, %v5831_v5  ;;  %v2536_v34 = vshll.u32 %v4967_v13, %v2524_v21 }
 0x18c   : > { %v779_v36 = vmul.f32 -0.001358992, %v778_v60  ;;  %v786_v14 = vmul.f32 -0.00019511016, %v778_v60  ;;  %v2537_v46 = vshrl.u32 %v4968_v15, %v5831_v5  ;;  %v2533_v38 = vshll.u32 %v4966_v11, %v2524_v21 }
 0x18d   : > { %v1676_v51 = vadd.s32 1, %v1672_v61  ;;  %vm1675_vm0 = vc.u32 %v5844_v16, %v5838_v53  ;;  %v2539_v6 = vshll.u32 %v4968_v15, %v2524_v21  ;;  %v2540_v58 = vshrl.u32 %v4969_v24, %v5831_v5 }
 0x18e   : > { %v780_v55 = vadd.f32 0.041655596, %v779_v36  ;;  %v787_v20 = vadd.f32 0.008332121, %v786_v14  ;;  %v2538_v33 = vor.u32 %v2537_v46, %v2536_v34  ;;  %v5859_v8 = vor.u32 %v2528_v25, %v2527_v49 }
 0x18f   : > { %v1677_v35 = vsel %vm1675_vm0, %v1676_v51, %v1672_v61  ;;  %v5861_v26 = vor.u32 %v2531_v56, %v2530_v2  ;;  %v5863_v63 = vor.u32 %v2534_v12, %v2533_v38  ;;  %v2541_v57 = vor.u32 %v2540_v58, %v2539_v6 }
 0x190   : > { %v781_v59 = vmul.f32 %v780_v55, %v778_v60  ;;  %v788_v23 = vmul.f32 %v787_v20, %v778_v60  ;;  %v1678_v27 = vadd.s32 %v1677_v35, %v1673_v42  ;;  %v795_v1 = vand.u32 3, %v5811_v50 }
 0x191   : > { %v2518_v29 = vor.u32 8388608, %v5732_v10  ;;  %vm2545_vm1 = vcmp.lt.s32.totalorder %v5836_v48, 4  ;;  %vm2542_vm3 = vcmp.lt.s32.totalorder %v5836_v48, 1  ;;  %vm2544_vm4 = vcmp.lt.s32.totalorder %v5836_v48, 3 }
 0x192   : > { %v782_v43 = vadd.f32 -0.4999988, %v781_v59  ;;  %v789_v17 = vadd.f32 -0.16666654, %v788_v23  ;;  %v1679_v21 = vadd.s32 536870912, %v1678_v27  ;;  %v2550_v50 = vsel %vm2542_vm3, %v5859_v8, %v5861_v26 }
 0x193   : > { %v2551_v42 = vsel %vm2545_vm1, %v2538_v33, 920167782  ;;  %v2554_v10 = vsel %vm2542_vm3, %v5861_v26, %v5863_v63  ;;  %v2555_v40 = vsel %vm2545_vm1, %v2541_v57, 1326507024  ;;  %vm2543_vm5 = vcmp.lt.s32.totalorder %v5836_v48, 2 }
 0x194   : > { %v783_v18 = vmul.f32 %v782_v43, %v778_v60  ;;  %v790_v52 = vmul.f32 %v789_v17, %v778_v60  ;;  %v5871_v19 = vshrl.u32 %v1679_v21, 30  ;;  %v2552_v3 = vsel %vm2544_vm4, %v5863_v63, %v2551_v42 }
 0x195   : > { %v2556_v60 = vsel %vm2544_vm4, %v2538_v33, %v2555_v40  ;;  %v5891_v28 = vshll.u32 %v2518_v29, 8  ;;  %vm793_vm6 = vweird.f32 %v5501_v4  ;;  %vm796_vm7 = vcmp.lt.s32.totalorder %v795_v1, 2 }
 0x196   : > { %v784_v47 = vadd.f32 1.0, %v783_v18  ;;  %v791_v22 = vadd.f32 1.0, %v790_v52  ;;  %v1681_v54 = vshll.u32 %v5871_v19, 30  ;;  %v2557_v32 = vsel %vm2543_vm5, %v2554_v10, %v2556_v60 }
 0x197   : > { %vm797_vm8 = vcmp.eq.s32.totalorder %v795_v1, 0  ;;  %v2553_v2 = vsel %vm2543_vm5, %v2550_v50, %v2552_v3  ;;  %vm800_vm9 = vcmp.eq.s32.totalorder %v795_v1, 2  ;;  %v2560_v14 = vshrl.u32 %v5891_v28, 16 }
 0x198   : > { %v792_v39 = vmul.f32 %v791_v22, %v776_v41  ;;  %v801_v44 = vxor.u32 2147483648, %v784_v47  ;;  %v1682_v49 = vsub.s32 %v1678_v27, %v1681_v54  ;;  %v2561_v61 = vand.u32 65535, %v2557_v32  ;;  %v477_v22 = vpop.f32.mrf.mxu3 }
 0x199   : > { %v2559_v25 = vand.u32 65535, %v5891_v28  ;;  %v2562_v56 = vshrl.u32 %v2557_v32, 16  ;;  %v2583_v20 = vand.u32 65535, %v2553_v2  ;;  %v2584_v6 = vshrl.u32 %v2553_v2, 16 }
 0x19a   : > { %v798_v36 = vxor.u32 2147483648, %v792_v39  ;;  %vm1683_vm11 = vcmp.lt.s32.totalorder %v1682_v49, 0  ;;  %v1684_v41 = vsub.s32 0, %v1682_v49  ;;  %v802_v34 = vsel %vm800_vm9, %v801_v44, %v792_v39 }
 0x19b   : > { %v2565_v55 = vmul.u32 %v2561_v61, %v2560_v14  ;;  %v2564_v38 = vmul.u32 %v2562_v56, %v2559_v25  ;;  %v2526_v23 = vshrl.u32 %v4964_v7, %v5831_v5  ;;  %v2563_v35 = vmul.u32 %v2561_v61, %v2559_v25 }
 0x19c   : > { %v799_v12 = vsel %vm797_vm8, %v784_v47, %v798_v36  ;;  %v1685_v46 = vsel %vm1683_vm11, %v1684_v41, %v1682_v49  ;;  %v1674_v27 = vadd.s32 %v5838_v53, %v5844_v16  ;;  %v2566_v17 = vmul.u32 %v2562_v56, %v2560_v14 }
 0x19d   : > { %v803_v51 = vsel %vm796_vm7, %v799_v12, %v802_v34  ;;  %v1686_v59 = vclz %v1685_v46  ;;  %v2567_v33 = vshll.u32 %v2564_v38, 16  ;;  %v2569_v57 = vshll.u32 %v2565_v55, 16 }
 0x19e   : > { %v804_v58 = vsel %vm793_vm6, nan, %v803_v51  ;;  %v2586_v21 = vmul.u32 %v2584_v6, %v2559_v25  ;;  %v2587_v29 = vmul.u32 %v2583_v20, %v2560_v14  ;;  %v2547_v4 = vsel %vm2545_vm1, %v5863_v63, 2102212464 }
 0x19f   : > { %4526 = vst [vmem:[%s5494_s4 + $0x8] sm:$0xff] %v804_v58  ;;  %v4728_v43 = vadd.s32 4294967294, %v1686_v59  ;;  %vm2571_vm10 = vc.u32 %v2563_v35, %v2567_v33  ;;  %v2573_v1 = vadd.s32 %v2567_v33, %v2563_v35  ;;  %v2568_v18 = vshrl.u32 %v2564_v38, 16  ;;  %v423_v38 = vpop.f32.mrf.mxu0 }
 0x1a0   : > { %v2572_v5 = vsel %vm2571_vm10, 1, %v4970_v30  ;;  %v2589_v50 = vshll.u32 %v2586_v21, 16  ;;  %v2585_v47 = vmul.u32 %v2583_v20, %v2559_v25  ;;  %v2588_v54 = vmul.u32 %v2584_v6, %v2560_v14 }
 0x1a1   : > { %vm4729_vm14 = vcmp.lt.s32.totalorder %v4728_v43, 0  ;;  %v2574_v42 = vadd.s32 %v2572_v5, %v2566_v17  ;;  %vm2575_vm12 = vc.u32 %v2573_v1, %v2569_v57  ;;  %v2591_v60 = vshll.u32 %v2587_v29, 16 }
 0x1a2   : > { %v1689_v52 = vsel %vm4729_vm14, 0, %v4728_v43  ;;  %v2576_v10 = vsel %vm2575_vm12, 1, %v4970_v30  ;;  %vm2593_vm13 = vc.u32 %v2585_v47, %v2589_v50  ;;  %v2595_v63 = vadd.s32 %v2589_v50, %v2585_v47 }
 0x1a3   : > { %v1690_v53 = vsub.s32 32, %v1689_v52  ;;  %v1694_v16 = vsub.s32 4294967266, %v1689_v52  ;;  %v1691_v3 = vshll.u32 %v1682_v49, %v1689_v52  ;;  %v2578_v40 = vadd.s32 %v2576_v10, %v2574_v42 }
 0x1a4   : > { %v1704_v32 = vsub.s32 4, %v5871_v19  ;;  %v2594_v36 = vsel %vm2593_vm13, 1, %v4970_v30  ;;  %v5916_v61 = vadd.f32 %v5695_v31, %v477_v22  ;;  %vm2597_vm15 = vc.u32 %v2595_v63, %v2591_v60 }
 0x1a5   : > { %v1692_v39 = vshrl.u32 %v1674_v27, %v1690_v53  ;;  %v1695_v44 = vadd.s32 127, %v1694_v16  ;;  %v2579_v2 = vadd.s32 %v2578_v40, %v2568_v18  ;;  %v2596_v25 = vadd.s32 %v2594_v36, %v2588_v54 }
 0x1a6   : > { %vm1582_vm2 = vcmp.lt.s32.totalorder %v5698_v37, 0  ;;  %v2570_v49 = vshrl.u32 %v2565_v55, 16  ;;  %v2598_v14 = vsel %vm2597_vm15, 1, %v4970_v30  ;;  %v3595_v12 = vand.u32 2147483647, %v5916_v61 }
 0x1a7   : > { %v1693_v41 = vor.u32 %v1692_v39, %v1691_v3  ;;  %v1696_v56 = vshll.u32 %v1695_v44, 23  ;;  %v2546_v20 = vsel %vm2542_vm3, %v2526_v23, %v5859_v8  ;;  %v2590_v51 = vshrl.u32 %v2586_v21, 16 }
 0x1a8   : > { %v2600_v46 = vadd.s32 %v2598_v14, %v2596_v25  ;;  %v1705_v6 = vsel %vm1582_vm2, %v1704_v32, %v5871_v19  ;;  %v2548_v55 = vsel %vm2544_vm4, %v5861_v26, %v2547_v4  ;;  %v2580_v58 = vadd.s32 %v2579_v2, %v2570_v49 }
 0x1a9   : > { %v1697_v34 = vor.u32 4788187, %v1696_v56  ;;  %v3598_v59 = vand.u32 2139095040, %v5916_v61  ;;  %v1700_v33 = vcvt.s32.f32 %v1693_v41  ;;  %v2592_v27 = vshrl.u32 %v2587_v29, 16 }
 0x1aa   : > { %v2601_v43 = vadd.s32 %v2600_v46, %v2590_v51  ;;  %v2599_v17 = vadd.s32 %v2595_v63, %v2591_v60  ;;  %v3602_v23 = vand.u32 8388607, %v3595_v12  ;;  %v5934_v57 = vadd.f32 %v5695_v31, %v423_v38 }
 0x1ab   : > { %v1698_v35 = vand.u32 2147483647, %v1697_v34  ;;  %v3599_v8 = vshrl.u32 %v3598_v59, 23  ;;  %v2549_v1 = vsel %vm2543_vm5, %v2546_v20, %v2548_v55  ;;  %vm1581_vm0 = vcmp.le.f32.partialorder %v1580_v62, 0.7853982 }
 0x1ac   : > { %v2602_v26 = vadd.s32 %v2601_v43, %v2592_v27  ;;  %vm2605_vm1 = vc.u32 %v2580_v58, %v2599_v17  ;;  %v1707_v4 = vsel %vm1581_vm0, 0, %v1705_v6  ;;  %v2603_v5 = vmul.u32 %v5891_v28, %v2549_v1 }
 0x1ad   : > { %v1701_v19 = vmul.f32 %v1700_v33, %v1698_v35  ;;  %v4766_v21 = vadd.s32 4294967169, %v3599_v8  ;;  %v3603_v52 = vor.u32 8388608, %v3602_v23  ;;  %v808_v31 = vand.u32 2139095040, %v5934_v57 }
 0x1ae   : > { %v2606_v18 = vadd.s32 1, %v2602_v26  ;;  %v1724_v16 = vadd.s32 3, %v1707_v4  ;;  %vm2512_vm4 = vcmp.lt.s32.totalorder %v5709_v45, 0  ;;  %v5950_v36 = vadd.s32 %v2599_v17, %v2580_v58 }
 0x1af   : > { %v1702_v29 = vxor.u32 2147483648, %v1701_v19  ;;  %v3605_v42 = vadd.s32 1, %v4766_v21  ;;  %v5945_v40 = vshll.u32 %v3603_v52, 8  ;;  %v809_v28 = vshrl.u32 %v808_v31, 23 }
 0x1b0   : > { %v2607_v48 = vsel %vm2605_vm1, %v2606_v18, %v2602_v26  ;;  %v5947_v39 = vand.u32 3, %v1724_v16  ;;  %v805_v41 = vand.u32 2147483647, %v5934_v57  ;;  %vm1723_vm9 = vweird.f32 %v5698_v37 }
 0x1b1   : > { %v1703_v50 = vsel %vm1582_vm2, %v1702_v29, %v1701_v19  ;;  %v2608_v10 = vadd.s32 %v2607_v48, %v2603_v5  ;;  %vm3606_vm3 = vcmp.gt.s32.totalorder %v3605_v42, 0  ;;  %v5954_v25 = vand.u32 65535, %v5945_v40 }
 0x1b2   : > { %v1706_v53 = vsel %vm1581_vm0, %v5698_v37, %v1703_v50  ;;  %v3607_v47 = vsel %vm3606_vm3, %v3605_v42, 0  ;;  %v5957_v49 = vshrl.u32 %v5945_v40, 16  ;;  %v5959_v14 = vadd.s32 4294967169, %v809_v28 }
 0x1b3   : > { %v1708_v62 = vmul.f32 %v1706_v53, %v1706_v53  ;;  %v2609_v22 = vadd.s32 536870912, %v2608_v10  ;;  %v3609_v3 = vand.u32 31, %v3607_v47  ;;  %v5961_v51 = vshrl.u32 %v3607_v47, 5 }
 0x1b4   : > { %vm1730_vm5 = vcmp.eq.s32.totalorder %v5947_v39, 2  ;;  %vm1727_vm6 = vcmp.eq.s32.totalorder %v5947_v39, 0  ;;  %vm1726_vm8 = vcmp.lt.s32.totalorder %v5947_v39, 2  ;;  %vm5990_vm10 = vcmp.le.f32.partialorder %v2510_v0, 0.7853982 }
 0x1b5   : > { %v1709_v54 = vmul.f32 -0.001358992, %v1708_v62  ;;  %v1716_v60 = vmul.f32 -0.00019511016, %v1708_v62  ;;  %v2610_v44 = vshrl.u32 %v2609_v22, 30  ;;  %v3610_v63 = vsub.s32 32, %v3609_v3 }
 0x1b6   : > { %v3612_v6 = vshll.u32 %v4964_v7, %v3609_v3  ;;  %v3615_v55 = vshll.u32 %v4965_v9, %v3609_v3  ;;  %v3618_v33 = vshll.u32 %v4966_v11, %v3609_v3  ;;  %v3621_v26 = vshll.u32 %v4967_v13, %v3609_v3 }
 0x1b7   : > { %v1710_v32 = vadd.f32 0.041655596, %v1709_v54  ;;  %v1717_v2 = vadd.f32 0.008332121, %v1716_v60  ;;  %v2611_v56 = vshll.u32 %v2610_v44, 30  ;;  %v3613_v46 = vshrl.u32 %v4965_v9, %v3610_v63 }
 0x1b8   : > { %v3616_v58 = vshrl.u32 %v4966_v11, %v3610_v63  ;;  %v3619_v27 = vshrl.u32 %v4967_v13, %v3610_v63  ;;  %v2634_v17 = vsub.s32 4, %v2610_v44  ;;  %v3622_v8 = vshrl.u32 %v4968_v15, %v3610_v63 }
 0x1b9   : > { %v1711_v34 = vmul.f32 %v1710_v32, %v1708_v62  ;;  %v1718_v20 = vmul.f32 %v1717_v2, %v1708_v62  ;;  %v5964_v38 = vsub.s32 %v2608_v10, %v2611_v56  ;;  %v3614_v1 = vor.u32 %v3613_v46, %v3612_v6 }
 0x1ba   : > { %v3617_v29 = vor.u32 %v3616_v58, %v3615_v55  ;;  %v3624_v4 = vshll.u32 %v4968_v15, %v3609_v3  ;;  %v3625_v18 = vshrl.u32 %v4969_v24, %v3610_v63  ;;  %v3620_v31 = vor.u32 %v3619_v27, %v3618_v33 }
 0x1bb   : > { %v1712_v59 = vadd.f32 -0.4999988, %v1711_v34  ;;  %v1719_v35 = vadd.f32 -0.16666654, %v1718_v20  ;;  %vm2613_vm7 = vcmp.lt.s32.totalorder %v5964_v38, 0  ;;  %v2614_v43 = vsub.s32 0, %v5964_v38 }
 0x1bc   : > { %v5984_v50 = vsel %vm2512_vm4, %v2634_v17, %v2610_v44  ;;  %v3611_v48 = vshrl.u32 %v4964_v7, %v3610_v63  ;;  %v3623_v16 = vor.u32 %v3622_v8, %v3621_v26  ;;  %v3626_v10 = vor.u32 %v3625_v18, %v3624_v4 }
 0x1bd   : > { %v1713_v23 = vmul.f32 %v1712_v59, %v1708_v62  ;;  %v1720_v19 = vmul.f32 %v1719_v35, %v1708_v62  ;;  %v2615_v21 = vsel %vm2613_vm7, %v2614_v43, %v5964_v38  ;;  %vm3627_vm11 = vcmp.lt.s32.totalorder %v5961_v51, 1 }
 0x1be   : > { %v2616_v42 = vclz %v2615_v21  ;;  %vm3628_vm14 = vcmp.lt.s32.totalorder %v5961_v51, 2  ;;  %vm3629_vm12 = vcmp.lt.s32.totalorder %v5961_v51, 3  ;;  %vm3630_vm13 = vcmp.lt.s32.totalorder %v5961_v51, 4 }
 0x1bf   : > { %v1714_v5 = vadd.f32 1.0, %v1713_v23  ;;  %v1721_v52 = vadd.f32 1.0, %v1720_v19  ;;  %v3631_v28 = vsel %vm3627_vm11, %v3611_v48, %v3614_v1  ;;  %v3639_v60 = vsel %vm3627_vm11, %v3617_v29, %v3620_v31 }
 0x1c0   : > { %v4746_v22 = vadd.s32 4294967294, %v2616_v42  ;;  %v3636_v0 = vsel %vm3630_vm13, %v3623_v16, 920167782  ;;  %v3640_v32 = vsel %vm3630_vm13, %v3626_v10, 1326507024  ;;  %v815_v21 = vadd.s32 1, %v5959_v14 }
 0x1c1   : > { %v1722_v62 = vmul.f32 %v1721_v52, %v1706_v53  ;;  %v1731_v47 = vxor.u32 2147483648, %v1714_v5  ;;  %v3635_v53 = vsel %vm3627_vm11, %v3614_v1, %v3617_v29  ;;  %v3632_v20 = vsel %vm3630_vm13, %v3620_v31, 2102212464 }
 0x1c2   : > { %vm4747_vm15 = vcmp.lt.s32.totalorder %v4746_v22, 0  ;;  %v3637_v55 = vsel %vm3629_vm12, %v3620_v31, %v3636_v0  ;;  %v3641_v58 = vsel %vm3629_vm12, %v3623_v16, %v3640_v32  ;;  %v3633_v39 = vsel %vm3629_vm12, %v3617_v29, %v3632_v20 }
 0x1c3   : > { %v1728_v54 = vxor.u32 2147483648, %v1722_v62  ;;  %v1732_v44 = vsel %vm1730_vm5, %v1731_v47, %v1722_v62  ;;  %v2619_v63 = vsel %vm4747_vm15, 0, %v4746_v22  ;;  %v3638_v27 = vsel %vm3628_vm14, %v3635_v53, %v3637_v55 }
 0x1c4   : > { %v2620_v56 = vsub.s32 32, %v2619_v63  ;;  %v2624_v34 = vsub.s32 4294967266, %v2619_v63  ;;  %v2621_v6 = vshll.u32 %v5964_v38, %v2619_v63  ;;  %v3642_v38 = vsel %vm3628_vm14, %v3639_v60, %v3641_v58 }
 0x1c5   : > { %v1729_v2 = vsel %vm1727_vm6, %v1714_v5, %v1728_v54  ;;  %v3668_v43 = vand.u32 65535, %v3638_v27  ;;  %v3669_v17 = vshrl.u32 %v3638_v27, 16  ;;  %v3646_v19 = vand.u32 65535, %v3642_v38 }
 0x1c6   : > { %v1733_v46 = vsel %vm1726_vm8, %v1729_v2, %v1732_v44  ;;  %v2622_v35 = vshrl.u32 %v5950_v36, %v2620_v56  ;;  %v2625_v33 = vadd.s32 127, %v2624_v34  ;;  %v3647_v37 = vshrl.u32 %v3642_v38, 16 }
 0x1c7   : > { %v1734_v59 = vsel %vm1723_vm9, nan, %v1733_v46  ;;  %v3671_v1 = vmul.u32 %v3669_v17, %v5954_v25  ;;  %v3672_v36 = vmul.u32 %v3668_v43, %v5957_v49  ;;  %v6022_v26 = vand.u32 8388607, %v805_v41 }
 0x1c8   : > { %4532 = vst [vmem:[%s5494_s4 + $0x38] sm:$0xff] %v1734_v59  ;;  %v2623_v8 = vor.u32 %v2622_v35, %v2621_v6  ;;  %v2626_v23 = vshll.u32 %v2625_v33, 23  ;;  %v2637_v4 = vsel %vm5990_vm10, 0, %v5984_v50  ;;  %v6030_v18 = vsel %vm3628_vm14, %v3631_v28, %v3633_v39 }
 0x1c9   : > { %v3649_v5 = vmul.u32 %v3647_v37, %v5954_v25  ;;  %v3650_v52 = vmul.u32 %v3646_v19, %v5957_v49  ;;  %v3670_v42 = vmul.u32 %v3668_v43, %v5954_v25  ;;  %v3673_v31 = vmul.u32 %v3669_v17, %v5957_v49 }
 0x1ca   : > { %v2627_v29 = vor.u32 4788187, %v2626_v23  ;;  %v3674_v48 = vshll.u32 %v3671_v1, 16  ;;  %v2630_v14 = vcvt.s32.f32 %v2623_v8  ;;  %v3648_v10 = vmul.u32 %v3646_v19, %v5954_v25 }
 0x1cb   : > { %v3652_v62 = vshll.u32 %v3649_v5, 16  ;;  %v3651_v50 = vmul.u32 %v3647_v37, %v5957_v49  ;;  %v3654_v47 = vshll.u32 %v3650_v52, 16  ;;  %v3676_v51 = vshll.u32 %v3672_v36, 16 }
 0x1cc   : > { %v2628_v16 = vand.u32 2147483647, %v2627_v29  ;;  %vm3678_vm2 = vc.u32 %v3670_v42, %v3674_v48  ;;  %v3680_v60 = vadd.s32 %v3674_v48, %v3670_v42  ;;  %vm816_vm1 = vcmp.gt.s32.totalorder %v815_v21, 0 }
 0x1cd   : > { %vm3656_vm0 = vc.u32 %v3648_v10, %v3652_v62  ;;  %v3658_v28 = vadd.s32 %v3652_v62, %v3648_v10  ;;  %v3679_v54 = vsel %vm3678_vm2, 1, %v4970_v30  ;;  %v817_v25 = vsel %vm816_vm1, %v815_v21, 0 }
 0x1ce   : > { %v2631_v22 = vmul.f32 %v2630_v14, %v2628_v16  ;;  %v3657_v53 = vsel %vm3656_vm0, 1, %v4970_v30  ;;  %v3681_v44 = vadd.s32 %v3679_v54, %v3673_v31  ;;  %v2654_v32 = vadd.s32 3, %v2637_v4 }
 0x1cf   : > { %v3659_v0 = vadd.s32 %v3657_v53, %v3651_v50  ;;  %vm3660_vm3 = vc.u32 %v3658_v28, %v3654_v47  ;;  %v3653_v2 = vshrl.u32 %v3649_v5, 16  ;;  %vm3682_vm5 = vc.u32 %v3680_v60, %v3676_v51 }
 0x1d0   : > { %v2632_v63 = vxor.u32 2147483648, %v2631_v22  ;;  %v3661_v49 = vsel %vm3660_vm3, 1, %v4970_v30  ;;  %v3683_v20 = vsel %vm3682_vm5, 1, %v4970_v30  ;;  %v819_v46 = vand.u32 31, %v817_v25 }
 0x1d1   : > { %v3663_v34 = vadd.s32 %v3661_v49, %v3659_v0  ;;  %v3675_v55 = vshrl.u32 %v3671_v1, 16  ;;  %v3685_v58 = vadd.s32 %v3683_v20, %v3681_v44  ;;  %v3688_v59 = vmul.u32 %v5945_v40, %v6030_v18 }
 0x1d2   : > { %v2633_v56 = vsel %vm2512_vm4, %v2632_v63, %v2631_v22  ;;  %v3655_v33 = vshrl.u32 %v3650_v52, 16  ;;  %v6049_v39 = vsub.s32 32, %v819_v46  ;;  %v3677_v38 = vshrl.u32 %v3672_v36, 16 }
 0x1d3   : > { %v2636_v6 = vsel %vm5990_vm10, %v5709_v45, %v2633_v56  ;;  %v3664_v27 = vadd.s32 %v3663_v34, %v3653_v2  ;;  %v6051_v43 = vadd.s32 %v3680_v60, %v3676_v51  ;;  %v3686_v17 = vadd.s32 %v3685_v58, %v3675_v55 }
 0x1d4   : > { %v2638_v35 = vmul.f32 %v2636_v6, %v2636_v6  ;;  %v825_v8 = vshll.u32 %v4965_v9, %v819_v46  ;;  %v6056_v37 = vshrl.u32 %v817_v25, 5  ;;  %v826_v40 = vshrl.u32 %v4966_v11, %v6049_v39 }
 0x1d5   : > { %v6054_v3 = vadd.s32 %v3664_v27, %v3655_v33  ;;  %v3687_v1 = vadd.s32 %v3686_v17, %v3677_v38  ;;  %v828_v21 = vshll.u32 %v4966_v11, %v819_v46  ;;  %v829_v36 = vshrl.u32 %v4967_v13, %v6049_v39 }
 0x1d6   : > { %v2639_v23 = vmul.f32 -0.001358992, %v2638_v35  ;;  %v2646_v19 = vmul.f32 -0.00019511016, %v2638_v35  ;;  %v831_v18 = vshll.u32 %v4967_v13, %v819_v46  ;;  %v822_v52 = vshll.u32 %v4964_v7, %v819_v46 }
 0x1d7   : > { %vm3690_vm4 = vc.u32 %v6054_v3, %v6051_v43  ;;  %v3691_v5 = vadd.s32 1, %v3687_v1  ;;  %v823_v42 = vshrl.u32 %v4965_v9, %v6049_v39  ;;  %v6069_v31 = vor.u32 %v826_v40, %v825_v8 }
 0x1d8   : > { %v2640_v29 = vadd.f32 0.041655596, %v2639_v23  ;;  %v2647_v4 = vadd.f32 0.008332121, %v2646_v19  ;;  %v832_v14 = vshrl.u32 %v4968_v15, %v6049_v39  ;;  %v834_v10 = vshll.u32 %v4968_v15, %v819_v46 }
 0x1d9   : > { %v3692_v62 = vsel %vm3690_vm4, %v3691_v5, %v3687_v1  ;;  %v6074_v50 = vor.u32 %v829_v36, %v828_v21  ;;  %v835_v47 = vshrl.u32 %v4969_v24, %v6049_v39  ;;  %vm840_vm6 = vcmp.lt.s32.totalorder %v6056_v37, 4 }
 0x1da   : > { %v2641_v48 = vmul.f32 %v2640_v29, %v2638_v35  ;;  %v2648_v16 = vmul.f32 %v2647_v4, %v2638_v35  ;;  %v3693_v28 = vadd.s32 %v3692_v62, %v3688_v59  ;;  %v833_v54 = vor.u32 %v832_v14, %v831_v18 }
 0x1db   : > { %v813_v53 = vor.u32 8388608, %v6022_v26  ;;  %v824_v60 = vor.u32 %v823_v42, %v822_v52  ;;  %v836_v44 = vor.u32 %v835_v47, %v834_v10  ;;  %vm837_vm7 = vcmp.lt.s32.totalorder %v6056_v37, 1 }
 0x1dc   : > { %v2642_v51 = vadd.f32 -0.4999988, %v2641_v48  ;;  %v2649_v22 = vadd.f32 -0.16666654, %v2648_v16  ;;  %v3694_v25 = vadd.s32 536870912, %v3693_v28  ;;  %vm839_vm8 = vcmp.lt.s32.totalorder %v6056_v37, 3 }
 0x1dd   : > { %v2655_v2 = vand.u32 3, %v2654_v32  ;;  %vm838_vm9 = vcmp.lt.s32.totalorder %v6056_v37, 2  ;;  %v846_v49 = vsel %vm840_vm6, %v833_v54, 920167782  ;;  %v850_v56 = vsel %vm840_vm6, %v836_v44, 1326507024 }
 0x1de   : > { %v2643_v63 = vmul.f32 %v2642_v51, %v2638_v35  ;;  %v2650_v0 = vmul.f32 %v2649_v22, %v2638_v35  ;;  %v6087_v20 = vshrl.u32 %v3694_v25, 30  ;;  %v849_v46 = vsel %vm837_vm7, %v6069_v31, %v6074_v50 }
 0x1df   : > { %vm2653_vm11 = vweird.f32 %v5709_v45  ;;  %v845_v32 = vsel %vm837_vm7, %v824_v60, %v6069_v31  ;;  %v851_v55 = vsel %vm839_vm8, %v833_v54, %v850_v56  ;;  %v6099_v58 = vshll.u32 %v813_v53, 8 }
 0x1e0   : > { %v2644_v34 = vadd.f32 1.0, %v2643_v63  ;;  %v2651_v26 = vadd.f32 1.0, %v2650_v0  ;;  %v3696_v33 = vshll.u32 %v6087_v20, 30  ;;  %v847_v27 = vsel %vm839_vm8, %v6074_v50, %v846_v49 }
 0x1e1   : > { %vm2656_vm10 = vcmp.lt.s32.totalorder %v2655_v2, 2  ;;  %v852_v38 = vsel %vm838_vm9, %v849_v46, %v851_v55  ;;  %v854_v17 = vand.u32 65535, %v6099_v58  ;;  %v855_v8 = vshrl.u32 %v6099_v58, 16 }
 0x1e2   : > { %v2652_v59 = vmul.f32 %v2651_v26, %v2636_v6  ;;  %v2661_v35 = vxor.u32 2147483648, %v2644_v34  ;;  %vm2657_vm14 = vcmp.eq.s32.totalorder %v2655_v2, 0  ;;  %vm2660_vm12 = vcmp.eq.s32.totalorder %v2655_v2, 2 }
 0x1e3   : > { %v3697_v19 = vsub.s32 %v3693_v28, %v3696_v33  ;;  %v821_v6 = vshrl.u32 %v4964_v7, %v6049_v39  ;;  %v848_v1 = vsel %vm838_vm9, %v845_v32, %v847_v27  ;;  %v856_v40 = vand.u32 65535, %v852_v38  ;;  %v441_v32 = vpop.f32.mrf.mxu1 }
 0x1e4   : > { %v2658_v23 = vxor.u32 2147483648, %v2652_v59  ;;  %v857_v21 = vshrl.u32 %v852_v38, 16  ;;  %v2662_v29 = vsel %vm2660_vm12, %v2661_v35, %v2652_v59  ;;  %v878_v39 = vand.u32 65535, %v848_v1 }
 0x1e5   : > { %vm3698_vm13 = vcmp.lt.s32.totalorder %v3697_v19, 0  ;;  %v3699_v4 = vsub.s32 0, %v3697_v19  ;;  %v858_v5 = vmul.u32 %v856_v40, %v854_v17  ;;  %v860_v42 = vmul.u32 %v856_v40, %v855_v8 }
 0x1e6   : > { %v2659_v36 = vsel %vm2657_vm14, %v2644_v34, %v2658_v23  ;;  %v859_v52 = vmul.u32 %v857_v21, %v854_v17  ;;  %v879_v14 = vshrl.u32 %v848_v1, 16  ;;  %v3689_v51 = vadd.s32 %v6051_v43, %v6054_v3  ;;  %v6130_v1 = vld [vmem:[%s5072_s18] ss:$0 sm:$0xff] }
 0x1e7   : > { %v2663_v18 = vsel %vm2656_vm10, %v2659_v36, %v2662_v29  ;;  %v3700_v16 = vsel %vm3698_vm13, %v3699_v4, %v3697_v19  ;;  %v864_v47 = vshll.u32 %v860_v42, 16  ;;  %v841_v22 = vsel %vm837_vm7, %v821_v6, %v824_v60 }
 0x1e8   : > { %v2664_v48 = vsel %vm2653_vm11, nan, %v2663_v18  ;;  %v3701_v10 = vclz %v3700_v16  ;;  %v862_v62 = vshll.u32 %v859_v52, 16  ;;  %v861_v54 = vmul.u32 %v857_v21, %v855_v8 }
 0x1e9   : > { %4538 = vst [vmem:[%s5494_s4 + $0x68] sm:$0xff] %v2664_v48  ;;  %vm3597_vm2 = vcmp.lt.s32.totalorder %v5916_v61, 0  ;;  %v880_v44 = vmul.u32 %v878_v39, %v854_v17  ;;  %v881_v63 = vmul.u32 %v879_v14, %v854_v17  ;;  %v882_v0 = vmul.u32 %v878_v39, %v855_v8 }
 0x1ea   : > { %v4767_v28 = vadd.s32 4294967294, %v3701_v10  ;;  %vm866_vm15 = vc.u32 %v858_v5, %v862_v62  ;;  %v868_v53 = vadd.s32 %v862_v62, %v858_v5  ;;  %v3719_v25 = vsub.s32 4, %v6087_v20  ;;  %v459_v62 = vpop.f32.mrf.mxu2 }
 0x1eb   : > { %v867_v45 = vsel %vm866_vm15, 1, %v4970_v30  ;;  %v863_v3 = vshrl.u32 %v859_v52, 16  ;;  %v884_v49 = vshll.u32 %v881_v63, 16  ;;  %v883_v46 = vmul.u32 %v879_v14, %v855_v8 }
 0x1ec   : > { %vm4768_vm0 = vcmp.lt.s32.totalorder %v4767_v28, 0  ;;  %v869_v2 = vadd.s32 %v867_v45, %v861_v54  ;;  %vm870_vm1 = vc.u32 %v868_v53, %v864_v47  ;;  %v886_v59 = vshll.u32 %v882_v0, 16 }
 0x1ed   : > { %v3704_v43 = vsel %vm4768_vm0, 0, %v4767_v28  ;;  %v871_v60 = vsel %vm870_vm1, 1, %v4970_v30  ;;  %vm888_vm3 = vc.u32 %v880_v44, %v884_v49  ;;  %v890_v35 = vadd.s32 %v884_v49, %v880_v44 }
 0x1ee   : > { %v3705_v56 = vsub.s32 32, %v3704_v43  ;;  %v3709_v34 = vsub.s32 4294967266, %v3704_v43  ;;  %v873_v26 = vadd.s32 %v871_v60, %v869_v2  ;;  %v3706_v55 = vshll.u32 %v3697_v19, %v3704_v43 }
 0x1ef   : > { %v889_v17 = vsel %vm888_vm3, 1, %v4970_v30  ;;  %v842_v23 = vsel %vm840_vm6, %v6074_v50, 2102212464  ;;  %vm892_vm5 = vc.u32 %v890_v35, %v886_v59  ;;  %v6133_v8 = vadd.f32 %v6130_v1, %v441_v32 }
 0x1f0   : > { %v3707_v33 = vshrl.u32 %v3689_v51, %v3705_v56  ;;  %v3710_v27 = vadd.s32 127, %v3709_v34  ;;  %v874_v38 = vadd.s32 %v873_v26, %v863_v3  ;;  %v891_v6 = vadd.s32 %v889_v17, %v883_v46 }
 0x1f1   : > { %v865_v21 = vshrl.u32 %v860_v42, 16  ;;  %v893_v36 = vsel %vm892_vm5, 1, %v4970_v30  ;;  %v885_v29 = vshrl.u32 %v881_v63, 16  ;;  %v1735_v18 = vand.u32 2147483647, %v6133_v8 }
 0x1f2   : > { %v3708_v19 = vor.u32 %v3707_v33, %v3706_v55  ;;  %v3711_v40 = vshll.u32 %v3710_v27, 23  ;;  %v895_v4 = vadd.s32 %v893_v36, %v891_v6  ;;  %v1738_v5 = vand.u32 2139095040, %v6133_v8 }
 0x1f3   : > { %v3720_v50 = vsel %vm3597_vm2, %v3719_v25, %v6087_v20  ;;  %v843_v48 = vsel %vm839_vm8, %v6069_v31, %v842_v23  ;;  %v875_v16 = vadd.s32 %v874_v38, %v865_v21  ;;  %v887_v39 = vshrl.u32 %v882_v0, 16 }
 0x1f4   : > { %v3712_v52 = vor.u32 4788187, %v3711_v40  ;;  %v896_v42 = vadd.s32 %v895_v4, %v885_v29  ;;  %v1739_v14 = vshrl.u32 %v1738_v5, 23  ;;  %v1742_v10 = vand.u32 8388607, %v1735_v18 }
 0x1f5   : > { %v3715_v51 = vcvt.s32.f32 %v3708_v19  ;;  %v894_v28 = vadd.s32 %v890_v35, %v886_v59  ;;  %vm6148_vm4 = vcmp.le.f32.partialorder %v3595_v12, 0.7853982  ;;  %v844_v31 = vsel %vm838_vm9, %v841_v22, %v843_v48 }
 0x1f6   : > { %v3713_v47 = vand.u32 2147483647, %v3712_v52  ;;  %v897_v20 = vadd.s32 %v896_v42, %v887_v39  ;;  %v4730_v53 = vadd.s32 4294967169, %v1739_v14  ;;  %v3722_v44 = vsel %vm6148_vm4, 0, %v3720_v50 }
 0x1f7   : > { %vm900_vm6 = vc.u32 %v875_v16, %v894_v28  ;;  %v6157_v63 = vadd.f32 %v6130_v1, %v459_v62  ;;  %v1743_v25 = vor.u32 8388608, %v1742_v10  ;;  %v898_v43 = vmul.u32 %v6099_v58, %v844_v31 }
 0x1f8   : > { %v3716_v45 = vmul.f32 %v3715_v51, %v3713_v47  ;;  %v901_v0 = vadd.s32 1, %v897_v20  ;;  %v1745_v2 = vadd.s32 1, %v4730_v53  ;;  %v3739_v3 = vadd.s32 3, %v3722_v44 }
 0x1f9   : > { %v2668_v56 = vand.u32 2139095040, %v6157_v63  ;;  %v6168_v46 = vshll.u32 %v1743_v25, 8  ;;  %v2665_v58 = vand.u32 2147483647, %v6157_v63  ;;  %v6175_v35 = vadd.s32 %v894_v28, %v875_v16 }
 0x1fa   : > { %v3717_v12 = vxor.u32 2147483648, %v3716_v45  ;;  %v902_v60 = vsel %vm900_vm6, %v901_v0, %v897_v20  ;;  %vm1746_vm7 = vcmp.gt.s32.totalorder %v1745_v2, 0  ;;  %v6173_v59 = vand.u32 3, %v3739_v3 }
 0x1fb   : > { %v903_v22 = vadd.s32 %v902_v60, %v898_v43  ;;  %v1747_v49 = vsel %vm1746_vm7, %v1745_v2, 0  ;;  %v2669_v23 = vshrl.u32 %v2668_v56, 23  ;;  %v6182_v40 = vand.u32 65535, %v6168_v46 }
 0x1fc   : > { %v3718_v37 = vsel %vm3597_vm2, %v3717_v12, %v3716_v45  ;;  %v1749_v26 = vand.u32 31, %v1747_v49  ;;  %v6186_v21 = vand.u32 8388607, %v2665_v58  ;;  %v6190_v5 = vshrl.u32 %v6168_v46, 16 }
 0x1fd   : > { %v6166_v34 = vsel %vm6148_vm4, %v5916_v61, %v3718_v37  ;;  %v904_v55 = vadd.s32 536870912, %v903_v22  ;;  %v6198_v10 = vshrl.u32 %v1747_v49, 5  ;;  %vm3745_vm8 = vcmp.eq.s32.totalorder %v6173_v59, 2 }
 0x1fe   : > { %v3723_v32 = vmul.f32 %v6166_v34, %v6166_v34  ;;  %v1750_v33 = vsub.s32 32, %v1749_v26  ;;  %v1752_v6 = vshll.u32 %v4964_v7, %v1749_v26  ;;  %v1755_v52 = vshll.u32 %v4965_v9, %v1749_v26 }
 0x1ff   : > { %v6177_v17 = vshrl.u32 %v904_v55, 30  ;;  %v1761_v48 = vshll.u32 %v4967_v13, %v1749_v26  ;;  %v1758_v47 = vshll.u32 %v4966_v11, %v1749_v26  ;;  %v4748_v28 = vadd.s32 4294967169, %v2669_v23 }
 0x200   : > { %v3724_v27 = vmul.f32 -0.001358992, %v3723_v32  ;;  %v3731_v38 = vmul.f32 -0.00019511016, %v3723_v32  ;;  %v1753_v19 = vshrl.u32 %v4965_v9, %v1750_v33  ;;  %v1756_v50 = vshrl.u32 %v4966_v11, %v1750_v33 }
 0x201   : > { %v906_v4 = vshll.u32 %v6177_v17, 30  ;;  %v1762_v16 = vshrl.u32 %v4968_v15, %v1750_v33  ;;  %v1759_v51 = vshrl.u32 %v4967_v13, %v1750_v33  ;;  %vm3742_vm11 = vcmp.eq.s32.totalorder %v6173_v59, 0 }
 0x202   : > { %v3725_v36 = vadd.f32 0.041655596, %v3724_v27  ;;  %v3732_v29 = vadd.f32 0.008332121, %v3731_v38  ;;  %v6201_v62 = vor.u32 %v1753_v19, %v1752_v6  ;;  %v6208_v53 = vor.u32 %v1756_v50, %v1755_v52 }
 0x203   : > { %v6196_v14 = vsub.s32 %v903_v22, %v906_v4  ;;  %v1763_v45 = vor.u32 %v1762_v16, %v1761_v48  ;;  %v1764_v44 = vshll.u32 %v4968_v15, %v1749_v26  ;;  %v1765_v0 = vshrl.u32 %v4969_v24, %v1750_v33 }
 0x204   : > { %v3726_v39 = vmul.f32 %v3725_v36, %v3723_v32  ;;  %v3733_v42 = vmul.f32 %v3732_v29, %v3723_v32  ;;  %vm3741_vm10 = vcmp.lt.s32.totalorder %v6173_v59, 2  ;;  %vm1767_vm14 = vcmp.lt.s32.totalorder %v6198_v10, 1 }
 0x205   : > { %vm908_vm9 = vcmp.lt.s32.totalorder %v6196_v14, 0  ;;  %v909_v20 = vsub.s32 0, %v6196_v14  ;;  %vm3738_vm12 = vweird.f32 %v5916_v61  ;;  %vm807_vm13 = vcmp.lt.s32.totalorder %v5934_v57, 0 }
 0x206   : > { %v3727_v54 = vadd.f32 -0.4999988, %v3726_v39  ;;  %v3734_v31 = vadd.f32 -0.16666654, %v3733_v42  ;;  %v1760_v3 = vor.u32 %v1759_v51, %v1758_v47  ;;  %vm1770_vm15 = vcmp.lt.s32.totalorder %v6198_v10, 4 }
 0x207   : > { %v910_v12 = vsel %vm908_vm9, %v909_v20, %v6196_v14  ;;  %v2673_v60 = vor.u32 8388608, %v6186_v21  ;;  %vm1769_vm2 = vcmp.lt.s32.totalorder %v6198_v10, 3  ;;  %v6220_v49 = vadd.s32 1, %v4748_v28 }
 0x208   : > { %v3728_v25 = vmul.f32 %v3727_v54, %v3723_v32  ;;  %v3735_v2 = vmul.f32 %v3734_v31, %v3723_v32  ;;  %v911_v43 = vclz %v910_v12  ;;  %v1766_v26 = vor.u32 %v1765_v0, %v1764_v44 }
 0x209   : > { %vm1768_vm0 = vcmp.lt.s32.totalorder %v6198_v10, 2  ;;  %v1775_v32 = vsel %vm1767_vm14, %v6201_v62, %v6208_v53  ;;  %vm6230_vm1 = vcmp.le.f32.partialorder %v805_v41, 0.7853982  ;;  %v1751_v23 = vshrl.u32 %v4964_v7, %v1750_v33 }
 0x20a   : > { %v3729_v37 = vadd.f32 1.0, %v3728_v25  ;;  %v3736_v22 = vadd.f32 1.0, %v3735_v2  ;;  %v4713_v56 = vadd.s32 4294967294, %v911_v43  ;;  %v1776_v6 = vsel %vm1770_vm15, %v1763_v45, 920167782 }
 0x20b   : > { %v929_v19 = vsub.s32 4, %v6177_v17  ;;  %v1777_v36 = vsel %vm1769_vm2, %v1760_v3, %v1776_v6  ;;  %v1780_v16 = vsel %vm1770_vm15, %v1766_v26, 1326507024  ;;  %v6309_v10 = vshll.u32 %v2673_v60, 8 }
 0x20c   : > { %v3737_v55 = vmul.f32 %v3736_v22, %v6166_v34  ;;  %v3746_v27 = vxor.u32 2147483648, %v3729_v37  ;;  %vm4714_vm3 = vcmp.lt.s32.totalorder %v4713_v56, 0  ;;  %v1779_v34 = vsel %vm1767_vm14, %v6208_v53, %v1760_v3 }
 0x20d   : > { %v914_v4 = vsel %vm4714_vm3, 0, %v4713_v56  ;;  %v1778_v33 = vsel %vm1768_vm0, %v1775_v32, %v1777_v36  ;;  %v1781_v42 = vsel %vm1769_vm2, %v1763_v45, %v1780_v16  ;;  %v930_v44 = vsel %vm807_vm13, %v929_v19, %v6177_v17 }
 0x20e   : > { %v3743_v29 = vxor.u32 2147483648, %v3737_v55  ;;  %v3747_v41 = vsel %vm3745_vm8, %v3746_v27, %v3737_v55  ;;  %v915_v52 = vsub.s32 32, %v914_v4  ;;  %v916_v50 = vshll.u32 %v6196_v14, %v914_v4 }
 0x20f   : > { %v919_v48 = vsub.s32 4294967266, %v914_v4  ;;  %v1808_v47 = vand.u32 65535, %v1778_v33  ;;  %v1809_v51 = vshrl.u32 %v1778_v33, 16  ;;  %v1782_v14 = vsel %vm1768_vm0, %v1779_v34, %v1781_v42 }
 0x210   : > { %v3744_v39 = vsel %vm3742_vm11, %v3729_v37, %v3743_v29  ;;  %v917_v54 = vshrl.u32 %v6175_v35, %v915_v52  ;;  %v1786_v0 = vand.u32 65535, %v1782_v14  ;;  %v1787_v45 = vshrl.u32 %v1782_v14, 16 }
 0x211   : > { %v3748_v28 = vsel %vm3741_vm10, %v3744_v39, %v3747_v41  ;;  %v920_v31 = vadd.s32 127, %v919_v48  ;;  %v1811_v59 = vmul.u32 %v1809_v51, %v6182_v40  ;;  %v1812_v35 = vmul.u32 %v1808_v47, %v6190_v5 }
 0x212   : > { %v3749_v20 = vsel %vm3738_vm12, nan, %v3748_v28  ;;  %v918_v25 = vor.u32 %v917_v54, %v916_v50  ;;  %v1788_v12 = vmul.u32 %v1786_v0, %v6182_v40  ;;  %v1789_v43 = vmul.u32 %v1787_v45, %v6182_v40 }
 0x213   : > { %4545 = vst [vmem:[%s5494_s4 + $0xa0] sm:$0xff] %v3749_v20  ;;  %v921_v2 = vshll.u32 %v920_v31, 23  ;;  %v1790_v61 = vmul.u32 %v1786_v0, %v6190_v5  ;;  %v1810_v37 = vmul.u32 %v1808_v47, %v6182_v40  ;;  %v932_v17 = vsel %vm6230_vm1, 0, %v930_v44 }
 0x214   : > { %v1771_v56 = vsel %vm1767_vm14, %v1751_v23, %v6201_v62  ;;  %v1814_v26 = vshll.u32 %v1811_v59, 16  ;;  %v1772_v32 = vsel %vm1770_vm15, %v1760_v3, 2102212464  ;;  %v1791_v55 = vmul.u32 %v1787_v45, %v6190_v5 }
 0x215   : > { %v922_v22 = vor.u32 4788187, %v921_v2  ;;  %v1792_v27 = vshll.u32 %v1789_v43, 16  ;;  %v1794_v6 = vshll.u32 %v1790_v61, 16  ;;  %v925_v36 = vcvt.s32.f32 %v918_v25 }
 0x216   : > { %v1813_v40 = vmul.u32 %v1809_v51, %v6190_v5  ;;  %v1816_v34 = vshll.u32 %v1812_v35, 16  ;;  %vm1818_vm4 = vc.u32 %v1810_v37, %v1814_v26  ;;  %v1820_v41 = vadd.s32 %v1814_v26, %v1810_v37 }
 0x217   : > { %v923_v19 = vand.u32 2147483647, %v922_v22  ;;  %vm1796_vm5 = vc.u32 %v1788_v12, %v1792_v27  ;;  %v1798_v29 = vadd.s32 %v1792_v27, %v1788_v12  ;;  %v1773_v62 = vsel %vm1769_vm2, %v6208_v53, %v1772_v32 }
 0x218   : > { %v1797_v3 = vsel %vm1796_vm5, 1, %v4970_v30  ;;  %v1819_v23 = vsel %vm1818_vm4, 1, %v4970_v30  ;;  %vm1822_vm7 = vc.u32 %v1820_v41, %v1816_v34  ;;  %v1793_v5 = vshrl.u32 %v1789_v43, 16 }
 0x219   : > { %v926_v4 = vmul.f32 %v925_v36, %v923_v19  ;;  %v1799_v33 = vadd.s32 %v1797_v3, %v1791_v55  ;;  %vm1800_vm6 = vc.u32 %v1798_v29, %v1794_v6  ;;  %v1821_v52 = vadd.s32 %v1819_v23, %v1813_v40 }
 0x21a   : > { %v1801_v48 = vsel %vm1800_vm6, 1, %v4970_v30  ;;  %v1823_v16 = vsel %vm1822_vm7, 1, %v4970_v30  ;;  %v1815_v42 = vshrl.u32 %v1811_v59, 16  ;;  %vm2676_vm8 = vcmp.gt.s32.totalorder %v6220_v49, 0 }
 0x21b   : > { %v927_v50 = vxor.u32 2147483648, %v926_v4  ;;  %v1803_v39 = vadd.s32 %v1801_v48, %v1799_v33  ;;  %v1825_v47 = vadd.s32 %v1823_v16, %v1821_v52  ;;  %v949_v51 = vadd.s32 3, %v932_v17 }
 0x21c   : > { %v1795_v28 = vshrl.u32 %v1790_v61, 16  ;;  %v2677_v54 = vsel %vm2676_vm8, %v6220_v49, 0  ;;  %v1817_v20 = vshrl.u32 %v1812_v35, 16  ;;  %v1774_v45 = vsel %vm1768_vm0, %v1771_v56, %v1773_v62 }
 0x21d   : > { %v928_v53 = vsel %vm807_vm13, %v927_v50, %v926_v4  ;;  %v1804_v14 = vadd.s32 %v1803_v39, %v1793_v5  ;;  %v1826_v44 = vadd.s32 %v1825_v47, %v1815_v42  ;;  %v2679_v25 = vand.u32 31, %v2677_v54 }
 0x21e   : > { %v931_v31 = vsel %vm6230_vm1, %v5934_v57, %v928_v53  ;;  %v6298_v59 = vadd.s32 %v1820_v41, %v1816_v34  ;;  %v6300_v49 = vand.u32 3, %v949_v51  ;;  %v1828_v38 = vmul.u32 %v6168_v46, %v1774_v45 }
 0x21f   : > { %v933_v0 = vmul.f32 %v931_v31, %v931_v31  ;;  %v6296_v2 = vadd.s32 %v1804_v14, %v1795_v28  ;;  %v1827_v12 = vadd.s32 %v1826_v44, %v1817_v20  ;;  %v6302_v37 = vsub.s32 32, %v2679_v25 }
 0x220   : > { %v6311_v56 = vshrl.u32 %v2677_v54, 5  ;;  %v2682_v55 = vshll.u32 %v4964_v7, %v2679_v25  ;;  %v2685_v19 = vshll.u32 %v4965_v9, %v2679_v25  ;;  %v2688_v40 = vshll.u32 %v4966_v11, %v2679_v25 }
 0x221   : > { %v934_v43 = vmul.f32 -0.001358992, %v933_v0  ;;  %v941_v61 = vmul.f32 -0.00019511016, %v933_v0  ;;  %vm1830_vm9 = vc.u32 %v6296_v2, %v6298_v59  ;;  %v1831_v35 = vadd.s32 1, %v1827_v12 }
 0x222   : > { %v2683_v26 = vshrl.u32 %v4965_v9, %v6302_v37  ;;  %v2686_v46 = vshrl.u32 %v4966_v11, %v6302_v37  ;;  %v2689_v27 = vshrl.u32 %v4967_v13, %v6302_v37  ;;  %v2691_v34 = vshll.u32 %v4967_v13, %v2679_v25 }
 0x223   : > { %v935_v22 = vadd.f32 0.041655596, %v934_v43  ;;  %v942_v17 = vadd.f32 0.008332121, %v941_v61  ;;  %v1832_v32 = vsel %vm1830_vm9, %v1831_v35, %v1827_v12  ;;  %v2692_v29 = vshrl.u32 %v4968_v15, %v6302_v37 }
 0x224   : > { %v1833_v60 = vadd.s32 %v1832_v32, %v1828_v38  ;;  %v6321_v36 = vor.u32 %v2683_v26, %v2682_v55  ;;  %v6327_v3 = vor.u32 %v2686_v46, %v2685_v19  ;;  %v2690_v23 = vor.u32 %v2689_v27, %v2688_v40  ;;  %v480_v27 = vpop.f32.mrf.mxu3 }
 0x225   : > { %v936_v6 = vmul.f32 %v935_v22, %v933_v0  ;;  %v943_v21 = vmul.f32 %v942_v17, %v933_v0  ;;  %v2693_v33 = vor.u32 %v2692_v29, %v2691_v34  ;;  %v2694_v52 = vshll.u32 %v4968_v15, %v2679_v25 }
 0x226   : > { %v1834_v62 = vadd.s32 536870912, %v1833_v60  ;;  %v2695_v50 = vshrl.u32 %v4969_v24, %v6302_v37  ;;  %vm2700_vm11 = vcmp.lt.s32.totalorder %v6311_v56, 4  ;;  %vm2697_vm10 = vcmp.lt.s32.totalorder %v6311_v56, 1 }
 0x227   : > { %v937_v41 = vadd.f32 -0.4999988, %v936_v6  ;;  %v944_v4 = vadd.f32 -0.16666654, %v943_v21  ;;  %vm2699_vm14 = vcmp.lt.s32.totalorder %v6311_v56, 3  ;;  %v2705_v28 = vsel %vm2697_vm10, %v6321_v36, %v6327_v3 }
 0x228   : > { %v6332_v16 = vshrl.u32 %v1834_v62, 30  ;;  %v2696_v39 = vor.u32 %v2695_v50, %v2694_v52  ;;  %v2706_v42 = vsel %vm2700_vm11, %v2693_v33, 920167782  ;;  %vm951_vm12 = vcmp.lt.s32.totalorder %v6300_v49, 2 }
 0x229   : > { %v938_v5 = vmul.f32 %v937_v41, %v933_v0  ;;  %v945_v48 = vmul.f32 %v944_v4, %v933_v0  ;;  %vm2698_vm13 = vcmp.lt.s32.totalorder %v6311_v56, 2  ;;  %v2707_v54 = vsel %vm2699_vm14, %v2690_v23, %v2706_v42 }
 0x22a   : > { %v1836_v51 = vshll.u32 %v6332_v16, 30  ;;  %v2710_v14 = vsel %vm2700_vm11, %v2696_v39, 1326507024  ;;  %v2709_v45 = vsel %vm2697_vm10, %v6327_v3, %v2690_v23  ;;  %vm952_vm15 = vcmp.eq.s32.totalorder %v6300_v49, 0 }
 0x22b   : > { %v939_v47 = vadd.f32 1.0, %v938_v5  ;;  %v946_v53 = vadd.f32 1.0, %v945_v48  ;;  %vm955_vm2 = vcmp.eq.s32.totalorder %v6300_v49, 2  ;;  %v2708_v25 = vsel %vm2698_vm13, %v2705_v28, %v2707_v54 }
 0x22c   : > { %v1837_v0 = vsub.s32 %v1833_v60, %v1836_v51  ;;  %v2711_v12 = vsel %vm2699_vm14, %v2693_v33, %v2710_v14  ;;  %v2715_v22 = vshrl.u32 %v6309_v10, 16  ;;  %v2738_v17 = vand.u32 65535, %v2708_v25 }
 0x22d   : > { %v947_v20 = vmul.f32 %v946_v53, %v931_v31  ;;  %v956_v44 = vxor.u32 2147483648, %v939_v47  ;;  %v2714_v31 = vand.u32 65535, %v6309_v10  ;;  %v2712_v35 = vsel %vm2698_vm13, %v2709_v45, %v2711_v12 }
 0x22e   : > { %vm1838_vm0 = vcmp.lt.s32.totalorder %v1837_v0, 0  ;;  %v1839_v61 = vsub.s32 0, %v1837_v0  ;;  %v2716_v55 = vand.u32 65535, %v2712_v35  ;;  %v2717_v46 = vshrl.u32 %v2712_v35, 16 }
 0x22f   : > { %v953_v43 = vxor.u32 2147483648, %v947_v20  ;;  %v957_v38 = vsel %vm955_vm2, %v956_v44, %v947_v20  ;;  %vm948_vm1 = vweird.f32 %v5934_v57  ;;  %v2739_v60 = vshrl.u32 %v2708_v25, 16 }
 0x230   : > { %v1840_v32 = vsel %vm1838_vm0, %v1839_v61, %v1837_v0  ;;  %v2719_v40 = vmul.u32 %v2717_v46, %v2714_v31  ;;  %v2720_v34 = vmul.u32 %v2716_v55, %v2715_v22  ;;  %v1829_v29 = vadd.s32 %v6298_v59, %v6296_v2 }
 0x231   : > { %v954_v26 = vsel %vm952_vm15, %v939_v47, %v953_v43  ;;  %v1841_v21 = vclz %v1840_v32  ;;  %v2681_v4 = vshrl.u32 %v4964_v7, %v6302_v37  ;;  %v6372_v62 = vadd.f32 %v6130_v1, %v480_v27 }
 0x232   : > { %v958_v6 = vsel %vm951_vm12, %v954_v26, %v957_v38  ;;  %v2702_v57 = vsel %vm2700_vm11, %v2690_v23, 2102212464  ;;  %v2718_v49 = vmul.u32 %v2716_v55, %v2714_v31  ;;  %v2722_v33 = vshll.u32 %v2719_v40, 16 }
 0x233   : > { %v959_v19 = vsel %vm948_vm1, nan, %v958_v6  ;;  %v4731_v41 = vadd.s32 4294967294, %v1841_v21  ;;  %v2740_v52 = vmul.u32 %v2738_v17, %v2714_v31  ;;  %v2721_v50 = vmul.u32 %v2717_v46, %v2715_v22 }
 0x234   : > { %4527 = vst [vmem:[%s5494_s4 + $0x10] sm:$0xff] %v959_v19  ;;  %v2724_v5 = vshll.u32 %v2720_v34, 16  ;;  %v2741_v48 = vmul.u32 %v2739_v60, %v2714_v31  ;;  %vm1737_vm5 = vcmp.lt.s32.totalorder %v6133_v8, 0  ;;  %vm2726_vm4 = vc.u32 %v2718_v49, %v2722_v33 }
 0x235   : > { %vm4732_vm3 = vcmp.lt.s32.totalorder %v4731_v41, 0  ;;  %v2728_v59 = vadd.s32 %v2722_v33, %v2718_v49  ;;  %v2742_v39 = vmul.u32 %v2738_v17, %v2715_v22  ;;  %v2723_v47 = vshrl.u32 %v2719_v40, 16 }
 0x236   : > { %v1844_v2 = vsel %vm4732_vm3, 0, %v4731_v41  ;;  %v2727_v53 = vsel %vm2726_vm4, 1, %v4970_v30  ;;  %v2743_v23 = vmul.u32 %v2739_v60, %v2715_v22  ;;  %v2744_v28 = vshll.u32 %v2741_v48, 16 }
 0x237   : > { %v1845_v37 = vsub.s32 32, %v1844_v2  ;;  %v1849_v42 = vsub.s32 4294967266, %v1844_v2  ;;  %v2729_v51 = vadd.s32 %v2727_v53, %v2721_v50  ;;  %vm2730_vm6 = vc.u32 %v2728_v59, %v2724_v5 }
 0x238   : > { %v1846_v54 = vshll.u32 %v1837_v0, %v1844_v2  ;;  %v2731_v44 = vsel %vm2730_vm6, 1, %v4970_v30  ;;  %v2746_v25 = vshll.u32 %v2742_v39, 16  ;;  %vm2748_vm7 = vc.u32 %v2740_v52, %v2744_v28 }
 0x239   : > { %v1847_v14 = vshrl.u32 %v1829_v29, %v1845_v37  ;;  %v1850_v20 = vadd.s32 127, %v1849_v42  ;;  %v2733_v45 = vadd.s32 %v2731_v44, %v2729_v51  ;;  %v2750_v12 = vadd.s32 %v2744_v28, %v2740_v52 }
 0x23a   : > { %v1859_v31 = vsub.s32 4, %v6332_v16  ;;  %v2749_v38 = vsel %vm2748_vm7, 1, %v4970_v30  ;;  %v2701_v35 = vsel %vm2697_vm10, %v2681_v4, %v6321_v36  ;;  %v2725_v26 = vshrl.u32 %v2720_v34, 16 }
 0x23b   : > { %v1848_v43 = vor.u32 %v1847_v14, %v1846_v54  ;;  %v1851_v61 = vshll.u32 %v1850_v20, 23  ;;  %v2734_v22 = vadd.s32 %v2733_v45, %v2723_v47  ;;  %v2751_v0 = vadd.s32 %v2749_v38, %v2743_v23 }
 0x23c   : > { %vm2752_vm8 = vc.u32 %v2750_v12, %v2746_v25  ;;  %v3750_v55 = vand.u32 2147483647, %v6372_v62  ;;  %v2703_v46 = vsel %vm2699_vm14, %v6327_v3, %v2702_v57  ;;  %v2745_v27 = vshrl.u32 %v2741_v48, 16  ;;  %v426_v3 = vpop.f32.mrf.mxu0 }
 0x23d   : > { %v1852_v17 = vor.u32 4788187, %v1851_v61  ;;  %v2753_v32 = vsel %vm2752_vm8, 1, %v4970_v30  ;;  %v3753_v21 = vand.u32 2139095040, %v6372_v62  ;;  %v1855_v19 = vcvt.s32.f32 %v1848_v43 }
 0x23e   : > { %v2755_v6 = vadd.s32 %v2753_v32, %v2751_v0  ;;  %v1860_v36 = vsel %vm1737_vm5, %v1859_v31, %v6332_v16  ;;  %v2735_v40 = vadd.s32 %v2734_v22, %v2725_v26  ;;  %v2747_v34 = vshrl.u32 %v2742_v39, 16 }
 0x23f   : > { %v1853_v60 = vand.u32 2147483647, %v1852_v17  ;;  %v3754_v41 = vshrl.u32 %v3753_v21, 23  ;;  %v3757_v4 = vand.u32 8388607, %v3750_v55  ;;  %v2754_v33 = vadd.s32 %v2750_v12, %v2746_v25 }
 0x240   : > { %v2756_v29 = vadd.s32 %v2755_v6, %v2745_v27  ;;  %vm6397_vm9 = vcmp.le.f32.partialorder %v1735_v18, 0.7853982  ;;  %v2704_v52 = vsel %vm2698_vm13, %v2701_v35, %v2703_v46  ;;  %v6406_v37 = vadd.f32 %v6130_v1, %v426_v3 }
 0x241   : > { %v1856_v49 = vmul.f32 %v1855_v19, %v1853_v60  ;;  %v4769_v50 = vadd.s32 4294967169, %v3754_v41  ;;  %v1862_v48 = vsel %vm6397_vm9, 0, %v1860_v36  ;;  %vm2760_vm11 = vc.u32 %v2735_v40, %v2754_v33 }
 0x242   : > { %v2757_v16 = vadd.s32 %v2756_v29, %v2747_v34  ;;  %v3758_v59 = vor.u32 8388608, %v3757_v4  ;;  %v2758_v42 = vmul.u32 %v6309_v10, %v2704_v52  ;;  %v1879_v51 = vadd.s32 3, %v1862_v48 }
 0x243   : > { %v1857_v5 = vxor.u32 2147483648, %v1856_v49  ;;  %v3760_v39 = vadd.s32 1, %v4769_v50  ;;  %v963_v1 = vand.u32 2139095040, %v6406_v37  ;;  %v6421_v31 = vadd.s32 %v2754_v33, %v2735_v40 }
 0x244   : > { %v2761_v2 = vadd.s32 1, %v2757_v16  ;;  %v6414_v14 = vshll.u32 %v3758_v59, 8  ;;  %v6417_v43 = vand.u32 3, %v1879_v51  ;;  %vm1878_vm2 = vweird.f32 %v6133_v8 }
 0x245   : > { %v1858_v18 = vsel %vm1737_vm5, %v1857_v5, %v1856_v49  ;;  %vm3761_vm10 = vcmp.gt.s32.totalorder %v3760_v39, 0  ;;  %v6429_v22 = vshrl.u32 %v963_v1, 23  ;;  %vm2667_vm3 = vcmp.lt.s32.totalorder %v6157_v63, 0 }
 0x246   : > { %v1861_v56 = vsel %vm6397_vm9, %v6133_v8, %v1858_v18  ;;  %v2762_v47 = vsel %vm2760_vm11, %v2761_v2, %v2757_v16  ;;  %v3762_v28 = vsel %vm3761_vm10, %v3760_v39, 0  ;;  %v6424_v38 = vand.u32 65535, %v6414_v14 }
 0x247   : > { %v1863_v53 = vmul.f32 %v1861_v56, %v1861_v56  ;;  %v2763_v23 = vadd.s32 %v2762_v47, %v2758_v42  ;;  %v3764_v54 = vand.u32 31, %v3762_v28  ;;  %v6427_v35 = vshrl.u32 %v6414_v14, 16 }
 0x248   : > { %v6432_v32 = vshrl.u32 %v3762_v28, 5  ;;  %vm1885_vm14 = vcmp.eq.s32.totalorder %v6417_v43, 2  ;;  %vm1882_vm12 = vcmp.eq.s32.totalorder %v6417_v43, 0  ;;  %vm1881_vm13 = vcmp.lt.s32.totalorder %v6417_v43, 2 }
 0x249   : > { %v1864_v20 = vmul.f32 -0.001358992, %v1863_v53  ;;  %v1871_v44 = vmul.f32 -0.00019511016, %v1863_v53  ;;  %v2764_v45 = vadd.s32 536870912, %v2763_v23  ;;  %v3765_v25 = vsub.s32 32, %v3764_v54 }
 0x24a   : > { %v3767_v46 = vshll.u32 %v4964_v7, %v3764_v54  ;;  %v3770_v34 = vshll.u32 %v4965_v9, %v3764_v54  ;;  %v3773_v29 = vshll.u32 %v4966_v11, %v3764_v54  ;;  %v3776_v41 = vshll.u32 %v4967_v13, %v3764_v54 }
 0x24b   : > { %v1865_v10 = vadd.f32 0.041655596, %v1864_v20  ;;  %v1872_v12 = vadd.f32 0.008332121, %v1871_v44  ;;  %v6419_v61 = vshrl.u32 %v2764_v45, 30  ;;  %v3768_v27 = vshrl.u32 %v4965_v9, %v3765_v25 }
 0x24c   : > { %v3771_v6 = vshrl.u32 %v4966_v11, %v3765_v25  ;;  %v3774_v21 = vshrl.u32 %v4967_v13, %v3765_v25  ;;  %v3777_v40 = vshrl.u32 %v4968_v15, %v3765_v25  ;;  %v3780_v4 = vshrl.u32 %v4969_v24, %v3765_v25 }
 0x24d   : > { %v1866_v0 = vmul.f32 %v1865_v10, %v1863_v53  ;;  %v1873_v17 = vmul.f32 %v1872_v12, %v1863_v53  ;;  %v2766_v26 = vshll.u32 %v6419_v61, 30  ;;  %v3769_v57 = vor.u32 %v3768_v27, %v3767_v46 }
 0x24e   : > { %v3772_v52 = vor.u32 %v3771_v6, %v3770_v34  ;;  %v3775_v16 = vor.u32 %v3774_v21, %v3773_v29  ;;  %v3779_v50 = vshll.u32 %v4968_v15, %v3764_v54  ;;  %v3778_v59 = vor.u32 %v3777_v40, %v3776_v41 }
 0x24f   : > { %v1867_v60 = vadd.f32 -0.4999988, %v1866_v0  ;;  %v1874_v19 = vadd.f32 -0.16666654, %v1873_v17  ;;  %v6439_v36 = vsub.s32 %v2763_v23, %v2766_v26  ;;  %v2789_v18 = vsub.s32 4, %v6419_v61 }
 0x250   : > { %v3766_v42 = vshrl.u32 %v4964_v7, %v3765_v25  ;;  %v3781_v47 = vor.u32 %v3780_v4, %v3779_v50  ;;  %vm3782_vm0 = vcmp.lt.s32.totalorder %v6432_v32, 1  ;;  %vm3783_vm1 = vcmp.lt.s32.totalorder %v6432_v32, 2 }
 0x251   : > { %v1868_v49 = vmul.f32 %v1867_v60, %v1863_v53  ;;  %v1875_v33 = vmul.f32 %v1874_v19, %v1863_v53  ;;  %vm2768_vm15 = vcmp.lt.s32.totalorder %v6439_v36, 0  ;;  %v2769_v3 = vsub.s32 0, %v6439_v36 }
 0x252   : > { %vm3784_vm5 = vcmp.lt.s32.totalorder %v6432_v32, 3  ;;  %vm3785_vm4 = vcmp.lt.s32.totalorder %v6432_v32, 4  ;;  %v3790_v28 = vsel %vm3782_vm0, %v3769_v57, %v3772_v52  ;;  %v3786_v1 = vsel %vm3782_vm0, %v3766_v42, %v3769_v57 }
 0x253   : > { %v1869_v5 = vadd.f32 1.0, %v1868_v49  ;;  %v1876_v48 = vadd.f32 1.0, %v1875_v33  ;;  %v2770_v2 = vsel %vm2768_vm15, %v2769_v3, %v6439_v36  ;;  %v3787_v20 = vsel %vm3785_vm4, %v3775_v16, 2102212464 }
 0x254   : > { %v2771_v39 = vclz %v2770_v2  ;;  %v3791_v44 = vsel %vm3785_vm4, %v3778_v59, 920167782  ;;  %v3794_v25 = vsel %vm3782_vm0, %v3772_v52, %v3775_v16  ;;  %v3795_v17 = vsel %vm3785_vm4, %v3781_v47, 1326507024 }
 0x255   : > { %v1877_v53 = vmul.f32 %v1876_v48, %v1861_v56  ;;  %v1886_v51 = vxor.u32 2147483648, %v1869_v5  ;;  %v3792_v45 = vsel %vm3784_vm5, %v3775_v16, %v3791_v44  ;;  %v3788_v6 = vsel %vm3784_vm5, %v3772_v52, %v3787_v20 }
 0x256   : > { %v4749_v23 = vadd.s32 4294967294, %v2771_v39  ;;  %v3793_v0 = vsel %vm3783_vm1, %v3790_v28, %v3792_v45  ;;  %v3796_v60 = vsel %vm3784_vm5, %v3778_v59, %v3795_v17  ;;  %v960_v8 = vand.u32 2147483647, %v6406_v37 }
 0x257   : > { %v1883_v54 = vxor.u32 2147483648, %v1877_v53  ;;  %v1887_v56 = vsel %vm1885_vm14, %v1886_v51, %v1877_v53  ;;  %v3823_v19 = vand.u32 65535, %v3793_v0  ;;  %v3824_v40 = vshrl.u32 %v3793_v0, 16 }
 0x258   : > { %vm4750_vm6 = vcmp.lt.s32.totalorder %v4749_v23, 0  ;;  %v3797_v41 = vsel %vm3783_vm1, %v3794_v25, %v3796_v60  ;;  %v4715_v16 = vadd.s32 4294967169, %v6429_v22  ;;  %vm6498_vm7 = vcmp.le.f32.partialorder %v2665_v58, 0.7853982 }
 0x259   : > { %v1884_v10 = vsel %vm1882_vm12, %v1869_v5, %v1883_v54  ;;  %v2774_v12 = vsel %vm4750_vm6, 0, %v4749_v23  ;;  %v3801_v4 = vand.u32 65535, %v3797_v41  ;;  %v3802_v49 = vshrl.u32 %v3797_v41, 16 }
 0x25a   : > { %v1888_v26 = vsel %vm1881_vm13, %v1884_v10, %v1887_v56  ;;  %v2775_v46 = vsub.s32 32, %v2774_v12  ;;  %v2779_v27 = vsub.s32 4294967266, %v2774_v12  ;;  %v2776_v34 = vshll.u32 %v6439_v36, %v2774_v12 }
 0x25b   : > { %v1889_v21 = vsel %vm1878_vm2, nan, %v1888_v26  ;;  %v3826_v33 = vmul.u32 %v3824_v40, %v6424_v38  ;;  %v3827_v52 = vmul.u32 %v3823_v19, %v6427_v35  ;;  %v6492_v36 = vsel %vm3783_vm1, %v3786_v1, %v3788_v6 }
 0x25c   : > { %4533 = vst [vmem:[%s5494_s4 + $0x40] sm:$0xff] %v1889_v21  ;;  %v2777_v29 = vshrl.u32 %v6421_v31, %v2775_v46  ;;  %v2780_v43 = vadd.s32 127, %v2779_v27  ;;  %v6488_v31 = vsel %vm2667_vm3, %v2789_v18, %v6419_v61  ;;  %v3804_v50 = vmul.u32 %v3802_v49, %v6424_v38 }
 0x25d   : > { %v3805_v5 = vmul.u32 %v3801_v4, %v6427_v35  ;;  %v3825_v2 = vmul.u32 %v3823_v19, %v6424_v38  ;;  %v3828_v61 = vmul.u32 %v3824_v40, %v6427_v35  ;;  %v3829_v59 = vshll.u32 %v3826_v33, 16 }
 0x25e   : > { %v2778_v3 = vor.u32 %v2777_v29, %v2776_v34  ;;  %v2781_v57 = vshll.u32 %v2780_v43, 23  ;;  %v3803_v32 = vmul.u32 %v3801_v4, %v6424_v38  ;;  %v3806_v18 = vmul.u32 %v3802_v49, %v6427_v35 }
 0x25f   : > { %v3807_v42 = vshll.u32 %v3804_v50, 16  ;;  %v3809_v53 = vshll.u32 %v3805_v5, 16  ;;  %v3831_v51 = vshll.u32 %v3827_v52, 16  ;;  %vm3833_vm8 = vc.u32 %v3825_v2, %v3829_v59 }
 0x260   : > { %v2782_v22 = vor.u32 4788187, %v2781_v57  ;;  %v2785_v39 = vcvt.s32.f32 %v2778_v3  ;;  %v3834_v23 = vsel %vm3833_vm8, 1, %v4970_v30  ;;  %v3835_v28 = vadd.s32 %v3829_v59, %v3825_v2 }
 0x261   : > { %vm3811_vm9 = vc.u32 %v3803_v32, %v3807_v42  ;;  %v3813_v58 = vadd.s32 %v3807_v42, %v3803_v32  ;;  %v3836_v20 = vadd.s32 %v3834_v23, %v3828_v61  ;;  %v970_v44 = vadd.s32 1, %v4715_v16 }
 0x262   : > { %v2783_v47 = vand.u32 2147483647, %v2782_v22  ;;  %v3812_v1 = vsel %vm3811_vm9, 1, %v4970_v30  ;;  %v3830_v38 = vshrl.u32 %v3826_v33, 16  ;;  %vm3837_vm10 = vc.u32 %v3835_v28, %v3831_v51 }
 0x263   : > { %v3814_v56 = vadd.s32 %v3812_v1, %v3806_v18  ;;  %vm3815_vm11 = vc.u32 %v3813_v58, %v3809_v53  ;;  %v3838_v25 = vsel %vm3837_vm10, 1, %v4970_v30  ;;  %vm971_vm14 = vcmp.gt.s32.totalorder %v970_v44, 0 }
 0x264   : > { %v2786_v54 = vmul.f32 %v2785_v39, %v2783_v47  ;;  %v3816_v45 = vsel %vm3815_vm11, 1, %v4970_v30  ;;  %v3808_v10 = vshrl.u32 %v3804_v50, 16  ;;  %v3840_v0 = vadd.s32 %v3838_v25, %v3836_v20 }
 0x265   : > { %v3818_v12 = vadd.s32 %v3816_v45, %v3814_v56  ;;  %v972_v17 = vsel %vm971_vm14, %v970_v44, 0  ;;  %v3810_v46 = vshrl.u32 %v3805_v5, 16  ;;  %v967_v27 = vand.u32 8388607, %v960_v8 }
 0x266   : > { %v2787_v35 = vxor.u32 2147483648, %v2786_v54  ;;  %v974_v6 = vand.u32 31, %v972_v17  ;;  %v3832_v19 = vshrl.u32 %v3827_v52, 16  ;;  %v3841_v40 = vadd.s32 %v3840_v0, %v3830_v38 }
 0x267   : > { %v3819_v60 = vadd.s32 %v3818_v12, %v3808_v10  ;;  %v2792_v34 = vsel %vm6498_vm7, 0, %v6488_v31  ;;  %v3843_v43 = vmul.u32 %v6414_v14, %v6492_v36  ;;  %v6526_v49 = vadd.s32 %v3835_v28, %v3831_v51 }
 0x268   : > { %v2788_v26 = vsel %vm2667_vm3, %v2787_v35, %v2786_v54  ;;  %v6522_v41 = vsub.s32 32, %v974_v6  ;;  %v3842_v33 = vadd.s32 %v3841_v40, %v3832_v19  ;;  %v6528_v3 = vshrl.u32 %v972_v17, 5 }
 0x269   : > { %v2791_v21 = vsel %vm6498_vm7, %v6157_v63, %v2788_v26  ;;  %v6524_v4 = vadd.s32 %v3819_v60, %v3810_v46  ;;  %v977_v16 = vshll.u32 %v4964_v7, %v974_v6  ;;  %v980_v50 = vshll.u32 %v4965_v9, %v974_v6 }
 0x26a   : > { %v2793_v29 = vmul.f32 %v2791_v21, %v2791_v21  ;;  %v3846_v31 = vadd.s32 1, %v3842_v33  ;;  %v981_v14 = vshrl.u32 %v4966_v11, %v6522_v41  ;;  %v986_v36 = vshll.u32 %v4967_v13, %v974_v6 }
 0x26b   : > { %vm3845_vm12 = vc.u32 %v6524_v4, %v6526_v49  ;;  %v983_v22 = vshll.u32 %v4966_v11, %v974_v6  ;;  %v984_v2 = vshrl.u32 %v4967_v13, %v6522_v41  ;;  %v978_v59 = vshrl.u32 %v4965_v9, %v6522_v41 }
 0x26c   : > { %v2794_v57 = vmul.f32 -0.001358992, %v2793_v29  ;;  %v2801_v52 = vmul.f32 -0.00019511016, %v2793_v29  ;;  %v3847_v61 = vsel %vm3845_vm12, %v3846_v31, %v3842_v33  ;;  %v987_v39 = vshrl.u32 %v4968_v15, %v6522_v41 }
 0x26d   : > { %v989_v32 = vshll.u32 %v4968_v15, %v974_v6  ;;  %v3848_v47 = vadd.s32 %v3847_v61, %v3843_v43  ;;  %v968_v53 = vor.u32 8388608, %v967_v27  ;;  %v2809_v51 = vadd.s32 3, %v2792_v34 }
 0x26e   : > { %v2795_v5 = vadd.f32 0.041655596, %v2794_v57  ;;  %v2802_v48 = vadd.f32 0.008332121, %v2801_v52  ;;  %v6545_v58 = vor.u32 %v981_v14, %v980_v50  ;;  %v988_v23 = vor.u32 %v987_v39, %v986_v36  ;;  %v444_v39 = vpop.f32.mrf.mxu1 }
 0x26f   : > { %v990_v28 = vshrl.u32 %v4969_v24, %v6522_v41  ;;  %v3849_v20 = vadd.s32 536870912, %v3848_v47  ;;  %v985_v44 = vor.u32 %v984_v2, %v983_v22  ;;  %v6549_v56 = vor.u32 %v978_v59, %v977_v16 }
 0x270   : > { %v2796_v18 = vmul.f32 %v2795_v5, %v2793_v29  ;;  %v2803_v42 = vmul.f32 %v2802_v48, %v2793_v29  ;;  %vm992_vm13 = vcmp.lt.s32.totalorder %v6528_v3, 1  ;;  %vm995_vm15 = vcmp.lt.s32.totalorder %v6528_v3, 4 }
 0x271   : > { %v991_v38 = vor.u32 %v990_v28, %v989_v32  ;;  %v6553_v25 = vshrl.u32 %v3849_v20, 30  ;;  %vm994_vm2 = vcmp.lt.s32.totalorder %v6528_v3, 3  ;;  %vm993_vm0 = vcmp.lt.s32.totalorder %v6528_v3, 2  ;;  %v6592_v20 = vld [vmem:[%s5072_s18] ss:$0 sm:$0xff] }
 0x272   : > { %v2797_v54 = vadd.f32 -0.4999988, %v2796_v18  ;;  %v2804_v1 = vadd.f32 -0.16666654, %v2803_v42  ;;  %v1001_v10 = vsel %vm995_vm15, %v988_v23, 920167782  ;;  %v1004_v27 = vsel %vm992_vm13, %v6545_v58, %v985_v44 }
 0x273   : > { %v1005_v12 = vsel %vm995_vm15, %v991_v38, 1326507024  ;;  %v6561_v0 = vshll.u32 %v968_v53, 8  ;;  %v3851_v46 = vshll.u32 %v6553_v25, 30  ;;  %v2810_v6 = vand.u32 3, %v2809_v51 }
 0x274   : > { %v2798_v35 = vmul.f32 %v2797_v54, %v2793_v29  ;;  %v2805_v45 = vmul.f32 %v2804_v1, %v2793_v29  ;;  %v1000_v60 = vsel %vm992_vm13, %v6549_v56, %v6545_v58  ;;  %v1002_v19 = vsel %vm994_vm2, %v985_v44, %v1001_v10 }
 0x275   : > { %v1006_v40 = vsel %vm994_vm2, %v988_v23, %v1005_v12  ;;  %v3852_v43 = vsub.s32 %v3848_v47, %v3851_v46  ;;  %vm2808_vm1 = vweird.f32 %v6157_v63  ;;  %v1009_v57 = vand.u32 65535, %v6561_v0 }
 0x276   : > { %v2799_v17 = vadd.f32 1.0, %v2798_v35  ;;  %v2806_v26 = vadd.f32 1.0, %v2805_v45  ;;  %v1007_v33 = vsel %vm993_vm0, %v1004_v27, %v1006_v40  ;;  %v1010_v52 = vshrl.u32 %v6561_v0, 16 }
 0x277   : > { %vm3853_vm3 = vcmp.lt.s32.totalorder %v3852_v43, 0  ;;  %v3854_v50 = vsub.s32 0, %v3852_v43  ;;  %v1003_v31 = vsel %vm993_vm0, %v1000_v60, %v1002_v19  ;;  %vm2812_vm5 = vcmp.eq.s32.totalorder %v2810_v6, 0 }
 0x278   : > { %v2807_v34 = vmul.f32 %v2806_v26, %v2791_v21  ;;  %v2816_v29 = vxor.u32 2147483648, %v2799_v17  ;;  %vm2815_vm4 = vcmp.eq.s32.totalorder %v2810_v6, 2  ;;  %v1011_v21 = vand.u32 65535, %v1007_v33 }
 0x279   : > { %v1012_v14 = vshrl.u32 %v1007_v33, 16  ;;  %vm2811_vm6 = vcmp.lt.s32.totalorder %v2810_v6, 2  ;;  %v3855_v48 = vsel %vm3853_vm3, %v3854_v50, %v3852_v43  ;;  %v1033_v61 = vand.u32 65535, %v1003_v31 }
 0x27a   : > { %v2813_v16 = vxor.u32 2147483648, %v2807_v34  ;;  %v2817_v5 = vsel %vm2815_vm4, %v2816_v29, %v2807_v34  ;;  %v3856_v2 = vclz %v3855_v48  ;;  %v1034_v59 = vshrl.u32 %v1003_v31, 16 }
 0x27b   : > { %v1013_v18 = vmul.u32 %v1011_v21, %v1009_v57  ;;  %v1014_v42 = vmul.u32 %v1012_v14, %v1009_v57  ;;  %v1015_v47 = vmul.u32 %v1011_v21, %v1010_v52  ;;  %v3844_v53 = vadd.s32 %v6526_v49, %v6524_v4 }
 0x27c   : > { %v2814_v36 = vsel %vm2812_vm5, %v2799_v17, %v2813_v16  ;;  %v4770_v51 = vadd.s32 4294967294, %v3856_v2  ;;  %v976_v23 = vshrl.u32 %v4964_v7, %v6522_v41  ;;  %v997_v28 = vsel %vm995_vm15, %v985_v44, 2102212464 }
 0x27d   : > { %v2818_v22 = vsel %vm2811_vm6, %v2814_v36, %v2817_v5  ;;  %v1017_v54 = vshll.u32 %v1014_v42, 16  ;;  %v1019_v1 = vshll.u32 %v1015_v47, 16  ;;  %v6595_v63 = vadd.f32 %v6592_v20, %v444_v39 }
 0x27e   : > { %v2819_v32 = vsel %vm2808_vm1, nan, %v2818_v22  ;;  %vm4771_vm7 = vcmp.lt.s32.totalorder %v4770_v51, 0  ;;  %v1016_v38 = vmul.u32 %v1012_v14, %v1010_v52  ;;  %v1036_v35 = vmul.u32 %v1034_v59, %v1009_v57 }
 0x27f   : > { %4539 = vst [vmem:[%s5494_s4 + $0x70] sm:$0xff] %v2819_v32  ;;  %v1037_v45 = vmul.u32 %v1033_v61, %v1010_v52  ;;  %vm3752_vm8 = vcmp.lt.s32.totalorder %v6372_v62, 0  ;;  %v3859_v4 = vsel %vm4771_vm7, 0, %v4770_v51  ;;  %vm1021_vm9 = vc.u32 %v1013_v18, %v1017_v54 }
 0x280   : > { %v1023_v49 = vadd.s32 %v1017_v54, %v1013_v18  ;;  %v1035_v41 = vmul.u32 %v1033_v61, %v1009_v57  ;;  %v3860_v10 = vsub.s32 32, %v3859_v4  ;;  %v3864_v12 = vsub.s32 4294967266, %v3859_v4 }
 0x281   : > { %v1018_v44 = vshrl.u32 %v1014_v42, 16  ;;  %v1022_v17 = vsel %vm1021_vm9, 1, %v4970_v30  ;;  %v3861_v26 = vshll.u32 %v3852_v43, %v3859_v4  ;;  %v1039_v27 = vshll.u32 %v1036_v35, 16 }
 0x282   : > { %v1024_v46 = vadd.s32 %v1022_v17, %v1016_v38  ;;  %vm1025_vm11 = vc.u32 %v1023_v49, %v1019_v1  ;;  %v3862_v6 = vshrl.u32 %v3844_v53, %v3860_v10  ;;  %v3865_v60 = vadd.s32 127, %v3864_v12 }
 0x283   : > { %v1026_v19 = vsel %vm1025_vm11, 1, %v4970_v30  ;;  %v1041_v40 = vshll.u32 %v1037_v45, 16  ;;  %v1038_v29 = vmul.u32 %v1034_v59, %v1010_v52  ;;  %vm1043_vm10 = vc.u32 %v1035_v41, %v1039_v27 }
 0x284   : > { %v1028_v34 = vadd.s32 %v1026_v19, %v1024_v46  ;;  %v1045_v33 = vadd.s32 %v1039_v27, %v1035_v41  ;;  %v3863_v16 = vor.u32 %v3862_v6, %v3861_v26  ;;  %v3866_v57 = vshll.u32 %v3865_v60, 23 }
 0x285   : > { %v3874_v50 = vsub.s32 4, %v6553_v25  ;;  %v1044_v31 = vsel %vm1043_vm10, 1, %v4970_v30  ;;  %v1890_v14 = vand.u32 2147483647, %v6595_v63  ;;  %v996_v5 = vsel %vm992_vm13, %v976_v23, %v6549_v56 }
 0x286   : > { %v1029_v21 = vadd.s32 %v1028_v34, %v1018_v44  ;;  %v1046_v43 = vadd.s32 %v1044_v31, %v1038_v29  ;;  %vm1047_vm14 = vc.u32 %v1045_v33, %v1041_v40  ;;  %v3867_v36 = vor.u32 4788187, %v3866_v57 }
 0x287   : > { %v1020_v48 = vshrl.u32 %v1015_v47, 16  ;;  %v1048_v52 = vsel %vm1047_vm14, 1, %v4970_v30  ;;  %v998_v22 = vsel %vm994_vm2, %v6545_v58, %v997_v28  ;;  %v1040_v2 = vshrl.u32 %v1036_v35, 16  ;;  %v462_v58 = vpop.f32.mrf.mxu2 }
 0x288   : > { %v1050_v61 = vadd.s32 %v1048_v52, %v1046_v43  ;;  %v1893_v59 = vand.u32 2139095040, %v6595_v63  ;;  %v3868_v39 = vand.u32 2147483647, %v3867_v36  ;;  %v3870_v32 = vcvt.s32.f32 %v3863_v16 }
 0x289   : > { %v3875_v18 = vsel %vm3752_vm8, %v3874_v50, %v6553_v25  ;;  %v1030_v42 = vadd.s32 %v1029_v21, %v1020_v48  ;;  %v1042_v53 = vshrl.u32 %v1037_v45, 16  ;;  %v1897_v51 = vand.u32 8388607, %v1890_v14 }
 0x28a   : > { %v1051_v56 = vadd.s32 %v1050_v61, %v1040_v2  ;;  %v1894_v47 = vshrl.u32 %v1893_v59, 23  ;;  %v3871_v23 = vmul.f32 %v3870_v32, %v3868_v39  ;;  %v1049_v54 = vadd.s32 %v1045_v33, %v1041_v40 }
 0x28b   : > { %vm3751_vm12 = vcmp.le.f32.partialorder %v3750_v55, 0.7853982  ;;  %v999_v28 = vsel %vm993_vm0, %v996_v5, %v998_v22  ;;  %v1898_v4 = vor.u32 8388608, %v1897_v51  ;;  %v6621_v41 = vadd.f32 %v6592_v20, %v462_v58 }
 0x28c   : > { %v1052_v1 = vadd.s32 %v1051_v56, %v1042_v53  ;;  %v4733_v38 = vadd.s32 4294967169, %v1894_v47  ;;  %v3872_v35 = vxor.u32 2147483648, %v3871_v23  ;;  %v3877_v25 = vsel %vm3751_vm12, 0, %v3875_v18 }
 0x28d   : > { %vm1055_vm13 = vc.u32 %v1030_v42, %v1049_v54  ;;  %v1053_v12 = vmul.u32 %v6561_v0, %v999_v28  ;;  %v3894_v3 = vadd.s32 3, %v3877_v25  ;;  %v6627_v6 = vshll.u32 %v1898_v4, 8 }
 0x28e   : > { %v1056_v45 = vadd.s32 1, %v1052_v1  ;;  %v1900_v49 = vadd.s32 1, %v4733_v38  ;;  %v3873_v10 = vsel %vm3752_vm8, %v3872_v35, %v3871_v23  ;;  %v2823_v60 = vand.u32 2139095040, %v6621_v41 }
 0x28f   : > { %v3876_v55 = vsel %vm3751_vm12, %v6372_v62, %v3873_v10  ;;  %v6630_v29 = vand.u32 3, %v3894_v3  ;;  %v6632_v57 = vadd.s32 %v1049_v54, %v1030_v42  ;;  %v6638_v21 = vand.u32 65535, %v6627_v6 }
 0x290   : > { %v1057_v44 = vsel %vm1055_vm13, %v1056_v45, %v1052_v1  ;;  %vm1901_vm15 = vcmp.gt.s32.totalorder %v1900_v49, 0  ;;  %v3878_v17 = vmul.f32 %v3876_v55, %v3876_v55  ;;  %v2820_v43 = vand.u32 2147483647, %v6621_v41 }
 0x291   : > { %v1058_v26 = vadd.s32 %v1057_v44, %v1053_v12  ;;  %v1902_v46 = vsel %vm1901_vm15, %v1900_v49, 0  ;;  %v2824_v36 = vshrl.u32 %v2823_v60, 23  ;;  %vm3900_vm2 = vcmp.eq.s32.totalorder %v6630_v29, 2 }
 0x292   : > { %v1904_v27 = vand.u32 31, %v1902_v46  ;;  %v3879_v19 = vmul.f32 -0.001358992, %v3878_v17  ;;  %v3886_v40 = vmul.f32 -0.00019511016, %v3878_v17  ;;  %v6650_v53 = vshrl.u32 %v1902_v46, 5 }
 0x293   : > { %v1059_v34 = vadd.s32 536870912, %v1058_v26  ;;  %vm3897_vm0 = vcmp.eq.s32.totalorder %v6630_v29, 0  ;;  %vm3896_vm1 = vcmp.lt.s32.totalorder %v6630_v29, 2  ;;  %vm962_vm3 = vcmp.lt.s32.totalorder %v6406_v37, 0 }
 0x294   : > { %v1905_v33 = vsub.s32 32, %v1904_v27  ;;  %v3880_v0 = vadd.f32 0.041655596, %v3879_v19  ;;  %v3887_v16 = vadd.f32 0.008332121, %v3886_v40  ;;  %v1907_v31 = vshll.u32 %v4964_v7, %v1904_v27 }
 0x295   : > { %v6634_v50 = vshrl.u32 %v1059_v34, 30  ;;  %v1910_v22 = vshll.u32 %v4965_v9, %v1904_v27  ;;  %v1916_v59 = vshll.u32 %v4967_v13, %v1904_v27  ;;  %v1913_v56 = vshll.u32 %v4966_v11, %v1904_v27 }
 0x296   : > { %v3881_v5 = vmul.f32 %v3880_v0, %v3878_v17  ;;  %v3888_v48 = vmul.f32 %v3887_v16, %v3878_v17  ;;  %v1908_v2 = vshrl.u32 %v4965_v9, %v1905_v33  ;;  %v1911_v61 = vshrl.u32 %v4966_v11, %v1905_v33 }
 0x297   : > { %v1061_v52 = vshll.u32 %v6634_v50, 30  ;;  %v1917_v39 = vshrl.u32 %v4968_v15, %v1905_v33  ;;  %v1914_v47 = vshrl.u32 %v4967_v13, %v1905_v33  ;;  %v1919_v51 = vshll.u32 %v4968_v15, %v1904_v27 }
 0x298   : > { %v3882_v32 = vadd.f32 -0.4999988, %v3881_v5  ;;  %v3889_v18 = vadd.f32 -0.16666654, %v3888_v48  ;;  %v1920_v23 = vshrl.u32 %v4969_v24, %v1905_v33  ;;  %vm3893_vm4 = vweird.f32 %v6372_v62 }
 0x299   : > { %v6648_v42 = vsub.s32 %v1058_v26, %v1061_v52  ;;  %v1909_v1 = vor.u32 %v1908_v2, %v1907_v31  ;;  %v1912_v38 = vor.u32 %v1911_v61, %v1910_v22  ;;  %v1918_v35 = vor.u32 %v1917_v39, %v1916_v59 }
 0x29a   : > { %v3883_v54 = vmul.f32 %v3882_v32, %v3878_v17  ;;  %v3890_v58 = vmul.f32 %v3889_v18, %v3878_v17  ;;  %v4751_v25 = vadd.s32 4294967169, %v2824_v36  ;;  %vm1922_vm6 = vcmp.lt.s32.totalorder %v6650_v53, 1 }
 0x29b   : > { %vm1063_vm5 = vcmp.lt.s32.totalorder %v6648_v42, 0  ;;  %v1064_v28 = vsub.s32 0, %v6648_v42  ;;  %v1915_v12 = vor.u32 %v1914_v47, %v1913_v56  ;;  %vm1925_vm7 = vcmp.lt.s32.totalorder %v6650_v53, 4 }
 0x29c   : > { %v3884_v45 = vadd.f32 1.0, %v3883_v54  ;;  %v3891_v4 = vadd.f32 1.0, %v3890_v58  ;;  %v1940_v3 = vshrl.u32 %v6627_v6, 16  ;;  %v1921_v26 = vor.u32 %v1920_v23, %v1919_v51 }
 0x29d   : > { %v1065_v49 = vsel %vm1063_vm5, %v1064_v28, %v6648_v42  ;;  %vm1924_vm8 = vcmp.lt.s32.totalorder %v6650_v53, 3  ;;  %vm6669_vm9 = vcmp.le.f32.partialorder %v960_v8, 0.7853982  ;;  %v1084_v60 = vsub.s32 4, %v6634_v50 }
 0x29e   : > { %v1066_v10 = vclz %v1065_v49  ;;  %v3892_v44 = vmul.f32 %v3891_v4, %v3876_v55  ;;  %v3901_v17 = vxor.u32 2147483648, %v3884_v45  ;;  %vm1923_vm11 = vcmp.lt.s32.totalorder %v6650_v53, 2 }
 0x29f   : > { %v1930_v19 = vsel %vm1922_vm6, %v1909_v1, %v1912_v38  ;;  %v1906_v55 = vshrl.u32 %v4964_v7, %v1905_v33  ;;  %v1931_v34 = vsel %vm1925_vm7, %v1918_v35, 920167782  ;;  %v2830_v0 = vadd.s32 1, %v4751_v25 }
 0x2a0   : > { %v4716_v27 = vadd.s32 4294967294, %v1066_v10  ;;  %v3898_v40 = vxor.u32 2147483648, %v3892_v44  ;;  %v3902_v8 = vsel %vm3900_vm2, %v3901_v17, %v3892_v44  ;;  %v1932_v16 = vsel %vm1924_vm8, %v1915_v12, %v1931_v34 }
 0x2a1   : > { %v1934_v31 = vsel %vm1922_vm6, %v1912_v38, %v1915_v12  ;;  %v1933_v33 = vsel %vm1923_vm11, %v1930_v19, %v1932_v16  ;;  %v1935_v48 = vsel %vm1925_vm7, %v1921_v26, 1326507024  ;;  %v6697_v61 = vsel %vm962_vm3, %v1084_v60, %v6634_v50 }
 0x2a2   : > { %vm4717_vm10 = vcmp.lt.s32.totalorder %v4716_v27, 0  ;;  %v3899_v36 = vsel %vm3897_vm0, %v3884_v45, %v3898_v40  ;;  %v1936_v39 = vsel %vm1924_vm8, %v1918_v35, %v1935_v48  ;;  %v1963_v32 = vand.u32 65535, %v1933_v33 }
 0x2a3   : > { %v1069_v5 = vsel %vm4717_vm10, 0, %v4716_v27  ;;  %v3903_v52 = vsel %vm3896_vm1, %v3899_v36, %v3902_v8  ;;  %v1964_v18 = vshrl.u32 %v1933_v33, 16  ;;  %v1937_v51 = vsel %vm1923_vm11, %v1934_v31, %v1936_v39 }
 0x2a4   : > { %v1070_v22 = vsub.s32 32, %v1069_v5  ;;  %v1074_v2 = vsub.s32 4294967266, %v1069_v5  ;;  %v3904_v59 = vsel %vm3893_vm4, nan, %v3903_v52  ;;  %v1071_v56 = vshll.u32 %v6648_v42, %v1069_v5 }
 0x2a5   : > { %4546 = vst [vmem:[%s5494_s4 + $0xa8] sm:$0xff] %v3904_v59  ;;  %v1927_v50 = vsel %vm1925_vm7, %v1915_v12, 2102212464  ;;  %v1941_v23 = vand.u32 65535, %v1937_v51  ;;  %v1942_v62 = vshrl.u32 %v1937_v51, 16  ;;  %v1966_v54 = vmul.u32 %v1964_v18, %v6638_v21 }
 0x2a6   : > { %v1072_v29 = vshrl.u32 %v6632_v57, %v1070_v22  ;;  %v1075_v47 = vadd.s32 127, %v1074_v2  ;;  %v1965_v35 = vmul.u32 %v1963_v32, %v6638_v21  ;;  %v1967_v25 = vmul.u32 %v1963_v32, %v1940_v3 }
 0x2a7   : > { %v1087_v57 = vsel %vm6669_vm9, 0, %v6697_v61  ;;  %v1943_v42 = vmul.u32 %v1941_v23, %v6638_v21  ;;  %v1944_v45 = vmul.u32 %v1942_v62, %v6638_v21  ;;  %v1945_v4 = vmul.u32 %v1941_v23, %v1940_v3 }
 0x2a8   : > { %v1073_v58 = vor.u32 %v1072_v29, %v1071_v56  ;;  %v1076_v28 = vshll.u32 %v1075_v47, 23  ;;  %v1926_v10 = vsel %vm1922_vm6, %v1906_v55, %v1909_v1  ;;  %v1928_v12 = vsel %vm1924_vm8, %v1912_v38, %v1927_v50 }
 0x2a9   : > { %v1969_v44 = vshll.u32 %v1966_v54, 16  ;;  %v1946_v17 = vmul.u32 %v1942_v62, %v1940_v3  ;;  %v1947_v26 = vshll.u32 %v1944_v45, 16  ;;  %v1949_v27 = vshll.u32 %v1945_v4, 16 }
 0x2aa   : > { %v1077_v49 = vor.u32 4788187, %v1076_v28  ;;  %v1968_v60 = vmul.u32 %v1964_v18, %v1940_v3  ;;  %v1080_v40 = vcvt.s32.f32 %v1073_v58  ;;  %v1971_v34 = vshll.u32 %v1967_v25, 16 }
 0x2ab   : > { %vm1973_vm14 = vc.u32 %v1965_v35, %v1969_v44  ;;  %vm1951_vm12 = vc.u32 %v1943_v42, %v1947_v26  ;;  %v1953_v8 = vadd.s32 %v1947_v26, %v1943_v42  ;;  %v1975_v16 = vadd.s32 %v1969_v44, %v1965_v35 }
 0x2ac   : > { %v1078_v19 = vand.u32 2147483647, %v1077_v49  ;;  %v1974_v21 = vsel %vm1973_vm14, 1, %v4970_v30  ;;  %v1952_v1 = vsel %vm1951_vm12, 1, %v4970_v30  ;;  %vm2831_vm13 = vcmp.gt.s32.totalorder %v2830_v0, 0 }
 0x2ad   : > { %v1976_v55 = vadd.s32 %v1974_v21, %v1968_v60  ;;  %v1954_v38 = vadd.s32 %v1952_v1, %v1946_v17  ;;  %vm1955_vm15 = vc.u32 %v1953_v8, %v1949_v27  ;;  %v1970_v36 = vshrl.u32 %v1966_v54, 16 }
 0x2ae   : > { %v1081_v31 = vmul.f32 %v1080_v40, %v1078_v19  ;;  %vm1977_vm2 = vc.u32 %v1975_v16, %v1971_v34  ;;  %v1956_v3 = vsel %vm1955_vm15, 1, %v4970_v30  ;;  %v2832_v48 = vsel %vm2831_vm13, %v2830_v0, 0 }
 0x2af   : > { %v1978_v33 = vsel %vm1977_vm2, 1, %v4970_v30  ;;  %v1948_v52 = vshrl.u32 %v1944_v45, 16  ;;  %v1958_v22 = vadd.s32 %v1956_v3, %v1954_v38  ;;  %v2834_v61 = vand.u32 31, %v2832_v48 }
 0x2b0   : > { %v1082_v5 = vxor.u32 2147483648, %v1081_v31  ;;  %v1980_v2 = vadd.s32 %v1978_v33, %v1976_v55  ;;  %v1929_v39 = vsel %vm1923_vm11, %v1926_v10, %v1928_v12  ;;  %v1950_v32 = vshrl.u32 %v1945_v4, 16 }
 0x2b1   : > { %v1972_v18 = vshrl.u32 %v1967_v25, 16  ;;  %v1959_v29 = vadd.s32 %v1958_v22, %v1948_v52  ;;  %v6732_v51 = vsub.s32 32, %v2834_v61  ;;  %v1104_v50 = vadd.s32 3, %v1087_v57 }
 0x2b2   : > { %v1083_v59 = vsel %vm962_vm3, %v1082_v5, %v1081_v31  ;;  %v1981_v47 = vadd.s32 %v1980_v2, %v1970_v36  ;;  %v2827_v23 = vand.u32 8388607, %v2820_v43  ;;  %v6738_v54 = vadd.s32 %v1975_v16, %v1971_v34 }
 0x2b3   : > { %v1086_v56 = vsel %vm6669_vm9, %v6406_v37, %v1083_v59  ;;  %v6736_v62 = vadd.s32 %v1959_v29, %v1950_v32  ;;  %v1983_v58 = vmul.u32 %v6627_v6, %v1929_v39  ;;  %v6741_v46 = vshrl.u32 %v2832_v48, 5 }
 0x2b4   : > { %v1088_v0 = vmul.f32 %v1086_v56, %v1086_v56  ;;  %v1982_v53 = vadd.s32 %v1981_v47, %v1972_v18  ;;  %v2840_v25 = vshll.u32 %v4965_v9, %v2834_v61  ;;  %v2841_v42 = vshrl.u32 %v4966_v11, %v6732_v51 }
 0x2b5   : > { %vm1985_vm0 = vc.u32 %v6736_v62, %v6738_v54  ;;  %v2844_v45 = vshrl.u32 %v4967_v13, %v6732_v51  ;;  %v2838_v6 = vshrl.u32 %v4965_v9, %v6732_v51  ;;  %v2843_v10 = vshll.u32 %v4966_v11, %v2834_v61 }
 0x2b6   : > { %v1089_v28 = vmul.f32 -0.001358992, %v1088_v0  ;;  %v1096_v35 = vmul.f32 -0.00019511016, %v1088_v0  ;;  %v1986_v57 = vadd.s32 1, %v1982_v53  ;;  %v2846_v44 = vshll.u32 %v4967_v13, %v2834_v61 }
 0x2b7   : > { %v2847_v17 = vshrl.u32 %v4968_v15, %v6732_v51  ;;  %v2849_v26 = vshll.u32 %v4968_v15, %v2834_v61  ;;  %v2850_v40 = vshrl.u32 %v4969_v24, %v6732_v51  ;;  %v2837_v34 = vshll.u32 %v4964_v7, %v2834_v61 }
 0x2b8   : > { %v1090_v4 = vadd.f32 0.041655596, %v1089_v28  ;;  %v1097_v49 = vadd.f32 0.008332121, %v1096_v35  ;;  %v1987_v12 = vsel %vm1985_vm0, %v1986_v57, %v1982_v53  ;;  %v6760_v8 = vor.u32 %v2841_v42, %v2840_v25  ;;  %v483_v57 = vpop.f32.mrf.mxu3 }
 0x2b9   : > { %v1988_v19 = vadd.s32 %v1987_v12, %v1983_v58  ;;  %v2845_v21 = vor.u32 %v2844_v45, %v2843_v10  ;;  %v2848_v16 = vor.u32 %v2847_v17, %v2846_v44  ;;  %v2851_v38 = vor.u32 %v2850_v40, %v2849_v26 }
 0x2ba   : > { %v1091_v27 = vmul.f32 %v1090_v4, %v1088_v0  ;;  %v1098_v60 = vmul.f32 %v1097_v49, %v1088_v0  ;;  %v1105_v36 = vand.u32 3, %v1104_v50  ;;  %v2828_v5 = vor.u32 8388608, %v2827_v23 }
 0x2bb   : > { %v1989_v55 = vadd.s32 536870912, %v1988_v19  ;;  %v6762_v3 = vor.u32 %v2838_v6, %v2837_v34  ;;  %vm2855_vm1 = vcmp.lt.s32.totalorder %v6741_v46, 4  ;;  %vm2852_vm3 = vcmp.lt.s32.totalorder %v6741_v46, 1 }
 0x2bc   : > { %v1092_v31 = vadd.f32 -0.4999988, %v1091_v27  ;;  %v1099_v1 = vadd.f32 -0.16666654, %v1098_v60  ;;  %vm2854_vm5 = vcmp.lt.s32.totalorder %v6741_v46, 3  ;;  %v2864_v32 = vsel %vm2852_vm3, %v6760_v8, %v2845_v21 }
 0x2bd   : > { %v6764_v52 = vshrl.u32 %v1989_v55, 30  ;;  %v2861_v22 = vsel %vm2855_vm1, %v2848_v16, 920167782  ;;  %v2865_v2 = vsel %vm2855_vm1, %v2851_v38, 1326507024  ;;  %v2860_v18 = vsel %vm2852_vm3, %v6762_v3, %v6760_v8 }
 0x2be   : > { %v1093_v33 = vmul.f32 %v1092_v31, %v1088_v0  ;;  %v1100_v48 = vmul.f32 %v1099_v1, %v1088_v0  ;;  %v2862_v29 = vsel %vm2854_vm5, %v2845_v21, %v2861_v22  ;;  %v2866_v47 = vsel %vm2854_vm5, %v2848_v16, %v2865_v2 }
 0x2bf   : > { %v1991_v39 = vshll.u32 %v6764_v52, 30  ;;  %v6785_v0 = vshll.u32 %v2828_v5, 8  ;;  %vm2853_vm4 = vcmp.lt.s32.totalorder %v6741_v46, 2  ;;  %vm1103_vm6 = vweird.f32 %v6406_v37 }
 0x2c0   : > { %v1094_v61 = vadd.f32 1.0, %v1093_v33  ;;  %v1101_v59 = vadd.f32 1.0, %v1100_v48  ;;  %vm1106_vm7 = vcmp.lt.s32.totalorder %v1105_v36, 2  ;;  %vm1107_vm8 = vcmp.eq.s32.totalorder %v1105_v36, 0 }
 0x2c1   : > { %v1992_v53 = vsub.s32 %v1988_v19, %v1991_v39  ;;  %v2867_v58 = vsel %vm2853_vm4, %v2864_v32, %v2866_v47  ;;  %v2863_v25 = vsel %vm2853_vm4, %v2860_v18, %v2862_v29  ;;  %vm1110_vm11 = vcmp.eq.s32.totalorder %v1105_v36, 2 }
 0x2c2   : > { %v1102_v50 = vmul.f32 %v1101_v59, %v1086_v56  ;;  %v1111_v23 = vxor.u32 2147483648, %v1094_v61  ;;  %v2869_v56 = vand.u32 65535, %v6785_v0  ;;  %v2871_v42 = vand.u32 65535, %v2867_v58 }
 0x2c3   : > { %vm1993_vm9 = vcmp.lt.s32.totalorder %v1992_v53, 0  ;;  %v1994_v35 = vsub.s32 0, %v1992_v53  ;;  %v2872_v45 = vshrl.u32 %v2867_v58, 16  ;;  %v2870_v10 = vshrl.u32 %v6785_v0, 16 }
 0x2c4   : > { %v1108_v28 = vxor.u32 2147483648, %v1102_v50  ;;  %v1112_v49 = vsel %vm1110_vm11, %v1111_v23, %v1102_v50  ;;  %v2894_v17 = vshrl.u32 %v2863_v25, 16  ;;  %v6797_v26 = vadd.f32 %v6592_v20, %v483_v57 }
 0x2c5   : > { %v1995_v6 = vsel %vm1993_vm9, %v1994_v35, %v1992_v53  ;;  %v2874_v60 = vmul.u32 %v2872_v45, %v2869_v56  ;;  %v2875_v19 = vmul.u32 %v2871_v42, %v2870_v10  ;;  %v2893_v40 = vand.u32 65535, %v2863_v25 }
 0x2c6   : > { %v1109_v4 = vsel %vm1107_vm8, %v1094_v61, %v1108_v28  ;;  %v1996_v44 = vclz %v1995_v6  ;;  %v1984_v34 = vadd.s32 %v6738_v54, %v6736_v62  ;;  %v2836_v31 = vshrl.u32 %v4964_v7, %v6732_v51 }
 0x2c7   : > { %v1113_v12 = vsel %vm1106_vm7, %v1109_v4, %v1112_v49  ;;  %v2857_v1 = vsel %vm2855_vm1, %v2845_v21, 2102212464  ;;  %v2014_v55 = vsub.s32 4, %v6764_v52  ;;  %v2873_v38 = vmul.u32 %v2871_v42, %v2869_v56 }
 0x2c8   : > { %v1114_v27 = vsel %vm1103_vm6, nan, %v1113_v12  ;;  %v4734_v16 = vadd.s32 4294967294, %v1996_v44  ;;  %v2876_v36 = vmul.u32 %v2872_v45, %v2870_v10  ;;  %v2877_v37 = vshll.u32 %v2874_v60, 16  ;;  %v429_v12 = vpop.f32.mrf.mxu0 }
 0x2c9   : > { %4528 = vst [vmem:[%s5494_s4 + $0x18] sm:$0xff] %v1114_v27  ;;  %vm1892_vm10 = vcmp.lt.s32.totalorder %v6595_v63, 0  ;;  %v2878_v5 = vshrl.u32 %v2874_v60, 16  ;;  %v2879_v33 = vshll.u32 %v2875_v19, 16  ;;  %v2896_v48 = vmul.u32 %v2894_v17, %v2869_v56 }
 0x2ca   : > { %vm4735_vm14 = vcmp.lt.s32.totalorder %v4734_v16, 0  ;;  %vm2881_vm12 = vc.u32 %v2873_v38, %v2877_v37  ;;  %v2883_v62 = vadd.s32 %v2877_v37, %v2873_v38  ;;  %v2897_v54 = vmul.u32 %v2893_v40, %v2870_v10 }
 0x2cb   : > { %v1999_v22 = vsel %vm4735_vm14, 0, %v4734_v16  ;;  %v2882_v61 = vsel %vm2881_vm12, 1, %v4970_v30  ;;  %v2895_v21 = vmul.u32 %v2893_v40, %v2869_v56  ;;  %v2898_v39 = vmul.u32 %v2894_v17, %v2870_v10 }
 0x2cc   : > { %v2000_v2 = vsub.s32 32, %v1999_v22  ;;  %v2004_v51 = vsub.s32 4294967266, %v1999_v22  ;;  %v2884_v59 = vadd.s32 %v2882_v61, %v2876_v36  ;;  %vm2885_vm13 = vc.u32 %v2883_v62, %v2879_v33 }
 0x2cd   : > { %v2899_v32 = vshll.u32 %v2896_v48, 16  ;;  %v2001_v18 = vshll.u32 %v1992_v53, %v1999_v22  ;;  %v2886_v50 = vsel %vm2885_vm13, 1, %v4970_v30  ;;  %v2901_v58 = vshll.u32 %v2897_v54, 16 }
 0x2ce   : > { %v2002_v29 = vshrl.u32 %v1984_v34, %v2000_v2  ;;  %v2005_v47 = vadd.s32 127, %v2004_v51  ;;  %v2888_v23 = vadd.s32 %v2886_v50, %v2884_v59  ;;  %v2856_v57 = vsel %vm2852_vm3, %v2836_v31, %v6762_v3 }
 0x2cf   : > { %vm2903_vm15 = vc.u32 %v2895_v21, %v2899_v32  ;;  %v2905_v28 = vadd.s32 %v2899_v32, %v2895_v21  ;;  %v3905_v53 = vand.u32 2147483647, %v6797_v26  ;;  %v2858_v49 = vsel %vm2854_vm5, %v6760_v8, %v2857_v1 }
 0x2d0   : > { %v2003_v35 = vor.u32 %v2002_v29, %v2001_v18  ;;  %v2006_v25 = vshll.u32 %v2005_v47, 23  ;;  %v2904_v56 = vsel %vm2903_vm15, 1, %v4970_v30  ;;  %v2889_v42 = vadd.s32 %v2888_v23, %v2878_v5 }
 0x2d1   : > { %v2906_v45 = vadd.s32 %v2904_v56, %v2898_v39  ;;  %vm2907_vm2 = vc.u32 %v2905_v28, %v2901_v58  ;;  %v2880_v6 = vshrl.u32 %v2875_v19, 16  ;;  %v2015_v3 = vsel %vm1892_vm10, %v2014_v55, %v6764_v52 }
 0x2d2   : > { %v2007_v4 = vor.u32 4788187, %v2006_v25  ;;  %v2908_v10 = vsel %vm2907_vm2, 1, %v4970_v30  ;;  %v2900_v44 = vshrl.u32 %v2896_v48, 16  ;;  %v3908_v27 = vand.u32 2139095040, %v6797_v26 }
 0x2d3   : > { %v2910_v17 = vadd.s32 %v2908_v10, %v2906_v45  ;;  %v2010_v40 = vcvt.s32.f32 %v2003_v35  ;;  %v2890_v34 = vadd.s32 %v2889_v42, %v2880_v6  ;;  %v2902_v16 = vshrl.u32 %v2897_v54, 16 }
 0x2d4   : > { %v2008_v60 = vand.u32 2147483647, %v2007_v4  ;;  %v3909_v38 = vshrl.u32 %v3908_v27, 23  ;;  %v3912_v8 = vand.u32 8388607, %v3905_v53  ;;  %v6828_v19 = vadd.f32 %v6592_v20, %v429_v12 }
 0x2d5   : > { %v2911_v31 = vadd.s32 %v2910_v17, %v2900_v44  ;;  %v2909_v36 = vadd.s32 %v2905_v28, %v2901_v58  ;;  %vm6832_vm0 = vcmp.le.f32.partialorder %v1890_v14, 0.7853982  ;;  %v2859_v55 = vsel %vm2853_vm4, %v2856_v57, %v2858_v49 }
 0x2d6   : > { %v2011_v1 = vmul.f32 %v2010_v40, %v2008_v60  ;;  %v4772_v5 = vadd.s32 4294967169, %v3909_v38  ;;  %v2017_v48 = vsel %vm6832_vm0, 0, %v2015_v3  ;;  %v3913_v22 = vor.u32 8388608, %v3912_v8 }
 0x2d7   : > { %v2912_v37 = vadd.s32 %v2911_v31, %v2902_v16  ;;  %vm2915_vm1 = vc.u32 %v2890_v34, %v2909_v36  ;;  %v1118_v54 = vand.u32 2139095040, %v6828_v19  ;;  %v2913_v2 = vmul.u32 %v6785_v0, %v2859_v55 }
 0x2d8   : > { %v2012_v33 = vxor.u32 2147483648, %v2011_v1  ;;  %v3915_v62 = vadd.s32 1, %v4772_v5  ;;  %v2034_v21 = vadd.s32 3, %v2017_v48  ;;  %v6847_v18 = vshll.u32 %v3913_v22, 8 }
 0x2d9   : > { %v2916_v20 = vadd.s32 1, %v2912_v37  ;;  %v1119_v29 = vshrl.u32 %v1118_v54, 23  ;;  %v6853_v57 = vadd.s32 %v2909_v36, %v2890_v34  ;;  %vm2033_vm8 = vweird.f32 %v6595_v63 }
 0x2da   : > { %v2013_v14 = vsel %vm1892_vm10, %v2012_v33, %v2011_v1  ;;  %vm3916_vm3 = vcmp.gt.s32.totalorder %v3915_v62, 0  ;;  %v6849_v35 = vand.u32 3, %v2034_v21  ;;  %v6856_v56 = vand.u32 65535, %v6847_v18 }
 0x2db   : > { %v2016_v46 = vsel %vm6832_vm0, %v6595_v63, %v2013_v14  ;;  %v2917_v51 = vsel %vm2915_vm1, %v2916_v20, %v2912_v37  ;;  %v3917_v39 = vsel %vm3916_vm3, %v3915_v62, 0  ;;  %v6859_v42 = vshrl.u32 %v6847_v18, 16 }
 0x2dc   : > { %v2018_v61 = vmul.f32 %v2016_v46, %v2016_v46  ;;  %v2918_v59 = vadd.s32 %v2917_v51, %v2913_v2  ;;  %v3919_v32 = vand.u32 31, %v3917_v39  ;;  %v6861_v45 = vadd.s32 4294967169, %v1119_v29 }
 0x2dd   : > { %v6864_v10 = vshrl.u32 %v3917_v39, 5  ;;  %vm2040_vm5 = vcmp.eq.s32.totalorder %v6849_v35, 2  ;;  %vm2037_vm4 = vcmp.eq.s32.totalorder %v6849_v35, 0  ;;  %vm2036_vm6 = vcmp.lt.s32.totalorder %v6849_v35, 2 }
 0x2de   : > { %v2019_v47 = vmul.f32 -0.001358992, %v2018_v61  ;;  %v2026_v50 = vmul.f32 -0.00019511016, %v2018_v61  ;;  %v2919_v23 = vadd.s32 536870912, %v2918_v59  ;;  %v3920_v58 = vsub.s32 32, %v3919_v32 }
 0x2df   : > { %v3922_v12 = vshll.u32 %v4964_v7, %v3919_v32  ;;  %v3925_v16 = vshll.u32 %v4965_v9, %v3919_v32  ;;  %v3928_v31 = vshll.u32 %v4966_v11, %v3919_v32  ;;  %v3931_v38 = vshll.u32 %v4967_v13, %v3919_v32 }
 0x2e0   : > { %v2020_v28 = vadd.f32 0.041655596, %v2019_v47  ;;  %v2027_v0 = vadd.f32 0.008332121, %v2026_v50  ;;  %v6851_v25 = vshrl.u32 %v2919_v23, 30  ;;  %v3923_v3 = vshrl.u32 %v4965_v9, %v3920_v58 }
 0x2e1   : > { %v3926_v44 = vshrl.u32 %v4966_v11, %v3920_v58  ;;  %v3929_v17 = vshrl.u32 %v4967_v13, %v3920_v58  ;;  %v3932_v34 = vshrl.u32 %v4968_v15, %v3920_v58  ;;  %v3935_v8 = vshrl.u32 %v4969_v24, %v3920_v58 }
 0x2e2   : > { %v2021_v4 = vmul.f32 %v2020_v28, %v2018_v61  ;;  %v2028_v49 = vmul.f32 %v2027_v0, %v2018_v61  ;;  %v2921_v6 = vshll.u32 %v6851_v25, 30  ;;  %v3924_v55 = vor.u32 %v3923_v3, %v3922_v12 }
 0x2e3   : > { %v3927_v37 = vor.u32 %v3926_v44, %v3925_v16  ;;  %v3930_v5 = vor.u32 %v3929_v17, %v3928_v31  ;;  %v3934_v33 = vshll.u32 %v4968_v15, %v3919_v32  ;;  %v3933_v62 = vor.u32 %v3932_v34, %v3931_v38 }
 0x2e4   : > { %v2022_v27 = vadd.f32 -0.4999988, %v2021_v4  ;;  %v2029_v60 = vadd.f32 -0.16666654, %v2028_v49  ;;  %v6871_v40 = vsub.s32 %v2918_v59, %v2921_v6  ;;  %v2944_v14 = vsub.s32 4, %v6851_v25 }
 0x2e5   : > { %v3921_v2 = vshrl.u32 %v4964_v7, %v3920_v58  ;;  %v3936_v51 = vor.u32 %v3935_v8, %v3934_v33  ;;  %vm3937_vm9 = vcmp.lt.s32.totalorder %v6864_v10, 1  ;;  %vm3938_vm11 = vcmp.lt.s32.totalorder %v6864_v10, 2 }
 0x2e6   : > { %v2023_v1 = vmul.f32 %v2022_v27, %v2018_v61  ;;  %v2030_v36 = vmul.f32 %v2029_v60, %v2018_v61  ;;  %vm2923_vm7 = vcmp.lt.s32.totalorder %v6871_v40, 0  ;;  %v2924_v52 = vsub.s32 0, %v6871_v40 }
 0x2e7   : > { %vm2822_vm10 = vcmp.lt.s32.totalorder %v6621_v41, 0  ;;  %vm3939_vm14 = vcmp.lt.s32.totalorder %v6864_v10, 3  ;;  %vm3940_vm12 = vcmp.lt.s32.totalorder %v6864_v10, 4  ;;  %v3945_v39 = vsel %vm3937_vm9, %v3924_v55, %v3927_v37 }
 0x2e8   : > { %v2024_v48 = vadd.f32 1.0, %v2023_v1  ;;  %v2031_v20 = vadd.f32 1.0, %v2030_v36  ;;  %v2925_v22 = vsel %vm2923_vm7, %v2924_v52, %v6871_v40  ;;  %v3941_v29 = vsel %vm3937_vm9, %v3921_v2, %v3924_v55 }
 0x2e9   : > { %v2926_v54 = vclz %v2925_v22  ;;  %v3942_v47 = vsel %vm3940_vm12, %v3930_v5, 2102212464  ;;  %v3946_v50 = vsel %vm3940_vm12, %v3933_v62, 920167782  ;;  %v3949_v58 = vsel %vm3937_vm9, %v3927_v37, %v3930_v5 }
 0x2ea   : > { %v2032_v61 = vmul.f32 %v2031_v20, %v2016_v46  ;;  %v2041_v21 = vxor.u32 2147483648, %v2024_v48  ;;  %v3947_v23 = vsel %vm3939_vm14, %v3930_v5, %v3946_v50  ;;  %v3950_v49 = vsel %vm3940_vm12, %v3936_v51, 1326507024 }
 0x2eb   : > { %v4752_v59 = vadd.s32 4294967294, %v2926_v54  ;;  %v3948_v4 = vsel %vm3938_vm11, %v3945_v39, %v3947_v23  ;;  %v3943_v44 = vsel %vm3939_vm14, %v3927_v37, %v3942_v47  ;;  %v3951_v27 = vsel %vm3939_vm14, %v3933_v62, %v3950_v49 }
 0x2ec   : > { %v2038_v32 = vxor.u32 2147483648, %v2032_v61  ;;  %v2042_v46 = vsel %vm2040_vm5, %v2041_v21, %v2032_v61  ;;  %v3978_v60 = vand.u32 65535, %v3948_v4  ;;  %v3979_v34 = vshrl.u32 %v3948_v4, 16 }
 0x2ed   : > { %vm4753_vm13 = vcmp.lt.s32.totalorder %v4752_v59, 0  ;;  %v3952_v38 = vsel %vm3938_vm11, %v3949_v58, %v3951_v27  ;;  %v1115_v63 = vand.u32 2147483647, %v6828_v19  ;;  %v1125_v5 = vadd.s32 1, %v6861_v45 }
 0x2ee   : > { %v2039_v28 = vsel %vm2037_vm4, %v2024_v48, %v2038_v32  ;;  %v2929_v0 = vsel %vm4753_vm13, 0, %v4752_v59  ;;  %v3956_v8 = vand.u32 65535, %v3952_v38  ;;  %v3957_v1 = vshrl.u32 %v3952_v38, 16 }
 0x2ef   : > { %v2043_v6 = vsel %vm2036_vm6, %v2039_v28, %v2042_v46  ;;  %v2930_v12 = vsub.s32 32, %v2929_v0  ;;  %v2934_v3 = vsub.s32 4294967266, %v2929_v0  ;;  %v2931_v16 = vshll.u32 %v6871_v40, %v2929_v0 }
 0x2f0   : > { %v2044_v17 = vsel %vm2033_vm8, nan, %v2043_v6  ;;  %v3981_v36 = vmul.u32 %v3979_v34, %v6856_v56  ;;  %v3982_v37 = vmul.u32 %v3978_v60, %v6859_v42  ;;  %v6924_v40 = vsel %vm3938_vm11, %v3941_v29, %v3943_v44 }
 0x2f1   : > { %4534 = vst [vmem:[%s5494_s4 + $0x48] sm:$0xff] %v2044_v17  ;;  %v2932_v31 = vshrl.u32 %v6853_v57, %v2930_v12  ;;  %v2935_v35 = vadd.s32 127, %v2934_v3  ;;  %v6920_v57 = vsel %vm2822_vm10, %v2944_v14, %v6851_v25  ;;  %v3959_v33 = vmul.u32 %v3957_v1, %v6856_v56 }
 0x2f2   : > { %v3960_v48 = vmul.u32 %v3956_v8, %v6859_v42  ;;  %v3980_v22 = vmul.u32 %v3978_v60, %v6856_v56  ;;  %v3983_v62 = vmul.u32 %v3979_v34, %v6859_v42  ;;  %v3984_v54 = vshll.u32 %v3981_v36, 16 }
 0x2f3   : > { %v2933_v52 = vor.u32 %v2932_v31, %v2931_v16  ;;  %v2936_v55 = vshll.u32 %v2935_v35, 23  ;;  %v3958_v2 = vmul.u32 %v3956_v8, %v6856_v56  ;;  %v3961_v25 = vmul.u32 %v3957_v1, %v6859_v42 }
 0x2f4   : > { %v3962_v14 = vshll.u32 %v3959_v33, 16  ;;  %v3964_v10 = vshll.u32 %v3960_v48, 16  ;;  %v3986_v61 = vshll.u32 %v3982_v37, 16  ;;  %vm3988_vm15 = vc.u32 %v3980_v22, %v3984_v54 }
 0x2f5   : > { %v2937_v20 = vor.u32 4788187, %v2936_v55  ;;  %v2940_v45 = vcvt.s32.f32 %v2933_v52  ;;  %v3989_v59 = vsel %vm3988_vm15, 1, %v4970_v30  ;;  %v3990_v39 = vadd.s32 %v3984_v54, %v3980_v22 }
 0x2f6   : > { %vm3966_vm2 = vc.u32 %v3958_v2, %v3962_v14  ;;  %v3968_v21 = vadd.s32 %v3962_v14, %v3958_v2  ;;  %v3991_v47 = vadd.s32 %v3989_v59, %v3983_v62  ;;  %vm1126_vm0 = vcmp.gt.s32.totalorder %v1125_v5, 0 }
 0x2f7   : > { %v2938_v51 = vand.u32 2147483647, %v2937_v20  ;;  %v3967_v29 = vsel %vm3966_vm2, 1, %v4970_v30  ;;  %v3985_v56 = vshrl.u32 %v3981_v36, 16  ;;  %vm3992_vm3 = vc.u32 %v3990_v39, %v3986_v61 }
 0x2f8   : > { %v3969_v50 = vadd.s32 %v3967_v29, %v3961_v25  ;;  %vm3970_vm1 = vc.u32 %v3968_v21, %v3964_v10  ;;  %v3993_v23 = vsel %vm3992_vm3, 1, %v4970_v30  ;;  %v1127_v58 = vsel %vm1126_vm0, %v1125_v5, 0 }
 0x2f9   : > { %v2941_v32 = vmul.f32 %v2940_v45, %v2938_v51  ;;  %v3971_v46 = vsel %vm3970_vm1, 1, %v4970_v30  ;;  %v3963_v28 = vshrl.u32 %v3959_v33, 16  ;;  %v3995_v4 = vadd.s32 %v3993_v23, %v3991_v47 }
 0x2fa   : > { %v3973_v0 = vadd.s32 %v3971_v46, %v3969_v50  ;;  %v1129_v49 = vand.u32 31, %v1127_v58  ;;  %vm6938_vm5 = vcmp.le.f32.partialorder %v2820_v43, 0.7853982  ;;  %v3965_v3 = vshrl.u32 %v3960_v48, 16 }
 0x2fb   : > { %v2942_v42 = vxor.u32 2147483648, %v2941_v32  ;;  %v3987_v44 = vshrl.u32 %v3982_v37, 16  ;;  %v3996_v60 = vadd.s32 %v3995_v4, %v3985_v56  ;;  %v2947_v43 = vsel %vm6938_vm5, 0, %v6920_v57 }
 0x2fc   : > { %v3974_v27 = vadd.s32 %v3973_v0, %v3963_v28  ;;  %v6947_v34 = vsub.s32 32, %v1129_v49  ;;  %v3998_v31 = vmul.u32 %v6847_v18, %v6924_v40  ;;  %v1122_v35 = vand.u32 8388607, %v1115_v63 }
 0x2fd   : > { %v2943_v12 = vsel %vm2822_vm10, %v2942_v42, %v2941_v32  ;;  %v6958_v8 = vadd.s32 %v3990_v39, %v3986_v61  ;;  %v3997_v1 = vadd.s32 %v3996_v60, %v3987_v44  ;;  %v6960_v36 = vshrl.u32 %v1127_v58, 5 }
 0x2fe   : > { %v2946_v17 = vsel %vm6938_vm5, %v6621_v41, %v2943_v12  ;;  %v6956_v38 = vadd.s32 %v3974_v27, %v3965_v3  ;;  %v1135_v37 = vshll.u32 %v4965_v9, %v1129_v49  ;;  %v1138_v5 = vshll.u32 %v4966_v11, %v1129_v49 }
 0x2ff   : > { %v2948_v16 = vmul.f32 %v2946_v17, %v2946_v17  ;;  %v4001_v18 = vadd.s32 1, %v3997_v1  ;;  %v1136_v57 = vshrl.u32 %v4966_v11, %v6947_v34  ;;  %v1139_v40 = vshrl.u32 %v4967_v13, %v6947_v34 }
 0x300   : > { %vm4000_vm4 = vc.u32 %v6956_v38, %v6958_v8  ;;  %v1132_v20 = vshll.u32 %v4964_v7, %v1129_v49  ;;  %v1133_v22 = vshrl.u32 %v4965_v9, %v6947_v34  ;;  %v1141_v54 = vshll.u32 %v4967_v13, %v1129_v49 }
 0x301   : > { %v2949_v52 = vmul.f32 -0.001358992, %v2948_v16  ;;  %v2956_v55 = vmul.f32 -0.00019511016, %v2948_v16  ;;  %v4002_v62 = vsel %vm4000_vm4, %v4001_v18, %v3997_v1  ;;  %v1142_v45 = vshrl.u32 %v4968_v15, %v6947_v34 }
 0x302   : > { %v1144_v2 = vshll.u32 %v4968_v15, %v1129_v49  ;;  %v4003_v51 = vadd.s32 %v4002_v62, %v3998_v31  ;;  %v1145_v10 = vshrl.u32 %v4969_v24, %v6947_v34  ;;  %v1123_v61 = vor.u32 8388608, %v1122_v35 }
 0x303   : > { %v2950_v33 = vadd.f32 0.041655596, %v2949_v52  ;;  %v2957_v48 = vadd.f32 0.008332121, %v2956_v55  ;;  %v6979_v21 = vor.u32 %v1136_v57, %v1135_v37  ;;  %v1140_v59 = vor.u32 %v1139_v40, %v1138_v5 }
 0x304   : > { %v1143_v39 = vor.u32 %v1142_v45, %v1141_v54  ;;  %v4004_v47 = vadd.s32 536870912, %v4003_v51  ;;  %v1146_v50 = vor.u32 %v1145_v10, %v1144_v2  ;;  %v2964_v56 = vadd.s32 3, %v2947_v43 }
 0x305   : > { %v2951_v25 = vmul.f32 %v2950_v33, %v2948_v16  ;;  %v2958_v14 = vmul.f32 %v2957_v48, %v2948_v16  ;;  %v6981_v42 = vor.u32 %v1133_v22, %v1132_v20  ;;  %vm1147_vm6 = vcmp.lt.s32.totalorder %v6960_v36, 1  ;;  %v447_v20 = vpop.f32.mrf.mxu1 }
 0x306   : > { %vm1150_vm7 = vcmp.lt.s32.totalorder %v6960_v36, 4  ;;  %v6985_v58 = vshrl.u32 %v4004_v47, 30  ;;  %vm1149_vm8 = vcmp.lt.s32.totalorder %v6960_v36, 3  ;;  %vm1148_vm9 = vcmp.lt.s32.totalorder %v6960_v36, 2 }
 0x307   : > { %v2952_v32 = vadd.f32 -0.4999988, %v2951_v25  ;;  %v2959_v29 = vadd.f32 -0.16666654, %v2958_v14  ;;  %v1156_v28 = vsel %vm1150_vm7, %v1143_v39, 920167782  ;;  %v1159_v3 = vsel %vm1147_vm6, %v6979_v21, %v1140_v59 }
 0x308   : > { %v1160_v0 = vsel %vm1150_vm7, %v1146_v50, 1326507024  ;;  %v6993_v4 = vshll.u32 %v1123_v61, 8  ;;  %v4006_v12 = vshll.u32 %v6985_v58, 30  ;;  %v2965_v44 = vand.u32 3, %v2964_v56 }
 0x309   : > { %v2953_v46 = vmul.f32 %v2952_v32, %v2948_v16  ;;  %v2960_v23 = vmul.f32 %v2959_v29, %v2948_v16  ;;  %v1155_v27 = vsel %vm1147_vm6, %v6981_v42, %v6979_v21  ;;  %v1157_v60 = vsel %vm1149_vm8, %v1140_v59, %v1156_v28 }
 0x30a   : > { %v1161_v43 = vsel %vm1149_vm8, %v1143_v39, %v1160_v0  ;;  %v4007_v35 = vsub.s32 %v4003_v51, %v4006_v12  ;;  %vm2963_vm11 = vweird.f32 %v6621_v41  ;;  %v1164_v52 = vand.u32 65535, %v6993_v4  ;;  %v7020_v39 = vld [vmem:[%s5072_s18] ss:$0 sm:$0xff] }
 0x30b   : > { %v2954_v49 = vadd.f32 1.0, %v2953_v46  ;;  %v2961_v6 = vadd.f32 1.0, %v2960_v23  ;;  %v1162_v1 = vsel %vm1148_vm9, %v1159_v3, %v1161_v43  ;;  %v1165_v55 = vshrl.u32 %v6993_v4, 16 }
 0x30c   : > { %vm4008_vm10 = vcmp.lt.s32.totalorder %v4007_v35, 0  ;;  %v4009_v5 = vsub.s32 0, %v4007_v35  ;;  %v1158_v18 = vsel %vm1148_vm9, %v1155_v27, %v1157_v60  ;;  %vm2967_vm14 = vcmp.eq.s32.totalorder %v2965_v44, 0 }
 0x30d   : > { %v2962_v16 = vmul.f32 %v2961_v6, %v2946_v17  ;;  %v2971_v31 = vxor.u32 2147483648, %v2954_v49  ;;  %vm2970_vm12 = vcmp.eq.s32.totalorder %v2965_v44, 2  ;;  %v1166_v17 = vand.u32 65535, %v1162_v1 }
 0x30e   : > { %v1167_v57 = vshrl.u32 %v1162_v1, 16  ;;  %vm2966_vm13 = vcmp.lt.s32.totalorder %v2965_v44, 2  ;;  %v4010_v48 = vsel %vm4008_vm10, %v4009_v5, %v4007_v35  ;;  %v1188_v54 = vand.u32 65535, %v1158_v18 }
 0x30f   : > { %v2968_v37 = vxor.u32 2147483648, %v2962_v16  ;;  %v2972_v33 = vsel %vm2970_vm12, %v2971_v31, %v2962_v16  ;;  %v4011_v62 = vclz %v4010_v48  ;;  %v1189_v45 = vshrl.u32 %v1158_v18, 16 }
 0x310   : > { %v1168_v25 = vmul.u32 %v1166_v17, %v1164_v52  ;;  %v1169_v14 = vmul.u32 %v1167_v57, %v1164_v52  ;;  %v1170_v51 = vmul.u32 %v1166_v17, %v1165_v55  ;;  %v1131_v61 = vshrl.u32 %v4964_v7, %v6947_v34 }
 0x311   : > { %v2969_v40 = vsel %vm2967_vm14, %v2954_v49, %v2968_v37  ;;  %v4773_v10 = vadd.s32 4294967294, %v4011_v62  ;;  %v7023_v32 = vadd.f32 %v7020_v39, %v447_v20  ;;  %v3999_v29 = vadd.s32 %v6958_v8, %v6956_v38 }
 0x312   : > { %v2973_v22 = vsel %vm2966_vm13, %v2969_v40, %v2972_v33  ;;  %v1152_v41 = vsel %vm1150_vm7, %v1140_v59, 2102212464  ;;  %v1172_v47 = vshll.u32 %v1169_v14, 16  ;;  %v1174_v50 = vshll.u32 %v1170_v51, 16 }
 0x313   : > { %v2974_v2 = vsel %vm2963_vm11, nan, %v2973_v22  ;;  %vm4774_vm15 = vcmp.lt.s32.totalorder %v4773_v10, 0  ;;  %v1171_v56 = vmul.u32 %v1167_v57, %v1165_v55  ;;  %v1191_v46 = vmul.u32 %v1189_v45, %v1164_v52 }
 0x314   : > { %4540 = vst [vmem:[%s5494_s4 + $0x78] sm:$0xff] %v2974_v2  ;;  %v1192_v23 = vmul.u32 %v1188_v54, %v1165_v55  ;;  %vm3907_vm2 = vcmp.lt.s32.totalorder %v6797_v26, 0  ;;  %v4014_v34 = vsel %vm4774_vm15, 0, %v4773_v10  ;;  %vm1176_vm0 = vc.u32 %v1168_v25, %v1172_v47 }
 0x315   : > { %v1178_v28 = vadd.s32 %v1172_v47, %v1168_v25  ;;  %v1190_v0 = vmul.u32 %v1188_v54, %v1164_v52  ;;  %v4015_v49 = vsub.s32 32, %v4014_v34  ;;  %v4019_v6 = vsub.s32 4294967266, %v4014_v34 }
 0x316   : > { %v1173_v12 = vshrl.u32 %v1169_v14, 16  ;;  %v1177_v38 = vsel %vm1176_vm0, 1, %v4970_v30  ;;  %v4016_v8 = vshll.u32 %v4007_v35, %v4014_v34  ;;  %v1194_v59 = vshll.u32 %v1191_v46, 16 }
 0x317   : > { %v1179_v3 = vadd.s32 %v1177_v38, %v1171_v56  ;;  %vm1180_vm1 = vc.u32 %v1178_v28, %v1174_v50  ;;  %v4017_v44 = vshrl.u32 %v3999_v29, %v4015_v49  ;;  %v4020_v27 = vadd.s32 127, %v4019_v6 }
 0x318   : > { %v1181_v60 = vsel %vm1180_vm1, 1, %v4970_v30  ;;  %v1196_v43 = vshll.u32 %v1192_v23, 16  ;;  %v1193_v31 = vmul.u32 %v1189_v45, %v1165_v55  ;;  %vm1198_vm3 = vc.u32 %v1190_v0, %v1194_v59 }
 0x319   : > { %v1183_v16 = vadd.s32 %v1181_v60, %v1179_v3  ;;  %v1200_v1 = vadd.s32 %v1194_v59, %v1190_v0  ;;  %v4018_v37 = vor.u32 %v4017_v44, %v4016_v8  ;;  %v4021_v52 = vshll.u32 %v4020_v27, 23 }
 0x31a   : > { %v4029_v5 = vsub.s32 4, %v6985_v58  ;;  %v1199_v18 = vsel %vm1198_vm3, 1, %v4970_v30  ;;  %v2045_v57 = vand.u32 2147483647, %v7023_v32  ;;  %v1151_v33 = vsel %vm1147_vm6, %v1131_v61, %v6981_v42 }
 0x31b   : > { %v1184_v17 = vadd.s32 %v1183_v16, %v1173_v12  ;;  %v1201_v35 = vadd.s32 %v1199_v18, %v1193_v31  ;;  %vm1202_vm5 = vc.u32 %v1200_v1, %v1196_v43  ;;  %v4022_v40 = vor.u32 4788187, %v4021_v52 }
 0x31c   : > { %v1175_v48 = vshrl.u32 %v1170_v51, 16  ;;  %v1203_v55 = vsel %vm1202_vm5, 1, %v4970_v30  ;;  %v1153_v20 = vsel %vm1149_vm8, %v6979_v21, %v1152_v41  ;;  %v1195_v22 = vshrl.u32 %v1191_v46, 16  ;;  %v465_v21 = vpop.f32.mrf.mxu2 }
 0x31d   : > { %v1205_v62 = vadd.s32 %v1203_v55, %v1201_v35  ;;  %v2048_v54 = vand.u32 2139095040, %v7023_v32  ;;  %v4023_v45 = vand.u32 2147483647, %v4022_v40  ;;  %v4025_v2 = vcvt.s32.f32 %v4018_v37 }
 0x31e   : > { %v4030_v25 = vsel %vm3907_vm2, %v4029_v5, %v6985_v58  ;;  %v1185_v14 = vadd.s32 %v1184_v17, %v1175_v48  ;;  %v1197_v10 = vshrl.u32 %v1192_v23, 16  ;;  %v2052_v61 = vand.u32 8388607, %v2045_v57 }
 0x31f   : > { %v1206_v42 = vadd.s32 %v1205_v62, %v1195_v22  ;;  %v2049_v51 = vshrl.u32 %v2048_v54, 23  ;;  %v4026_v29 = vmul.f32 %v4025_v2, %v4023_v45  ;;  %v1204_v47 = vadd.s32 %v1200_v1, %v1196_v43 }
 0x320   : > { %vm3906_vm4 = vcmp.le.f32.partialorder %v3905_v53, 0.7853982  ;;  %v1154_v41 = vsel %vm1148_vm9, %v1151_v33, %v1153_v20  ;;  %v2053_v34 = vor.u32 8388608, %v2052_v61  ;;  %v7053_v0 = vadd.f32 %v7020_v39, %v465_v21 }
 0x321   : > { %v1207_v50 = vadd.s32 %v1206_v42, %v1197_v10  ;;  %v4736_v56 = vadd.s32 4294967169, %v2049_v51  ;;  %v4027_v46 = vxor.u32 2147483648, %v4026_v29  ;;  %v4032_v58 = vsel %vm3906_vm4, 0, %v4030_v25 }
 0x322   : > { %vm1210_vm6 = vc.u32 %v1185_v14, %v1204_v47  ;;  %v1208_v6 = vmul.u32 %v6993_v4, %v1154_v41  ;;  %v4049_v36 = vadd.s32 3, %v4032_v58  ;;  %v7059_v44 = vshll.u32 %v2053_v34, 8 }
 0x323   : > { %v1211_v23 = vadd.s32 1, %v1207_v50  ;;  %v2055_v28 = vadd.s32 1, %v4736_v56  ;;  %v4028_v49 = vsel %vm3907_vm2, %v4027_v46, %v4026_v29  ;;  %v2978_v27 = vand.u32 2139095040, %v7053_v0 }
 0x324   : > { %v4031_v53 = vsel %vm3906_vm4, %v6797_v26, %v4028_v49  ;;  %v7062_v31 = vand.u32 3, %v4049_v36  ;;  %v7064_v52 = vadd.s32 %v1204_v47, %v1185_v14  ;;  %v7070_v17 = vand.u32 65535, %v7059_v44 }
 0x325   : > { %v1212_v12 = vsel %vm1210_vm6, %v1211_v23, %v1207_v50  ;;  %vm2056_vm7 = vcmp.gt.s32.totalorder %v2055_v28, 0  ;;  %v4033_v38 = vmul.f32 %v4031_v53, %v4031_v53  ;;  %v2975_v35 = vand.u32 2147483647, %v7053_v0 }
 0x326   : > { %v1213_v8 = vadd.s32 %v1212_v12, %v1208_v6  ;;  %v2057_v3 = vsel %vm2056_vm7, %v2055_v28, 0  ;;  %v2979_v40 = vshrl.u32 %v2978_v27, 23  ;;  %vm4055_vm8 = vcmp.eq.s32.totalorder %v7062_v31, 2 }
 0x327   : > { %v2059_v59 = vand.u32 31, %v2057_v3  ;;  %v4034_v60 = vmul.f32 -0.001358992, %v4033_v38  ;;  %v4041_v43 = vmul.f32 -0.00019511016, %v4033_v38  ;;  %v7082_v10 = vshrl.u32 %v2057_v3, 5 }
 0x328   : > { %v1214_v16 = vadd.s32 536870912, %v1213_v8  ;;  %vm4052_vm9 = vcmp.eq.s32.totalorder %v7062_v31, 0  ;;  %vm4051_vm11 = vcmp.lt.s32.totalorder %v7062_v31, 2  ;;  %vm1117_vm10 = vcmp.lt.s32.totalorder %v6828_v19, 0 }
 0x329   : > { %v2060_v1 = vsub.s32 32, %v2059_v59  ;;  %v4035_v4 = vadd.f32 0.041655596, %v4034_v60  ;;  %v4042_v37 = vadd.f32 0.008332121, %v4041_v43  ;;  %v2062_v18 = vshll.u32 %v4964_v7, %v2059_v59 }
 0x32a   : > { %v7066_v5 = vshrl.u32 %v1214_v16, 30  ;;  %v2065_v20 = vshll.u32 %v4965_v9, %v2059_v59  ;;  %v2071_v54 = vshll.u32 %v4967_v13, %v2059_v59  ;;  %v2068_v42 = vshll.u32 %v4966_v11, %v2059_v59 }
 0x32b   : > { %v4036_v33 = vmul.f32 %v4035_v4, %v4033_v38  ;;  %v4043_v48 = vmul.f32 %v4042_v37, %v4033_v38  ;;  %v2063_v22 = vshrl.u32 %v4965_v9, %v2060_v1  ;;  %v2066_v62 = vshrl.u32 %v4966_v11, %v2060_v1 }
 0x32c   : > { %v1216_v55 = vshll.u32 %v7066_v5, 30  ;;  %v2072_v45 = vshrl.u32 %v4968_v15, %v2060_v1  ;;  %v2069_v51 = vshrl.u32 %v4967_v13, %v2060_v1  ;;  %v2074_v61 = vshll.u32 %v4968_v15, %v2059_v59 }
 0x32d   : > { %v4037_v2 = vadd.f32 -0.4999988, %v4036_v33  ;;  %v4044_v25 = vadd.f32 -0.16666654, %v4043_v48  ;;  %v2075_v29 = vshrl.u32 %v4969_v24, %v2060_v1  ;;  %vm4048_vm12 = vweird.f32 %v6797_v26 }
 0x32e   : > { %v7080_v14 = vsub.s32 %v1213_v8, %v1216_v55  ;;  %v2064_v50 = vor.u32 %v2063_v22, %v2062_v18  ;;  %v2067_v56 = vor.u32 %v2066_v62, %v2065_v20  ;;  %v2073_v46 = vor.u32 %v2072_v45, %v2071_v54 }
 0x32f   : > { %v4038_v47 = vmul.f32 %v4037_v2, %v4033_v38  ;;  %v4045_v21 = vmul.f32 %v4044_v25, %v4033_v38  ;;  %v4754_v58 = vadd.s32 4294967169, %v2979_v40  ;;  %vm2077_vm13 = vcmp.lt.s32.totalorder %v7082_v10, 1 }
 0x330   : > { %vm1218_vm14 = vcmp.lt.s32.totalorder %v7080_v14, 0  ;;  %v1219_v41 = vsub.s32 0, %v7080_v14  ;;  %v2070_v6 = vor.u32 %v2069_v51, %v2068_v42  ;;  %vm2080_vm15 = vcmp.lt.s32.totalorder %v7082_v10, 4 }
 0x331   : > { %v4039_v23 = vadd.f32 1.0, %v4038_v47  ;;  %v4046_v34 = vadd.f32 1.0, %v4045_v21  ;;  %v2095_v36 = vshrl.u32 %v7059_v44, 16  ;;  %v2076_v8 = vor.u32 %v2075_v29, %v2074_v61 }
 0x332   : > { %v1220_v28 = vsel %vm1218_vm14, %v1219_v41, %v7080_v14  ;;  %vm2079_vm2 = vcmp.lt.s32.totalorder %v7082_v10, 3  ;;  %vm7101_vm0 = vcmp.le.f32.partialorder %v1115_v63, 0.7853982  ;;  %v1239_v27 = vsub.s32 4, %v7066_v5 }
 0x333   : > { %v1221_v49 = vclz %v1220_v28  ;;  %v4047_v12 = vmul.f32 %v4046_v34, %v4031_v53  ;;  %v4056_v38 = vxor.u32 2147483648, %v4039_v23  ;;  %vm2078_vm1 = vcmp.lt.s32.totalorder %v7082_v10, 2 }
 0x334   : > { %v2085_v60 = vsel %vm2077_vm13, %v2064_v50, %v2067_v56  ;;  %v2061_v53 = vshrl.u32 %v4964_v7, %v2060_v1  ;;  %v2086_v16 = vsel %vm2080_vm15, %v2073_v46, 920167782  ;;  %v2985_v4 = vadd.s32 1, %v4754_v58 }
 0x335   : > { %v4719_v59 = vadd.s32 4294967294, %v1221_v49  ;;  %v4053_v43 = vxor.u32 2147483648, %v4047_v12  ;;  %v4057_v63 = vsel %vm4055_vm8, %v4056_v38, %v4047_v12  ;;  %v2087_v37 = vsel %vm2079_vm2, %v2070_v6, %v2086_v16 }
 0x336   : > { %v2089_v18 = vsel %vm2077_vm13, %v2067_v56, %v2070_v6  ;;  %v2088_v1 = vsel %vm2078_vm1, %v2085_v60, %v2087_v37  ;;  %v2090_v48 = vsel %vm2080_vm15, %v2076_v8, 1326507024  ;;  %v7129_v62 = vsel %vm1117_vm10, %v1239_v27, %v7066_v5 }
 0x337   : > { %vm4720_vm3 = vcmp.lt.s32.totalorder %v4719_v59, 0  ;;  %v4054_v40 = vsel %vm4052_vm9, %v4039_v23, %v4053_v43  ;;  %v2091_v45 = vsel %vm2079_vm2, %v2073_v46, %v2090_v48  ;;  %v2118_v2 = vand.u32 65535, %v2088_v1 }
 0x338   : > { %v1224_v33 = vsel %vm4720_vm3, 0, %v4719_v59  ;;  %v4058_v55 = vsel %vm4051_vm11, %v4054_v40, %v4057_v63  ;;  %v2119_v25 = vshrl.u32 %v2088_v1, 16  ;;  %v2092_v61 = vsel %vm2078_vm1, %v2089_v18, %v2091_v45 }
 0x339   : > { %v1225_v20 = vsub.s32 32, %v1224_v33  ;;  %v1229_v22 = vsub.s32 4294967266, %v1224_v33  ;;  %v4059_v54 = vsel %vm4048_vm12, nan, %v4058_v55  ;;  %v1226_v42 = vshll.u32 %v7080_v14, %v1224_v33 }
 0x33a   : > { %4547 = vst [vmem:[%s5494_s4 + $0xb0] sm:$0xff] %v4059_v54  ;;  %v2082_v5 = vsel %vm2080_vm15, %v2070_v6, 2102212464  ;;  %v2096_v29 = vand.u32 65535, %v2092_v61  ;;  %v2097_v26 = vshrl.u32 %v2092_v61, 16  ;;  %v2121_v47 = vmul.u32 %v2119_v25, %v7070_v17 }
 0x33b   : > { %v1227_v31 = vshrl.u32 %v7064_v52, %v1225_v20  ;;  %v1230_v51 = vadd.s32 127, %v1229_v22  ;;  %v2120_v46 = vmul.u32 %v2118_v2, %v7070_v17  ;;  %v2122_v58 = vmul.u32 %v2118_v2, %v2095_v36 }
 0x33c   : > { %v1242_v52 = vsel %vm7101_vm0, 0, %v7129_v62  ;;  %v2098_v14 = vmul.u32 %v2096_v29, %v7070_v17  ;;  %v2099_v23 = vmul.u32 %v2097_v26, %v7070_v17  ;;  %v2100_v34 = vmul.u32 %v2096_v29, %v2095_v36 }
 0x33d   : > { %v1228_v21 = vor.u32 %v1227_v31, %v1226_v42  ;;  %v1231_v41 = vshll.u32 %v1230_v51, 23  ;;  %v2081_v49 = vsel %vm2077_vm13, %v2061_v53, %v2064_v50  ;;  %v2083_v6 = vsel %vm2079_vm2, %v2067_v56, %v2082_v5 }
 0x33e   : > { %v2124_v12 = vshll.u32 %v2121_v47, 16  ;;  %v2101_v38 = vmul.u32 %v2097_v26, %v2095_v36  ;;  %v2102_v8 = vshll.u32 %v2099_v23, 16  ;;  %v2104_v59 = vshll.u32 %v2100_v34, 16 }
 0x33f   : > { %v1232_v28 = vor.u32 4788187, %v1231_v41  ;;  %v2123_v27 = vmul.u32 %v2119_v25, %v2095_v36  ;;  %v1235_v43 = vcvt.s32.f32 %v1228_v21  ;;  %v2126_v16 = vshll.u32 %v2122_v58, 16 }
 0x340   : > { %vm2128_vm5 = vc.u32 %v2120_v46, %v2124_v12  ;;  %vm2106_vm4 = vc.u32 %v2098_v14, %v2102_v8  ;;  %v2108_v63 = vadd.s32 %v2102_v8, %v2098_v14  ;;  %v2130_v37 = vadd.s32 %v2124_v12, %v2120_v46 }
 0x341   : > { %v1233_v60 = vand.u32 2147483647, %v1232_v28  ;;  %v2129_v17 = vsel %vm2128_vm5, 1, %v4970_v30  ;;  %v2107_v50 = vsel %vm2106_vm4, 1, %v4970_v30  ;;  %vm2986_vm6 = vcmp.gt.s32.totalorder %v2985_v4, 0 }
 0x342   : > { %v2131_v53 = vadd.s32 %v2129_v17, %v2123_v27  ;;  %v2109_v56 = vadd.s32 %v2107_v50, %v2101_v38  ;;  %vm2110_vm7 = vc.u32 %v2108_v63, %v2104_v59  ;;  %v2125_v40 = vshrl.u32 %v2121_v47, 16 }
 0x343   : > { %v1236_v18 = vmul.f32 %v1235_v43, %v1233_v60  ;;  %vm2132_vm8 = vc.u32 %v2130_v37, %v2126_v16  ;;  %v2111_v36 = vsel %vm2110_vm7, 1, %v4970_v30  ;;  %v2987_v48 = vsel %vm2986_vm6, %v2985_v4, 0 }
 0x344   : > { %v2133_v1 = vsel %vm2132_vm8, 1, %v4970_v30  ;;  %v2103_v55 = vshrl.u32 %v2099_v23, 16  ;;  %v2113_v20 = vadd.s32 %v2111_v36, %v2109_v56  ;;  %v2989_v62 = vand.u32 31, %v2987_v48 }
 0x345   : > { %v1237_v33 = vxor.u32 2147483648, %v1236_v18  ;;  %v2135_v22 = vadd.s32 %v2133_v1, %v2131_v53  ;;  %v2084_v45 = vsel %vm2078_vm1, %v2081_v49, %v2083_v6  ;;  %v2105_v2 = vshrl.u32 %v2100_v34, 16 }
 0x346   : > { %v2127_v25 = vshrl.u32 %v2122_v58, 16  ;;  %v2114_v31 = vadd.s32 %v2113_v20, %v2103_v55  ;;  %v7164_v61 = vsub.s32 32, %v2989_v62  ;;  %v1259_v5 = vadd.s32 3, %v1242_v52 }
 0x347   : > { %v1238_v54 = vsel %vm1117_vm10, %v1237_v33, %v1236_v18  ;;  %v2136_v51 = vadd.s32 %v2135_v22, %v2125_v40  ;;  %v2982_v29 = vand.u32 8388607, %v2975_v35  ;;  %v7170_v47 = vadd.s32 %v2130_v37, %v2126_v16 }
 0x348   : > { %v1241_v42 = vsel %vm7101_vm0, %v6828_v19, %v1238_v54  ;;  %v7168_v26 = vadd.s32 %v2114_v31, %v2105_v2  ;;  %v2138_v21 = vmul.u32 %v7059_v44, %v2084_v45  ;;  %v7173_v3 = vshrl.u32 %v2987_v48, 5 }
 0x349   : > { %v1243_v4 = vmul.f32 %v1241_v42, %v1241_v42  ;;  %v2137_v10 = vadd.s32 %v2136_v51, %v2127_v25  ;;  %v2995_v58 = vshll.u32 %v4965_v9, %v2989_v62  ;;  %v2996_v14 = vshrl.u32 %v4966_v11, %v7164_v61 }
 0x34a   : > { %vm2140_vm9 = vc.u32 %v7168_v26, %v7170_v47  ;;  %v2999_v23 = vshrl.u32 %v4967_v13, %v7164_v61  ;;  %v2993_v44 = vshrl.u32 %v4965_v9, %v7164_v61  ;;  %v2998_v49 = vshll.u32 %v4966_v11, %v2989_v62 }
 0x34b   : > { %v1244_v41 = vmul.f32 -0.001358992, %v1243_v4  ;;  %v1251_v46 = vmul.f32 -0.00019511016, %v1243_v4  ;;  %v2141_v52 = vadd.s32 1, %v2137_v10  ;;  %v3001_v12 = vshll.u32 %v4967_v13, %v2989_v62 }
 0x34c   : > { %v3002_v38 = vshrl.u32 %v4968_v15, %v7164_v61  ;;  %v3004_v8 = vshll.u32 %v4968_v15, %v2989_v62  ;;  %v3005_v43 = vshrl.u32 %v4969_v24, %v7164_v61  ;;  %v2992_v16 = vshll.u32 %v4964_v7, %v2989_v62 }
 0x34d   : > { %v1245_v34 = vadd.f32 0.041655596, %v1244_v41  ;;  %v1252_v28 = vadd.f32 0.008332121, %v1251_v46  ;;  %v2142_v6 = vsel %vm2140_vm9, %v2141_v52, %v2137_v10  ;;  %v7192_v63 = vor.u32 %v2996_v14, %v2995_v58  ;;  %v486_v52 = vpop.f32.mrf.mxu3 }
 0x34e   : > { %v2143_v60 = vadd.s32 %v2142_v6, %v2138_v21  ;;  %v3000_v17 = vor.u32 %v2999_v23, %v2998_v49  ;;  %v3003_v37 = vor.u32 %v3002_v38, %v3001_v12  ;;  %v3006_v56 = vor.u32 %v3005_v43, %v3004_v8 }
 0x34f   : > { %v1246_v59 = vmul.f32 %v1245_v34, %v1243_v4  ;;  %v1253_v27 = vmul.f32 %v1252_v28, %v1243_v4  ;;  %v1260_v40 = vand.u32 3, %v1259_v5  ;;  %v2983_v33 = vor.u32 8388608, %v2982_v29 }
 0x350   : > { %v2144_v53 = vadd.s32 536870912, %v2143_v60  ;;  %v7194_v36 = vor.u32 %v2993_v44, %v2992_v16  ;;  %vm3010_vm11 = vcmp.lt.s32.totalorder %v7173_v3, 4  ;;  %vm3007_vm10 = vcmp.lt.s32.totalorder %v7173_v3, 1 }
 0x351   : > { %v1247_v18 = vadd.f32 -0.4999988, %v1246_v59  ;;  %v1254_v50 = vadd.f32 -0.16666654, %v1253_v27  ;;  %vm3009_vm14 = vcmp.lt.s32.totalorder %v7173_v3, 3  ;;  %v3019_v2 = vsel %vm3007_vm10, %v7192_v63, %v3000_v17 }
 0x352   : > { %v7196_v55 = vshrl.u32 %v2144_v53, 30  ;;  %v3016_v20 = vsel %vm3010_vm11, %v3003_v37, 920167782  ;;  %v3020_v22 = vsel %vm3010_vm11, %v3006_v56, 1326507024  ;;  %v3015_v25 = vsel %vm3007_vm10, %v7194_v36, %v7192_v63 }
 0x353   : > { %v1248_v1 = vmul.f32 %v1247_v18, %v1243_v4  ;;  %v1255_v48 = vmul.f32 %v1254_v50, %v1243_v4  ;;  %v3017_v31 = vsel %vm3009_vm14, %v3000_v17, %v3016_v20  ;;  %v3021_v51 = vsel %vm3009_vm14, %v3003_v37, %v3020_v22 }
 0x354   : > { %v2146_v45 = vshll.u32 %v7196_v55, 30  ;;  %v7217_v4 = vshll.u32 %v2983_v33, 8  ;;  %vm3008_vm12 = vcmp.lt.s32.totalorder %v7173_v3, 2  ;;  %vm1258_vm13 = vweird.f32 %v6828_v19 }
 0x355   : > { %v1249_v62 = vadd.f32 1.0, %v1248_v1  ;;  %v1256_v54 = vadd.f32 1.0, %v1255_v48  ;;  %vm1261_vm15 = vcmp.lt.s32.totalorder %v1260_v40, 2  ;;  %vm1262_vm2 = vcmp.eq.s32.totalorder %v1260_v40, 0 }
 0x356   : > { %v2147_v10 = vsub.s32 %v2143_v60, %v2146_v45  ;;  %v3022_v21 = vsel %vm3008_vm12, %v3019_v2, %v3021_v51  ;;  %v3018_v58 = vsel %vm3008_vm12, %v3015_v25, %v3017_v31  ;;  %vm1265_vm1 = vcmp.eq.s32.totalorder %v1260_v40, 2 }
 0x357   : > { %v1257_v5 = vmul.f32 %v1256_v54, %v1241_v42  ;;  %v1266_v29 = vxor.u32 2147483648, %v1249_v62  ;;  %v3024_v42 = vand.u32 65535, %v7217_v4  ;;  %v3026_v14 = vand.u32 65535, %v3022_v21 }
 0x358   : > { %vm2148_vm0 = vcmp.lt.s32.totalorder %v2147_v10, 0  ;;  %v2149_v46 = vsub.s32 0, %v2147_v10  ;;  %v3027_v23 = vshrl.u32 %v3022_v21, 16  ;;  %v3025_v49 = vshrl.u32 %v7217_v4, 16 }
 0x359   : > { %v1263_v41 = vxor.u32 2147483648, %v1257_v5  ;;  %v1267_v28 = vsel %vm1265_vm1, %v1266_v29, %v1257_v5  ;;  %v3049_v38 = vshrl.u32 %v3018_v58, 16  ;;  %v7229_v8 = vadd.f32 %v7020_v39, %v486_v52 }
 0x35a   : > { %v2150_v44 = vsel %vm2148_vm0, %v2149_v46, %v2147_v10  ;;  %v3029_v27 = vmul.u32 %v3027_v23, %v3024_v42  ;;  %v3030_v60 = vmul.u32 %v3026_v14, %v3025_v49  ;;  %v3048_v43 = vand.u32 65535, %v3018_v58 }
 0x35b   : > { %v1264_v34 = vsel %vm1262_vm2, %v1249_v62, %v1263_v41  ;;  %v2151_v12 = vclz %v2150_v44  ;;  %v2139_v16 = vadd.s32 %v7170_v47, %v7168_v26  ;;  %v2991_v18 = vshrl.u32 %v4964_v7, %v7164_v61 }
 0x35c   : > { %v1268_v6 = vsel %vm1261_vm15, %v1264_v34, %v1267_v28  ;;  %v3012_v50 = vsel %vm3010_vm11, %v3000_v17, 2102212464  ;;  %v2169_v53 = vsub.s32 4, %v7196_v55  ;;  %v3028_v56 = vmul.u32 %v3026_v14, %v3024_v42 }
 0x35d   : > { %v1269_v59 = vsel %vm1258_vm13, nan, %v1268_v6  ;;  %v4737_v37 = vadd.s32 4294967294, %v2151_v12  ;;  %v3031_v40 = vmul.u32 %v3027_v23, %v3025_v49  ;;  %v3032_v19 = vshll.u32 %v3029_v27, 16  ;;  %v432_v6 = vpop.f32.mrf.mxu0 }
 0x35e   : > { %4529 = vst [vmem:[%s5494_s4 + $0x20] sm:$0xff] %v1269_v59  ;;  %vm2047_vm3 = vcmp.lt.s32.totalorder %v7023_v32, 0  ;;  %v3033_v33 = vshrl.u32 %v3029_v27, 16  ;;  %v3034_v1 = vshll.u32 %v3030_v60, 16  ;;  %v3051_v48 = vmul.u32 %v3049_v38, %v3024_v42 }
 0x35f   : > { %vm4738_vm5 = vcmp.lt.s32.totalorder %v4737_v37, 0  ;;  %vm3036_vm4 = vc.u32 %v3028_v56, %v3032_v19  ;;  %v3038_v26 = vadd.s32 %v3032_v19, %v3028_v56  ;;  %v3052_v47 = vmul.u32 %v3048_v43, %v3025_v49 }
 0x360   : > { %v2154_v20 = vsel %vm4738_vm5, 0, %v4737_v37  ;;  %v3037_v62 = vsel %vm3036_vm4, 1, %v4970_v30  ;;  %v3050_v17 = vmul.u32 %v3048_v43, %v3024_v42  ;;  %v3053_v45 = vmul.u32 %v3049_v38, %v3025_v49 }
 0x361   : > { %v2155_v22 = vsub.s32 32, %v2154_v20  ;;  %v2159_v61 = vsub.s32 4294967266, %v2154_v20  ;;  %v3039_v54 = vadd.s32 %v3037_v62, %v3031_v40  ;;  %vm3040_vm6 = vc.u32 %v3038_v26, %v3034_v1 }
 0x362   : > { %v3054_v2 = vshll.u32 %v3051_v48, 16  ;;  %v2156_v25 = vshll.u32 %v2147_v10, %v2154_v20  ;;  %v3041_v5 = vsel %vm3040_vm6, 1, %v4970_v30  ;;  %v3056_v21 = vshll.u32 %v3052_v47, 16 }
 0x363   : > { %v2157_v31 = vshrl.u32 %v2139_v16, %v2155_v22  ;;  %v2160_v51 = vadd.s32 127, %v2159_v61  ;;  %v3043_v29 = vadd.s32 %v3041_v5, %v3039_v54  ;;  %v3011_v52 = vsel %vm3007_vm10, %v2991_v18, %v7194_v36 }
 0x364   : > { %vm3058_vm7 = vc.u32 %v3050_v17, %v3054_v2  ;;  %v3060_v41 = vadd.s32 %v3054_v2, %v3050_v17  ;;  %v4060_v10 = vand.u32 2147483647, %v7229_v8  ;;  %v3013_v28 = vsel %vm3009_vm14, %v7192_v63, %v3012_v50 }
 0x365   : > { %v2158_v46 = vor.u32 %v2157_v31, %v2156_v25  ;;  %v2161_v58 = vshll.u32 %v2160_v51, 23  ;;  %v3059_v42 = vsel %vm3058_vm7, 1, %v4970_v30  ;;  %v3044_v14 = vadd.s32 %v3043_v29, %v3033_v33 }
 0x366   : > { %v3061_v23 = vadd.s32 %v3059_v42, %v3053_v45  ;;  %vm3062_vm8 = vc.u32 %v3060_v41, %v3056_v21  ;;  %v3035_v44 = vshrl.u32 %v3030_v60, 16  ;;  %v2170_v36 = vsel %vm2047_vm3, %v2169_v53, %v7196_v55 }
 0x367   : > { %v2162_v34 = vor.u32 4788187, %v2161_v58  ;;  %v3063_v49 = vsel %vm3062_vm8, 1, %v4970_v30  ;;  %v3055_v12 = vshrl.u32 %v3051_v48, 16  ;;  %v4063_v59 = vand.u32 2139095040, %v7229_v8 }
 0x368   : > { %v3065_v38 = vadd.s32 %v3063_v49, %v3061_v23  ;;  %v2165_v43 = vcvt.s32.f32 %v2158_v46  ;;  %v3045_v16 = vadd.s32 %v3044_v14, %v3035_v44  ;;  %v3057_v37 = vshrl.u32 %v3052_v47, 16 }
 0x369   : > { %v2163_v27 = vand.u32 2147483647, %v2162_v34  ;;  %v4064_v56 = vshrl.u32 %v4063_v59, 23  ;;  %v4067_v63 = vand.u32 8388607, %v4060_v10  ;;  %v7260_v60 = vadd.f32 %v7020_v39, %v432_v6 }
 0x36a   : > { %v3066_v18 = vadd.s32 %v3065_v38, %v3055_v12  ;;  %v3064_v40 = vadd.s32 %v3060_v41, %v3056_v21  ;;  %vm7264_vm9 = vcmp.le.f32.partialorder %v2045_v57, 0.7853982  ;;  %v3014_v53 = vsel %vm3008_vm12, %v3011_v52, %v3013_v28 }
 0x36b   : > { %v2166_v50 = vmul.f32 %v2165_v43, %v2163_v27  ;;  %v4775_v33 = vadd.s32 4294967169, %v4064_v56  ;;  %v2172_v48 = vsel %vm7264_vm9, 0, %v2170_v36  ;;  %v4068_v20 = vor.u32 8388608, %v4067_v63 }
 0x36c   : > { %v3067_v19 = vadd.s32 %v3066_v18, %v3057_v37  ;;  %vm3070_vm11 = vc.u32 %v3045_v16, %v3064_v40  ;;  %v1273_v47 = vand.u32 2139095040, %v7260_v60  ;;  %v3068_v22 = vmul.u32 %v7217_v4, %v3014_v53 }
 0x36d   : > { %v2167_v1 = vxor.u32 2147483648, %v2166_v50  ;;  %v4070_v26 = vadd.s32 1, %v4775_v33  ;;  %v2189_v17 = vadd.s32 3, %v2172_v48  ;;  %v7279_v25 = vshll.u32 %v4068_v20, 8 }
 0x36e   : > { %v3071_v39 = vadd.s32 1, %v3067_v19  ;;  %v1274_v31 = vshrl.u32 %v1273_v47, 23  ;;  %v7285_v52 = vadd.s32 %v3064_v40, %v3045_v16  ;;  %vm2188_vm2 = vweird.f32 %v7023_v32 }
 0x36f   : > { %v2168_v57 = vsel %vm2047_vm3, %v2167_v1, %v2166_v50  ;;  %vm4071_vm10 = vcmp.gt.s32.totalorder %v4070_v26, 0  ;;  %v7281_v46 = vand.u32 3, %v2189_v17  ;;  %v7288_v42 = vand.u32 65535, %v7279_v25 }
 0x370   : > { %v2171_v3 = vsel %vm7264_vm9, %v7023_v32, %v2168_v57  ;;  %v3072_v61 = vsel %vm3070_vm11, %v3071_v39, %v3067_v19  ;;  %v4072_v45 = vsel %vm4071_vm10, %v4070_v26, 0  ;;  %v7291_v14 = vshrl.u32 %v7279_v25, 16 }
 0x371   : > { %v2173_v62 = vmul.f32 %v2171_v3, %v2171_v3  ;;  %v3073_v54 = vadd.s32 %v3072_v61, %v3068_v22  ;;  %v4074_v2 = vand.u32 31, %v4072_v45  ;;  %v7293_v23 = vadd.s32 4294967169, %v1274_v31 }
 0x372   : > { %v7296_v49 = vshrl.u32 %v4072_v45, 5  ;;  %vm2195_vm14 = vcmp.eq.s32.totalorder %v7281_v46, 2  ;;  %vm2192_vm12 = vcmp.eq.s32.totalorder %v7281_v46, 0  ;;  %vm2191_vm13 = vcmp.lt.s32.totalorder %v7281_v46, 2 }
 0x373   : > { %v2174_v51 = vmul.f32 -0.001358992, %v2173_v62  ;;  %v2181_v5 = vmul.f32 -0.00019511016, %v2173_v62  ;;  %v3074_v29 = vadd.s32 536870912, %v3073_v54  ;;  %v4075_v21 = vsub.s32 32, %v4074_v2 }
 0x374   : > { %v4077_v6 = vshll.u32 %v4964_v7, %v4074_v2  ;;  %v4080_v37 = vshll.u32 %v4965_v9, %v4074_v2  ;;  %v4083_v18 = vshll.u32 %v4966_v11, %v4074_v2  ;;  %v4086_v56 = vshll.u32 %v4967_v13, %v4074_v2 }
 0x375   : > { %v2175_v41 = vadd.f32 0.041655596, %v2174_v51  ;;  %v2182_v4 = vadd.f32 0.008332121, %v2181_v5  ;;  %v7283_v58 = vshrl.u32 %v3074_v29, 30  ;;  %v4078_v36 = vshrl.u32 %v4965_v9, %v4075_v21 }
 0x376   : > { %v4081_v12 = vshrl.u32 %v4966_v11, %v4075_v21  ;;  %v4084_v38 = vshrl.u32 %v4967_v13, %v4075_v21  ;;  %v4087_v16 = vshrl.u32 %v4968_v15, %v4075_v21  ;;  %v4090_v63 = vshrl.u32 %v4969_v24, %v4075_v21 }
 0x377   : > { %v2176_v34 = vmul.f32 %v2175_v41, %v2173_v62  ;;  %v2183_v28 = vmul.f32 %v2182_v4, %v2173_v62  ;;  %v3076_v44 = vshll.u32 %v7283_v58, 30  ;;  %v4079_v53 = vor.u32 %v4078_v36, %v4077_v6 }
 0x378   : > { %v4082_v19 = vor.u32 %v4081_v12, %v4080_v37  ;;  %v4085_v33 = vor.u32 %v4084_v38, %v4083_v18  ;;  %v4089_v1 = vshll.u32 %v4968_v15, %v4074_v2  ;;  %v4088_v26 = vor.u32 %v4087_v16, %v4086_v56 }
 0x379   : > { %v2177_v59 = vadd.f32 -0.4999988, %v2176_v34  ;;  %v2184_v27 = vadd.f32 -0.16666654, %v2183_v28  ;;  %v7303_v43 = vsub.s32 %v3073_v54, %v3076_v44  ;;  %v3099_v57 = vsub.s32 4, %v7283_v58 }
 0x37a   : > { %v4076_v22 = vshrl.u32 %v4964_v7, %v4075_v21  ;;  %v4091_v61 = vor.u32 %v4090_v63, %v4089_v1  ;;  %vm4092_vm0 = vcmp.lt.s32.totalorder %v7296_v49, 1  ;;  %vm4093_vm1 = vcmp.lt.s32.totalorder %v7296_v49, 2 }
 0x37b   : > { %v2178_v50 = vmul.f32 %v2177_v59, %v2173_v62  ;;  %v2185_v40 = vmul.f32 %v2184_v27, %v2173_v62  ;;  %vm3078_vm15 = vcmp.lt.s32.totalorder %v7303_v43, 0  ;;  %v3079_v55 = vsub.s32 0, %v7303_v43 }
 0x37c   : > { %vm2977_vm3 = vcmp.lt.s32.totalorder %v7053_v0, 0  ;;  %vm4094_vm5 = vcmp.lt.s32.totalorder %v7296_v49, 3  ;;  %vm4095_vm4 = vcmp.lt.s32.totalorder %v7296_v49, 4  ;;  %v4100_v45 = vsel %vm4092_vm0, %v4079_v53, %v4082_v19 }
 0x37d   : > { %v2179_v48 = vadd.f32 1.0, %v2178_v50  ;;  %v2186_v39 = vadd.f32 1.0, %v2185_v40  ;;  %v3080_v20 = vsel %vm3078_vm15, %v3079_v55, %v7303_v43  ;;  %v4096_v31 = vsel %vm4092_vm0, %v4076_v22, %v4079_v53 }
 0x37e   : > { %v3081_v47 = vclz %v3080_v20  ;;  %v4097_v51 = vsel %vm4095_vm4, %v4085_v33, 2102212464  ;;  %v4101_v5 = vsel %vm4095_vm4, %v4088_v26, 920167782  ;;  %v4104_v21 = vsel %vm4092_vm0, %v4082_v19, %v4085_v33 }
 0x37f   : > { %v2187_v62 = vmul.f32 %v2186_v39, %v2171_v3  ;;  %v2196_v17 = vxor.u32 2147483648, %v2179_v48  ;;  %v4102_v29 = vsel %vm4094_vm5, %v4085_v33, %v4101_v5  ;;  %v4105_v28 = vsel %vm4095_vm4, %v4091_v61, 1326507024 }
 0x380   : > { %v4755_v54 = vadd.s32 4294967294, %v3081_v47  ;;  %v4103_v34 = vsel %vm4093_vm1, %v4100_v45, %v4102_v29  ;;  %v4098_v12 = vsel %vm4094_vm5, %v4082_v19, %v4097_v51  ;;  %v4106_v59 = vsel %vm4094_vm5, %v4088_v26, %v4105_v28 }
 0x381   : > { %v2193_v2 = vxor.u32 2147483648, %v2187_v62  ;;  %v2197_v3 = vsel %vm2195_vm14, %v2196_v17, %v2187_v62  ;;  %v4133_v27 = vand.u32 65535, %v4103_v34  ;;  %v4134_v16 = vshrl.u32 %v4103_v34, 16 }
 0x382   : > { %vm4756_vm6 = vcmp.lt.s32.totalorder %v4755_v54, 0  ;;  %v4107_v56 = vsel %vm4093_vm1, %v4104_v21, %v4106_v59  ;;  %v1270_v32 = vand.u32 2147483647, %v7260_v60  ;;  %v1280_v33 = vadd.s32 1, %v7293_v23 }
 0x383   : > { %v2194_v41 = vsel %vm2192_vm12, %v2179_v48, %v2193_v2  ;;  %v3084_v4 = vsel %vm4756_vm6, 0, %v4755_v54  ;;  %v4111_v63 = vand.u32 65535, %v4107_v56  ;;  %v4112_v50 = vshrl.u32 %v4107_v56, 16 }
 0x384   : > { %v2198_v44 = vsel %vm2191_vm13, %v2194_v41, %v2197_v3  ;;  %v3085_v6 = vsub.s32 32, %v3084_v4  ;;  %v3089_v36 = vsub.s32 4294967266, %v3084_v4  ;;  %v3086_v37 = vshll.u32 %v7303_v43, %v3084_v4 }
 0x385   : > { %v2199_v38 = vsel %vm2188_vm2, nan, %v2198_v44  ;;  %v4136_v40 = vmul.u32 %v4134_v16, %v7288_v42  ;;  %v4137_v19 = vmul.u32 %v4133_v27, %v7291_v14  ;;  %v7356_v43 = vsel %vm4093_vm1, %v4096_v31, %v4098_v12 }
 0x386   : > { %4535 = vst [vmem:[%s5494_s4 + $0x50] sm:$0xff] %v2199_v38  ;;  %v3087_v18 = vshrl.u32 %v7285_v52, %v3085_v6  ;;  %v3090_v46 = vadd.s32 127, %v3089_v36  ;;  %v7352_v52 = vsel %vm2977_vm3, %v3099_v57, %v7283_v58  ;;  %v4114_v1 = vmul.u32 %v4112_v50, %v7288_v42 }
 0x387   : > { %v4115_v48 = vmul.u32 %v4111_v63, %v7291_v14  ;;  %v4135_v20 = vmul.u32 %v4133_v27, %v7288_v42  ;;  %v4138_v26 = vmul.u32 %v4134_v16, %v7291_v14  ;;  %v4139_v47 = vshll.u32 %v4136_v40, 16 }
 0x388   : > { %v3088_v55 = vor.u32 %v3087_v18, %v3086_v37  ;;  %v3091_v53 = vshll.u32 %v3090_v46, 23  ;;  %v4113_v22 = vmul.u32 %v4111_v63, %v7288_v42  ;;  %v4116_v58 = vmul.u32 %v4112_v50, %v7291_v14 }
 0x389   : > { %v4117_v57 = vshll.u32 %v4114_v1, 16  ;;  %v4119_v49 = vshll.u32 %v4115_v48, 16  ;;  %v4141_v62 = vshll.u32 %v4137_v19, 16  ;;  %vm4143_vm7 = vc.u32 %v4135_v20, %v4139_v47 }
 0x38a   : > { %v3092_v39 = vor.u32 4788187, %v3091_v53  ;;  %v3095_v23 = vcvt.s32.f32 %v3088_v55  ;;  %v4144_v54 = vsel %vm4143_vm7, 1, %v4970_v30  ;;  %v4145_v45 = vadd.s32 %v4139_v47, %v4135_v20 }
 0x38b   : > { %vm4121_vm8 = vc.u32 %v4113_v22, %v4117_v57  ;;  %v4123_v17 = vadd.s32 %v4117_v57, %v4113_v22  ;;  %v4146_v51 = vadd.s32 %v4144_v54, %v4138_v26  ;;  %vm1281_vm9 = vcmp.gt.s32.totalorder %v1280_v33, 0 }
 0x38c   : > { %v3093_v61 = vand.u32 2147483647, %v3092_v39  ;;  %v4122_v31 = vsel %vm4121_vm8, 1, %v4970_v30  ;;  %v4140_v42 = vshrl.u32 %v4136_v40, 16  ;;  %vm4147_vm10 = vc.u32 %v4145_v45, %v4141_v62 }
 0x38d   : > { %v4124_v5 = vadd.s32 %v4122_v31, %v4116_v58  ;;  %vm4125_vm11 = vc.u32 %v4123_v17, %v4119_v49  ;;  %v4148_v29 = vsel %vm4147_vm10, 1, %v4970_v30  ;;  %v1282_v21 = vsel %vm1281_vm9, %v1280_v33, 0 }
 0x38e   : > { %v3096_v2 = vmul.f32 %v3095_v23, %v3093_v61  ;;  %v4126_v3 = vsel %vm4125_vm11, 1, %v4970_v30  ;;  %v4118_v41 = vshrl.u32 %v4114_v1, 16  ;;  %v4150_v34 = vadd.s32 %v4148_v29, %v4146_v51 }
 0x38f   : > { %v4128_v4 = vadd.s32 %v4126_v3, %v4124_v5  ;;  %v1284_v28 = vand.u32 31, %v1282_v21  ;;  %vm7370_vm14 = vcmp.le.f32.partialorder %v2975_v35, 0.7853982  ;;  %v4120_v36 = vshrl.u32 %v4115_v48, 16 }
 0x390   : > { %v3097_v14 = vxor.u32 2147483648, %v3096_v2  ;;  %v4142_v12 = vshrl.u32 %v4137_v19, 16  ;;  %v4151_v27 = vadd.s32 %v4150_v34, %v4140_v42  ;;  %v3102_v35 = vsel %vm7370_vm14, 0, %v7352_v52 }
 0x391   : > { %v4129_v59 = vadd.s32 %v4128_v4, %v4118_v41  ;;  %v7379_v16 = vsub.s32 32, %v1284_v28  ;;  %v4153_v18 = vmul.u32 %v7279_v25, %v7356_v43  ;;  %v1277_v46 = vand.u32 8388607, %v1270_v32 }
 0x392   : > { %v3098_v6 = vsel %vm2977_vm3, %v3097_v14, %v3096_v2  ;;  %v7390_v63 = vadd.s32 %v4145_v45, %v4141_v62  ;;  %v4152_v50 = vadd.s32 %v4151_v27, %v4142_v12  ;;  %v7392_v40 = vshrl.u32 %v1282_v21, 5 }
 0x393   : > { %v3101_v38 = vsel %vm7370_vm14, %v7053_v0, %v3098_v6  ;;  %v7388_v56 = vadd.s32 %v4129_v59, %v4120_v36  ;;  %v1290_v19 = vshll.u32 %v4965_v9, %v1284_v28  ;;  %v1293_v33 = vshll.u32 %v4966_v11, %v1284_v28 }
 0x394   : > { %v3103_v37 = vmul.f32 %v3101_v38, %v3101_v38  ;;  %v4156_v25 = vadd.s32 1, %v4152_v50  ;;  %v1291_v52 = vshrl.u32 %v4966_v11, %v7379_v16  ;;  %v1294_v43 = vshrl.u32 %v4967_v13, %v7379_v16 }
 0x395   : > { %vm4155_vm12 = vc.u32 %v7388_v56, %v7390_v63  ;;  %v1287_v39 = vshll.u32 %v4964_v7, %v1284_v28  ;;  %v1288_v20 = vshrl.u32 %v4965_v9, %v7379_v16  ;;  %v1296_v47 = vshll.u32 %v4967_v13, %v1284_v28 }
 0x396   : > { %v3104_v55 = vmul.f32 -0.001358992, %v3103_v37  ;;  %v3111_v53 = vmul.f32 -0.00019511016, %v3103_v37  ;;  %v4157_v26 = vsel %vm4155_vm12, %v4156_v25, %v4152_v50  ;;  %v1297_v23 = vshrl.u32 %v4968_v15, %v7379_v16 }
 0x397   : > { %v1299_v22 = vshll.u32 %v4968_v15, %v1284_v28  ;;  %v4158_v61 = vadd.s32 %v4157_v26, %v4153_v18  ;;  %v1300_v49 = vshrl.u32 %v4969_v24, %v7379_v16  ;;  %v1278_v62 = vor.u32 8388608, %v1277_v46 }
 0x398   : > { %v3105_v1 = vadd.f32 0.041655596, %v3104_v55  ;;  %v3112_v48 = vadd.f32 0.008332121, %v3111_v53  ;;  %v7411_v17 = vor.u32 %v1291_v52, %v1290_v19  ;;  %v1295_v54 = vor.u32 %v1294_v43, %v1293_v33 }
 0x399   : > { %v1298_v45 = vor.u32 %v1297_v23, %v1296_v47  ;;  %v4159_v51 = vadd.s32 536870912, %v4158_v61  ;;  %v1301_v5 = vor.u32 %v1300_v49, %v1299_v22  ;;  %v3119_v42 = vadd.s32 3, %v3102_v35 }
 0x39a   : > { %v3106_v58 = vmul.f32 %v3105_v1, %v3103_v37  ;;  %v3113_v57 = vmul.f32 %v3112_v48, %v3103_v37  ;;  %v7413_v14 = vor.u32 %v1288_v20, %v1287_v39  ;;  %vm1302_vm13 = vcmp.lt.s32.totalorder %v7392_v40, 1  ;;  %v450_v39 = vpop.f32.mrf.mxu1 }
 0x39b   : > { %vm1305_vm15 = vcmp.lt.s32.totalorder %v7392_v40, 4  ;;  %v7417_v21 = vshrl.u32 %v4159_v51, 30  ;;  %vm1304_vm2 = vcmp.lt.s32.totalorder %v7392_v40, 3  ;;  %vm1303_vm0 = vcmp.lt.s32.totalorder %v7392_v40, 2 }
 0x39c   : > { %v3107_v2 = vadd.f32 -0.4999988, %v3106_v58  ;;  %v3114_v31 = vadd.f32 -0.16666654, %v3113_v57  ;;  %v1311_v41 = vsel %vm1305_vm15, %v1298_v45, 920167782  ;;  %v1314_v36 = vsel %vm1302_vm13, %v7411_v17, %v1295_v54 }
 0x39d   : > { %v1315_v4 = vsel %vm1305_vm15, %v1301_v5, 1326507024  ;;  %v7425_v34 = vshll.u32 %v1278_v62, 8  ;;  %v4161_v6 = vshll.u32 %v7417_v21, 30  ;;  %v3120_v12 = vand.u32 3, %v3119_v42 }
 0x39e   : > { %v3108_v3 = vmul.f32 %v3107_v2, %v3103_v37  ;;  %v3115_v29 = vmul.f32 %v3114_v31, %v3103_v37  ;;  %v1310_v59 = vsel %vm1302_vm13, %v7413_v14, %v7411_v17  ;;  %v1312_v27 = vsel %vm1304_vm2, %v1295_v54, %v1311_v41 }
 0x39f   : > { %v1316_v35 = vsel %vm1304_vm2, %v1298_v45, %v1315_v4  ;;  %v4162_v46 = vsub.s32 %v4158_v61, %v4161_v6  ;;  %vm3118_vm1 = vweird.f32 %v7053_v0  ;;  %v1319_v55 = vand.u32 65535, %v7425_v34  ;;  %v7452_v45 = vld [vmem:[%s5072_s18] ss:$0 sm:$0xff] }
 0x3a0   : > { %v3109_v28 = vadd.f32 1.0, %v3108_v3  ;;  %v3116_v44 = vadd.f32 1.0, %v3115_v29  ;;  %v1317_v50 = vsel %vm1303_vm0, %v1314_v36, %v1316_v35  ;;  %v1320_v53 = vshrl.u32 %v7425_v34, 16 }
 0x3a1   : > { %vm4163_vm3 = vcmp.lt.s32.totalorder %v4162_v46, 0  ;;  %v4164_v33 = vsub.s32 0, %v4162_v46  ;;  %v1313_v25 = vsel %vm1303_vm0, %v1310_v59, %v1312_v27  ;;  %vm3122_vm5 = vcmp.eq.s32.totalorder %v3120_v12, 0 }
 0x3a2   : > { %v3117_v37 = vmul.f32 %v3116_v44, %v3101_v38  ;;  %v3126_v18 = vxor.u32 2147483648, %v3109_v28  ;;  %vm3125_vm4 = vcmp.eq.s32.totalorder %v3120_v12, 2  ;;  %v1321_v38 = vand.u32 65535, %v1317_v50 }
 0x3a3   : > { %v1322_v52 = vshrl.u32 %v1317_v50, 16  ;;  %vm3121_vm6 = vcmp.lt.s32.totalorder %v3120_v12, 2  ;;  %v4165_v48 = vsel %vm4163_vm3, %v4164_v33, %v4162_v46  ;;  %v1343_v47 = vand.u32 65535, %v1313_v25 }
 0x3a4   : > { %v3123_v19 = vxor.u32 2147483648, %v3117_v37  ;;  %v3127_v1 = vsel %vm3125_vm4, %v3126_v18, %v3117_v37  ;;  %v4166_v26 = vclz %v4165_v48  ;;  %v1344_v23 = vshrl.u32 %v1313_v25, 16 }
 0x3a5   : > { %v1323_v58 = vmul.u32 %v1321_v38, %v1319_v55  ;;  %v1324_v57 = vmul.u32 %v1322_v52, %v1319_v55  ;;  %v1325_v61 = vmul.u32 %v1321_v38, %v1320_v53  ;;  %v1286_v62 = vshrl.u32 %v4964_v7, %v7379_v16 }
 0x3a6   : > { %v3124_v43 = vsel %vm3122_vm5, %v3109_v28, %v3123_v19  ;;  %v4776_v49 = vadd.s32 4294967294, %v4166_v26  ;;  %v7455_v2 = vadd.f32 %v7452_v45, %v450_v39  ;;  %v4154_v31 = vadd.s32 %v7390_v63, %v7388_v56 }
 0x3a7   : > { %v3128_v20 = vsel %vm3121_vm6, %v3124_v43, %v3127_v1  ;;  %v1307_v0 = vsel %vm1305_vm15, %v1295_v54, 2102212464  ;;  %v1327_v51 = vshll.u32 %v1324_v57, 16  ;;  %v1329_v5 = vshll.u32 %v1325_v61, 16 }
 0x3a8   : > { %v3129_v22 = vsel %vm3118_vm1, nan, %v3128_v20  ;;  %vm4777_vm7 = vcmp.lt.s32.totalorder %v4776_v49, 0  ;;  %v1326_v42 = vmul.u32 %v1322_v52, %v1320_v53  ;;  %v1346_v3 = vmul.u32 %v1344_v23, %v1319_v55 }
 0x3a9   : > { %4541 = vst [vmem:[%s5494_s4 + $0x80] sm:$0xff] %v3129_v22  ;;  %v1347_v29 = vmul.u32 %v1343_v47, %v1320_v53  ;;  %vm4062_vm8 = vcmp.lt.s32.totalorder %v7229_v8, 0  ;;  %v4169_v16 = vsel %vm4777_vm7, 0, %v4776_v49  ;;  %vm1331_vm9 = vc.u32 %v1323_v58, %v1327_v51 }
 0x3aa   : > { %v1333_v41 = vadd.s32 %v1327_v51, %v1323_v58  ;;  %v1345_v4 = vmul.u32 %v1343_v47, %v1319_v55  ;;  %v4170_v28 = vsub.s32 32, %v4169_v16  ;;  %v4174_v44 = vsub.s32 4294967266, %v4169_v16 }
 0x3ab   : > { %v1328_v6 = vshrl.u32 %v1324_v57, 16  ;;  %v1332_v56 = vsel %vm1331_vm9, 1, %v4970_v30  ;;  %v4171_v63 = vshll.u32 %v4162_v46, %v4169_v16  ;;  %v1349_v54 = vshll.u32 %v1346_v3, 16 }
 0x3ac   : > { %v1334_v36 = vadd.s32 %v1332_v56, %v1326_v42  ;;  %vm1335_vm11 = vc.u32 %v1333_v41, %v1329_v5  ;;  %v4172_v12 = vshrl.u32 %v4154_v31, %v4170_v28  ;;  %v4175_v59 = vadd.s32 127, %v4174_v44 }
 0x3ad   : > { %v1336_v27 = vsel %vm1335_vm11, 1, %v4970_v30  ;;  %v1351_v35 = vshll.u32 %v1347_v29, 16  ;;  %v1348_v18 = vmul.u32 %v1344_v23, %v1320_v53  ;;  %vm1353_vm10 = vc.u32 %v1345_v4, %v1349_v54 }
 0x3ae   : > { %v1338_v37 = vadd.s32 %v1336_v27, %v1334_v36  ;;  %v1355_v50 = vadd.s32 %v1349_v54, %v1345_v4  ;;  %v4173_v19 = vor.u32 %v4172_v12, %v4171_v63  ;;  %v4176_v55 = vshll.u32 %v4175_v59, 23 }
 0x3af   : > { %v4184_v33 = vsub.s32 4, %v7417_v21  ;;  %v1354_v25 = vsel %vm1353_vm10, 1, %v4970_v30  ;;  %v2200_v52 = vand.u32 2147483647, %v7455_v2  ;;  %v1306_v1 = vsel %vm1302_vm13, %v1286_v62, %v7413_v14 }
 0x3b0   : > { %v1339_v38 = vadd.s32 %v1338_v37, %v1328_v6  ;;  %v1356_v46 = vadd.s32 %v1354_v25, %v1348_v18  ;;  %vm1357_vm14 = vc.u32 %v1355_v50, %v1351_v35  ;;  %v4177_v43 = vor.u32 4788187, %v4176_v55 }
 0x3b1   : > { %v1330_v48 = vshrl.u32 %v1325_v61, 16  ;;  %v1358_v53 = vsel %vm1357_vm14, 1, %v4970_v30  ;;  %v1308_v39 = vsel %vm1304_vm2, %v7411_v17, %v1307_v0  ;;  %v1350_v20 = vshrl.u32 %v1346_v3, 16  ;;  %v468_v17 = vpop.f32.mrf.mxu2 }
 0x3b2   : > { %v1360_v26 = vadd.s32 %v1358_v53, %v1356_v46  ;;  %v2203_v47 = vand.u32 2139095040, %v7455_v2  ;;  %v4178_v23 = vand.u32 2147483647, %v4177_v43  ;;  %v4180_v22 = vcvt.s32.f32 %v4173_v19 }
 0x3b3   : > { %v4185_v58 = vsel %vm4062_vm8, %v4184_v33, %v7417_v21  ;;  %v1340_v57 = vadd.s32 %v1339_v38, %v1330_v48  ;;  %v1352_v49 = vshrl.u32 %v1347_v29, 16  ;;  %v2207_v62 = vand.u32 8388607, %v2200_v52 }
 0x3b4   : > { %v1361_v14 = vadd.s32 %v1360_v26, %v1350_v20  ;;  %v2204_v61 = vshrl.u32 %v2203_v47, 23  ;;  %v4181_v31 = vmul.f32 %v4180_v22, %v4178_v23  ;;  %v1359_v51 = vadd.s32 %v1355_v50, %v1351_v35 }
 0x3b5   : > { %vm4061_vm12 = vcmp.le.f32.partialorder %v4060_v10, 0.7853982  ;;  %v1309_v0 = vsel %vm1303_vm0, %v1306_v1, %v1308_v39  ;;  %v2208_v16 = vor.u32 8388608, %v2207_v62  ;;  %v7485_v4 = vadd.f32 %v7452_v45, %v468_v17 }
 0x3b6   : > { %v1362_v5 = vadd.s32 %v1361_v14, %v1352_v49  ;;  %v4739_v42 = vadd.s32 4294967169, %v2204_v61  ;;  %v4182_v3 = vxor.u32 2147483648, %v4181_v31  ;;  %v4187_v21 = vsel %vm4061_vm12, 0, %v4185_v58 }
 0x3b7   : > { %vm1365_vm13 = vc.u32 %v1340_v57, %v1359_v51  ;;  %v1363_v44 = vmul.u32 %v7425_v34, %v1309_v0  ;;  %v4204_v40 = vadd.s32 3, %v4187_v21  ;;  %v7491_v12 = vshll.u32 %v2208_v16, 8 }
 0x3b8   : > { %v1366_v29 = vadd.s32 1, %v1362_v5  ;;  %v2210_v41 = vadd.s32 1, %v4739_v42  ;;  %v4183_v28 = vsel %vm4062_vm8, %v4182_v3, %v4181_v31  ;;  %v3133_v59 = vand.u32 2139095040, %v7485_v4 }
 0x3b9   : > { %v4186_v10 = vsel %vm4061_vm12, %v7229_v8, %v4183_v28  ;;  %v7494_v18 = vand.u32 3, %v4204_v40  ;;  %v7496_v55 = vadd.s32 %v1359_v51, %v1340_v57  ;;  %v7502_v38 = vand.u32 65535, %v7491_v12 }
 0x3ba   : > { %v1367_v6 = vsel %vm1365_vm13, %v1366_v29, %v1362_v5  ;;  %vm2211_vm15 = vcmp.gt.s32.totalorder %v2210_v41, 0  ;;  %v4188_v56 = vmul.f32 %v4186_v10, %v4186_v10  ;;  %v3130_v46 = vand.u32 2147483647, %v7485_v4 }
 0x3bb   : > { %v1368_v63 = vadd.s32 %v1367_v6, %v1363_v44  ;;  %v2212_v36 = vsel %vm2211_vm15, %v2210_v41, 0  ;;  %v3134_v43 = vshrl.u32 %v3133_v59, 23  ;;  %vm4210_vm2 = vcmp.eq.s32.totalorder %v7494_v18, 2 }
 0x3bc   : > { %v2214_v54 = vand.u32 31, %v2212_v36  ;;  %v4189_v27 = vmul.f32 -0.001358992, %v4188_v56  ;;  %v4196_v35 = vmul.f32 -0.00019511016, %v4188_v56  ;;  %v7514_v49 = vshrl.u32 %v2212_v36, 5 }
 0x3bd   : > { %v1369_v37 = vadd.s32 536870912, %v1368_v63  ;;  %vm4207_vm0 = vcmp.eq.s32.totalorder %v7494_v18, 0  ;;  %vm4206_vm1 = vcmp.lt.s32.totalorder %v7494_v18, 2  ;;  %vm1272_vm3 = vcmp.lt.s32.totalorder %v7260_v60, 0 }
 0x3be   : > { %v2215_v50 = vsub.s32 32, %v2214_v54  ;;  %v4190_v34 = vadd.f32 0.041655596, %v4189_v27  ;;  %v4197_v19 = vadd.f32 0.008332121, %v4196_v35  ;;  %v2217_v25 = vshll.u32 %v4964_v7, %v2214_v54 }
 0x3bf   : > { %v7498_v33 = vshrl.u32 %v1369_v37, 30  ;;  %v2220_v39 = vshll.u32 %v4965_v9, %v2214_v54  ;;  %v2226_v47 = vshll.u32 %v4967_v13, %v2214_v54  ;;  %v2223_v14 = vshll.u32 %v4966_v11, %v2214_v54 }
 0x3c0   : > { %v4191_v1 = vmul.f32 %v4190_v34, %v4188_v56  ;;  %v4198_v48 = vmul.f32 %v4197_v19, %v4188_v56  ;;  %v2218_v20 = vshrl.u32 %v4965_v9, %v2215_v50  ;;  %v2221_v26 = vshrl.u32 %v4966_v11, %v2215_v50 }
 0x3c1   : > { %v1371_v53 = vshll.u32 %v7498_v33, 30  ;;  %v2227_v23 = vshrl.u32 %v4968_v15, %v2215_v50  ;;  %v2224_v61 = vshrl.u32 %v4967_v13, %v2215_v50  ;;  %v2229_v62 = vshll.u32 %v4968_v15, %v2214_v54 }
 0x3c2   : > { %v4192_v22 = vadd.f32 -0.4999988, %v4191_v1  ;;  %v4199_v58 = vadd.f32 -0.16666654, %v4198_v48  ;;  %v2230_v31 = vshrl.u32 %v4969_v24, %v2215_v50  ;;  %vm4203_vm4 = vweird.f32 %v7229_v8 }
 0x3c3   : > { %v7512_v57 = vsub.s32 %v1368_v63, %v1371_v53  ;;  %v2219_v5 = vor.u32 %v2218_v20, %v2217_v25  ;;  %v2222_v42 = vor.u32 %v2221_v26, %v2220_v39  ;;  %v2228_v3 = vor.u32 %v2227_v23, %v2226_v47 }
 0x3c4   : > { %v4193_v51 = vmul.f32 %v4192_v22, %v4188_v56  ;;  %v4200_v17 = vmul.f32 %v4199_v58, %v4188_v56  ;;  %v4757_v21 = vadd.s32 4294967169, %v3134_v43  ;;  %vm2232_vm6 = vcmp.lt.s32.totalorder %v7514_v49, 1 }
 0x3c5   : > { %vm1373_vm5 = vcmp.lt.s32.totalorder %v7512_v57, 0  ;;  %v1374_v0 = vsub.s32 0, %v7512_v57  ;;  %v2225_v44 = vor.u32 %v2224_v61, %v2223_v14  ;;  %vm2235_vm7 = vcmp.lt.s32.totalorder %v7514_v49, 4 }
 0x3c6   : > { %v4194_v29 = vadd.f32 1.0, %v4193_v51  ;;  %v4201_v16 = vadd.f32 1.0, %v4200_v17  ;;  %v2250_v40 = vshrl.u32 %v7491_v12, 16  ;;  %v2231_v63 = vor.u32 %v2230_v31, %v2229_v62 }
 0x3c7   : > { %v1375_v41 = vsel %vm1373_vm5, %v1374_v0, %v7512_v57  ;;  %vm2234_vm8 = vcmp.lt.s32.totalorder %v7514_v49, 3  ;;  %vm7533_vm9 = vcmp.le.f32.partialorder %v1270_v32, 0.7853982  ;;  %v1394_v59 = vsub.s32 4, %v7498_v33 }
 0x3c8   : > { %v1376_v28 = vclz %v1375_v41  ;;  %v4202_v6 = vmul.f32 %v4201_v16, %v4186_v10  ;;  %v4211_v56 = vxor.u32 2147483648, %v4194_v29  ;;  %vm2233_vm11 = vcmp.lt.s32.totalorder %v7514_v49, 2 }
 0x3c9   : > { %v2240_v27 = vsel %vm2232_vm6, %v2219_v5, %v2222_v42  ;;  %v2216_v10 = vshrl.u32 %v4964_v7, %v2215_v50  ;;  %v2241_v37 = vsel %vm2235_vm7, %v2228_v3, 920167782  ;;  %v3140_v34 = vadd.s32 1, %v4757_v21 }
 0x3ca   : > { %v4722_v54 = vadd.s32 4294967294, %v1376_v28  ;;  %v4208_v35 = vxor.u32 2147483648, %v4202_v6  ;;  %v4212_v32 = vsel %vm4210_vm2, %v4211_v56, %v4202_v6  ;;  %v2242_v19 = vsel %vm2234_vm8, %v2225_v44, %v2241_v37 }
 0x3cb   : > { %v2244_v25 = vsel %vm2232_vm6, %v2222_v42, %v2225_v44  ;;  %v2243_v50 = vsel %vm2233_vm11, %v2240_v27, %v2242_v19  ;;  %v2245_v48 = vsel %vm2235_vm7, %v2231_v63, 1326507024  ;;  %v7561_v26 = vsel %vm1272_vm3, %v1394_v59, %v7498_v33 }
 0x3cc   : > { %vm4723_vm10 = vcmp.lt.s32.totalorder %v4722_v54, 0  ;;  %v4209_v43 = vsel %vm4207_vm0, %v4194_v29, %v4208_v35  ;;  %v2246_v23 = vsel %vm2234_vm8, %v2228_v3, %v2245_v48  ;;  %v2273_v22 = vand.u32 65535, %v2243_v50 }
 0x3cd   : > { %v1379_v1 = vsel %vm4723_vm10, 0, %v4722_v54  ;;  %v4213_v53 = vsel %vm4206_vm1, %v4209_v43, %v4212_v32  ;;  %v2274_v58 = vshrl.u32 %v2243_v50, 16  ;;  %v2247_v62 = vsel %vm2233_vm11, %v2244_v25, %v2246_v23 }
 0x3ce   : > { %v1380_v39 = vsub.s32 32, %v1379_v1  ;;  %v1384_v20 = vsub.s32 4294967266, %v1379_v1  ;;  %v4214_v47 = vsel %vm4203_vm4, nan, %v4213_v53  ;;  %v1381_v14 = vshll.u32 %v7512_v57, %v1379_v1 }
 0x3cf   : > { %4548 = vst [vmem:[%s5494_s4 + $0xb8] sm:$0xff] %v4214_v47  ;;  %v2237_v33 = vsel %vm2235_vm7, %v2225_v44, 2102212464  ;;  %v2251_v31 = vand.u32 65535, %v2247_v62  ;;  %v2252_v8 = vshrl.u32 %v2247_v62, 16  ;;  %v2276_v51 = vmul.u32 %v2274_v58, %v7502_v38 }
 0x3d0   : > { %v1382_v18 = vshrl.u32 %v7496_v55, %v1380_v39  ;;  %v1385_v61 = vadd.s32 127, %v1384_v20  ;;  %v2275_v3 = vmul.u32 %v2273_v22, %v7502_v38  ;;  %v2277_v21 = vmul.u32 %v2273_v22, %v2250_v40 }
 0x3d1   : > { %v1397_v55 = vsel %vm7533_vm9, 0, %v7561_v26  ;;  %v2253_v57 = vmul.u32 %v2251_v31, %v7502_v38  ;;  %v2254_v29 = vmul.u32 %v2252_v8, %v7502_v38  ;;  %v2255_v16 = vmul.u32 %v2251_v31, %v2250_v40 }
 0x3d2   : > { %v1383_v17 = vor.u32 %v1382_v18, %v1381_v14  ;;  %v1386_v0 = vshll.u32 %v1385_v61, 23  ;;  %v2236_v28 = vsel %vm2232_vm6, %v2216_v10, %v2219_v5  ;;  %v2238_v44 = vsel %vm2234_vm8, %v2222_v42, %v2237_v33 }
 0x3d3   : > { %v2279_v6 = vshll.u32 %v2276_v51, 16  ;;  %v2256_v56 = vmul.u32 %v2252_v8, %v2250_v40  ;;  %v2257_v63 = vshll.u32 %v2254_v29, 16  ;;  %v2259_v54 = vshll.u32 %v2255_v16, 16 }
 0x3d4   : > { %v1387_v41 = vor.u32 4788187, %v1386_v0  ;;  %v2278_v59 = vmul.u32 %v2274_v58, %v2250_v40  ;;  %v1390_v35 = vcvt.s32.f32 %v1383_v17  ;;  %v2281_v37 = vshll.u32 %v2277_v21, 16 }
 0x3d5   : > { %vm2283_vm14 = vc.u32 %v2275_v3, %v2279_v6  ;;  %vm2261_vm12 = vc.u32 %v2253_v57, %v2257_v63  ;;  %v2263_v32 = vadd.s32 %v2257_v63, %v2253_v57  ;;  %v2285_v19 = vadd.s32 %v2279_v6, %v2275_v3 }
 0x3d6   : > { %v1388_v27 = vand.u32 2147483647, %v1387_v41  ;;  %v2284_v38 = vsel %vm2283_vm14, 1, %v4970_v30  ;;  %v2262_v5 = vsel %vm2261_vm12, 1, %v4970_v30  ;;  %vm3141_vm13 = vcmp.gt.s32.totalorder %v3140_v34, 0 }
 0x3d7   : > { %v2286_v10 = vadd.s32 %v2284_v38, %v2278_v59  ;;  %v2264_v42 = vadd.s32 %v2262_v5, %v2256_v56  ;;  %vm2265_vm15 = vc.u32 %v2263_v32, %v2259_v54  ;;  %v2280_v43 = vshrl.u32 %v2276_v51, 16 }
 0x3d8   : > { %v1391_v25 = vmul.f32 %v1390_v35, %v1388_v27  ;;  %vm2287_vm2 = vc.u32 %v2285_v19, %v2281_v37  ;;  %v2266_v40 = vsel %vm2265_vm15, 1, %v4970_v30  ;;  %v3142_v48 = vsel %vm3141_vm13, %v3140_v34, 0 }
 0x3d9   : > { %v2288_v50 = vsel %vm2287_vm2, 1, %v4970_v30  ;;  %v2258_v53 = vshrl.u32 %v2254_v29, 16  ;;  %v2268_v39 = vadd.s32 %v2266_v40, %v2264_v42  ;;  %v3144_v26 = vand.u32 31, %v3142_v48 }
 0x3da   : > { %v1392_v1 = vxor.u32 2147483648, %v1391_v25  ;;  %v2290_v20 = vadd.s32 %v2288_v50, %v2286_v10  ;;  %v2239_v23 = vsel %vm2233_vm11, %v2236_v28, %v2238_v44  ;;  %v2260_v22 = vshrl.u32 %v2255_v16, 16 }
 0x3db   : > { %v2282_v58 = vshrl.u32 %v2277_v21, 16  ;;  %v2269_v18 = vadd.s32 %v2268_v39, %v2258_v53  ;;  %v7596_v62 = vsub.s32 32, %v3144_v26  ;;  %v1414_v33 = vadd.s32 3, %v1397_v55 }
 0x3dc   : > { %v1393_v47 = vsel %vm1272_vm3, %v1392_v1, %v1391_v25  ;;  %v2291_v61 = vadd.s32 %v2290_v20, %v2280_v43  ;;  %v3137_v31 = vand.u32 8388607, %v3130_v46  ;;  %v7602_v51 = vadd.s32 %v2285_v19, %v2281_v37 }
 0x3dd   : > { %v1396_v14 = vsel %vm7533_vm9, %v7260_v60, %v1393_v47  ;;  %v7600_v8 = vadd.s32 %v2269_v18, %v2260_v22  ;;  %v2293_v17 = vmul.u32 %v7491_v12, %v2239_v23  ;;  %v7605_v36 = vshrl.u32 %v3142_v48, 5 }
 0x3de   : > { %v1398_v34 = vmul.f32 %v1396_v14, %v1396_v14  ;;  %v2292_v49 = vadd.s32 %v2291_v61, %v2282_v58  ;;  %v3150_v21 = vshll.u32 %v4965_v9, %v3144_v26  ;;  %v3151_v57 = vshrl.u32 %v4966_v11, %v7596_v62 }
 0x3df   : > { %vm2295_vm0 = vc.u32 %v7600_v8, %v7602_v51  ;;  %v3154_v29 = vshrl.u32 %v4967_v13, %v7596_v62  ;;  %v3148_v12 = vshrl.u32 %v4965_v9, %v7596_v62  ;;  %v3153_v28 = vshll.u32 %v4966_v11, %v3144_v26 }
 0x3e0   : > { %v1399_v0 = vmul.f32 -0.001358992, %v1398_v34  ;;  %v1406_v3 = vmul.f32 -0.00019511016, %v1398_v34  ;;  %v2296_v55 = vadd.s32 1, %v2292_v49  ;;  %v3156_v6 = vshll.u32 %v4967_v13, %v3144_v26 }
 0x3e1   : > { %v3157_v56 = vshrl.u32 %v4968_v15, %v7596_v62  ;;  %v3159_v63 = vshll.u32 %v4968_v15, %v3144_v26  ;;  %v3160_v35 = vshrl.u32 %v4969_v24, %v7596_v62  ;;  %v3147_v37 = vshll.u32 %v4964_v7, %v3144_v26 }
 0x3e2   : > { %v1400_v16 = vadd.f32 0.041655596, %v1399_v0  ;;  %v1407_v41 = vadd.f32 0.008332121, %v1406_v3  ;;  %v2297_v44 = vsel %vm2295_vm0, %v2296_v55, %v2292_v49  ;;  %v7624_v32 = vor.u32 %v3151_v57, %v3150_v21  ;;  %v489_v55 = vpop.f32.mrf.mxu3 }
 0x3e3   : > { %v2298_v27 = vadd.s32 %v2297_v44, %v2293_v17  ;;  %v3155_v38 = vor.u32 %v3154_v29, %v3153_v28  ;;  %v3158_v19 = vor.u32 %v3157_v56, %v3156_v6  ;;  %v3161_v42 = vor.u32 %v3160_v35, %v3159_v63 }
 0x3e4   : > { %v1401_v54 = vmul.f32 %v1400_v16, %v1398_v34  ;;  %v1408_v59 = vmul.f32 %v1407_v41, %v1398_v34  ;;  %v1415_v43 = vand.u32 3, %v1414_v33  ;;  %v3138_v1 = vor.u32 8388608, %v3137_v31 }
 0x3e5   : > { %v2299_v10 = vadd.s32 536870912, %v2298_v27  ;;  %v7626_v40 = vor.u32 %v3148_v12, %v3147_v37  ;;  %vm3165_vm1 = vcmp.lt.s32.totalorder %v7605_v36, 4  ;;  %vm3162_vm3 = vcmp.lt.s32.totalorder %v7605_v36, 1 }
 0x3e6   : > { %v1402_v25 = vadd.f32 -0.4999988, %v1401_v54  ;;  %v1409_v5 = vadd.f32 -0.16666654, %v1408_v59  ;;  %vm3164_vm5 = vcmp.lt.s32.totalorder %v7605_v36, 3  ;;  %v3174_v22 = vsel %vm3162_vm3, %v7624_v32, %v3155_v38 }
 0x3e7   : > { %v7628_v53 = vshrl.u32 %v2299_v10, 30  ;;  %v3171_v39 = vsel %vm3165_vm1, %v3158_v19, 920167782  ;;  %v3175_v20 = vsel %vm3165_vm1, %v3161_v42, 1326507024  ;;  %v3170_v58 = vsel %vm3162_vm3, %v7626_v40, %v7624_v32 }
 0x3e8   : > { %v1403_v50 = vmul.f32 %v1402_v25, %v1398_v34  ;;  %v1410_v48 = vmul.f32 %v1409_v5, %v1398_v34  ;;  %v3172_v18 = vsel %vm3164_vm5, %v3155_v38, %v3171_v39  ;;  %v3176_v61 = vsel %vm3164_vm5, %v3158_v19, %v3175_v20 }
 0x3e9   : > { %v2301_v23 = vshll.u32 %v7628_v53, 30  ;;  %v7649_v34 = vshll.u32 %v3138_v1, 8  ;;  %vm3163_vm4 = vcmp.lt.s32.totalorder %v7605_v36, 2  ;;  %vm1413_vm6 = vweird.f32 %v7260_v60 }
 0x3ea   : > { %v1404_v26 = vadd.f32 1.0, %v1403_v50  ;;  %v1411_v47 = vadd.f32 1.0, %v1410_v48  ;;  %vm1416_vm7 = vcmp.lt.s32.totalorder %v1415_v43, 2  ;;  %vm1417_vm8 = vcmp.eq.s32.totalorder %v1415_v43, 0 }
 0x3eb   : > { %v2302_v49 = vsub.s32 %v2298_v27, %v2301_v23  ;;  %v3177_v17 = vsel %vm3163_vm4, %v3174_v22, %v3176_v61  ;;  %v3173_v21 = vsel %vm3163_vm4, %v3170_v58, %v3172_v18  ;;  %vm1420_vm11 = vcmp.eq.s32.totalorder %v1415_v43, 2 }
 0x3ec   : > { %v1412_v33 = vmul.f32 %v1411_v47, %v1396_v14  ;;  %v1421_v31 = vxor.u32 2147483648, %v1404_v26  ;;  %v3179_v14 = vand.u32 65535, %v7649_v34  ;;  %v3181_v57 = vand.u32 65535, %v3177_v17 }
 0x3ed   : > { %vm2303_vm9 = vcmp.lt.s32.totalorder %v2302_v49, 0  ;;  %v2304_v3 = vsub.s32 0, %v2302_v49  ;;  %v3182_v29 = vshrl.u32 %v3177_v17, 16  ;;  %v3180_v28 = vshrl.u32 %v7649_v34, 16 }
 0x3ee   : > { %v1418_v0 = vxor.u32 2147483648, %v1412_v33  ;;  %v1422_v41 = vsel %vm1420_vm11, %v1421_v31, %v1412_v33  ;;  %v3204_v56 = vshrl.u32 %v3173_v21, 16  ;;  %v7661_v63 = vadd.f32 %v7452_v45, %v489_v55 }
 0x3ef   : > { %v2305_v12 = vsel %vm2303_vm9, %v2304_v3, %v2302_v49  ;;  %v3184_v59 = vmul.u32 %v3182_v29, %v3179_v14  ;;  %v3185_v27 = vmul.u32 %v3181_v57, %v3180_v28  ;;  %v3203_v35 = vand.u32 65535, %v3173_v21 }
 0x3f0   : > { %v1419_v16 = vsel %vm1417_vm8, %v1404_v26, %v1418_v0  ;;  %v2306_v6 = vclz %v2305_v12  ;;  %v2294_v37 = vadd.s32 %v7602_v51, %v7600_v8  ;;  %v3146_v25 = vshrl.u32 %v4964_v7, %v7596_v62 }
 0x3f1   : > { %v1423_v44 = vsel %vm1416_vm7, %v1419_v16, %v1422_v41  ;;  %v3167_v5 = vsel %vm3165_vm1, %v3155_v38, 2102212464  ;;  %v2324_v10 = vsub.s32 4, %v7628_v53  ;;  %v3183_v42 = vmul.u32 %v3181_v57, %v3179_v14 }
 0x3f2   : > { %v1424_v54 = vsel %vm1413_vm6, nan, %v1423_v44  ;;  %v4740_v19 = vadd.s32 4294967294, %v2306_v6  ;;  %v3186_v43 = vmul.u32 %v3182_v29, %v3180_v28  ;;  %v3187_v60 = vshll.u32 %v3184_v59, 16  ;;  %v471_v44 = vpop.f32.mrf.mxu2 }
 0x3f3   : > { %4530 = vst [vmem:[%s5494_s4 + $0x28] sm:$0xff] %v1424_v54  ;;  %vm2202_vm10 = vcmp.lt.s32.totalorder %v7455_v2, 0  ;;  %v3188_v1 = vshrl.u32 %v3184_v59, 16  ;;  %v3189_v50 = vshll.u32 %v3185_v27, 16  ;;  %v3206_v48 = vmul.u32 %v3204_v56, %v3179_v14 }
 0x3f4   : > { %vm4741_vm14 = vcmp.lt.s32.totalorder %v4740_v19, 0  ;;  %vm3191_vm12 = vc.u32 %v3183_v42, %v3187_v60  ;;  %v3193_v8 = vadd.s32 %v3187_v60, %v3183_v42  ;;  %v3207_v51 = vmul.u32 %v3203_v35, %v3180_v28 }
 0x3f5   : > { %v2309_v39 = vsel %vm4741_vm14, 0, %v4740_v19  ;;  %v3192_v26 = vsel %vm3191_vm12, 1, %v4970_v30  ;;  %v3205_v38 = vmul.u32 %v3203_v35, %v3179_v14  ;;  %v3208_v23 = vmul.u32 %v3204_v56, %v3180_v28 }
 0x3f6   : > { %v2310_v20 = vsub.s32 32, %v2309_v39  ;;  %v2314_v62 = vsub.s32 4294967266, %v2309_v39  ;;  %v3194_v47 = vadd.s32 %v3192_v26, %v3186_v43  ;;  %vm3195_vm13 = vc.u32 %v3193_v8, %v3189_v50 }
 0x3f7   : > { %v3209_v22 = vshll.u32 %v3206_v48, 16  ;;  %v2311_v58 = vshll.u32 %v2302_v49, %v2309_v39  ;;  %v3196_v33 = vsel %vm3195_vm13, 1, %v4970_v30  ;;  %v3211_v17 = vshll.u32 %v3207_v51, 16 }
 0x3f8   : > { %v2312_v18 = vshrl.u32 %v2294_v37, %v2310_v20  ;;  %v2315_v61 = vadd.s32 127, %v2314_v62  ;;  %v3198_v31 = vadd.s32 %v3196_v33, %v3194_v47  ;;  %v3166_v55 = vsel %vm3162_vm3, %v3146_v25, %v7626_v40 }
 0x3f9   : > { %vm3213_vm15 = vc.u32 %v3205_v38, %v3209_v22  ;;  %v3215_v0 = vadd.s32 %v3209_v22, %v3205_v38  ;;  %v4215_v49 = vand.u32 2147483647, %v7661_v63  ;;  %v3168_v41 = vsel %vm3164_vm5, %v7624_v32, %v3167_v5 }
 0x3fa   : > { %v2313_v3 = vor.u32 %v2312_v18, %v2311_v58  ;;  %v2316_v21 = vshll.u32 %v2315_v61, 23  ;;  %v3214_v14 = vsel %vm3213_vm15, 1, %v4970_v30  ;;  %v3199_v57 = vadd.s32 %v3198_v31, %v3188_v1 }
 0x3fb   : > { %v3216_v29 = vadd.s32 %v3214_v14, %v3208_v23  ;;  %vm3217_vm2 = vc.u32 %v3215_v0, %v3211_v17  ;;  %v3190_v12 = vshrl.u32 %v3185_v27, 16  ;;  %v2325_v40 = vsel %vm2202_vm10, %v2324_v10, %v7628_v53 }
 0x3fc   : > { %v2317_v16 = vor.u32 4788187, %v2316_v21  ;;  %v3218_v28 = vsel %vm3217_vm2, 1, %v4970_v30  ;;  %v3210_v6 = vshrl.u32 %v3206_v48, 16  ;;  %v4218_v54 = vand.u32 2139095040, %v7661_v63 }
 0x3fd   : > { %v3220_v56 = vadd.s32 %v3218_v28, %v3216_v29  ;;  %v2320_v35 = vcvt.s32.f32 %v2313_v3  ;;  %v3200_v37 = vadd.s32 %v3199_v57, %v3190_v12  ;;  %v3212_v19 = vshrl.u32 %v3207_v51, 16 }
 0x3fe   : > { %v2318_v59 = vand.u32 2147483647, %v2317_v16  ;;  %v4219_v42 = vshrl.u32 %v4218_v54, 23  ;;  %v4222_v32 = vand.u32 8388607, %v4215_v49  ;;  %v7692_v27 = vadd.f32 %v7452_v45, %v471_v44 }
 0x3ff   : > { %v3221_v25 = vadd.s32 %v3220_v56, %v3210_v6  ;;  %v3219_v43 = vadd.s32 %v3215_v0, %v3211_v17  ;;  %vm7696_vm0 = vcmp.le.f32.partialorder %v2200_v52, 0.7853982  ;;  %v3169_v10 = vsel %vm3163_vm4, %v3166_v55, %v3168_v41 }
 0x400   : > { %v2321_v5 = vmul.f32 %v2320_v35, %v2318_v59  ;;  %v4778_v1 = vadd.s32 4294967169, %v4219_v42  ;;  %v2327_v48 = vsel %vm7696_vm0, 0, %v2325_v40  ;;  %v4223_v39 = vor.u32 8388608, %v4222_v32 }
 0x401   : > { %v3222_v60 = vadd.s32 %v3221_v25, %v3212_v19  ;;  %vm3225_vm1 = vc.u32 %v3200_v37, %v3219_v43  ;;  %v3288_v51 = vand.u32 2139095040, %v7692_v27  ;;  %v3223_v20 = vmul.u32 %v7649_v34, %v3169_v10 }
 0x402   : > { %v2322_v50 = vxor.u32 2147483648, %v2321_v5  ;;  %v4225_v8 = vadd.s32 1, %v4778_v1  ;;  %v2344_v38 = vadd.s32 3, %v2327_v48  ;;  %v7711_v58 = vshll.u32 %v4223_v39, 8 }
 0x403   : > { %v3226_v45 = vadd.s32 1, %v3222_v60  ;;  %v3289_v18 = vshrl.u32 %v3288_v51, 23  ;;  %v7717_v55 = vadd.s32 %v3219_v43, %v3200_v37  ;;  %v3285_v57 = vand.u32 2147483647, %v7692_v27 }
 0x404   : > { %v2323_v52 = vsel %vm2202_vm10, %v2322_v50, %v2321_v5  ;;  %vm4226_vm3 = vcmp.gt.s32.totalorder %v4225_v8, 0  ;;  %v7715_v3 = vand.u32 3, %v2344_v38  ;;  %v7720_v14 = vand.u32 65535, %v7711_v58 }
 0x405   : > { %v2326_v36 = vsel %vm7696_vm0, %v7455_v2, %v2323_v52  ;;  %v3227_v62 = vsel %vm3225_vm1, %v3226_v45, %v3222_v60  ;;  %v4227_v23 = vsel %vm4226_vm3, %v4225_v8, 0  ;;  %v4760_v29 = vadd.s32 4294967169, %v3289_v18 }
 0x406   : > { %v2328_v26 = vmul.f32 %v2326_v36, %v2326_v36  ;;  %v3228_v47 = vadd.s32 %v3227_v62, %v3223_v20  ;;  %v4229_v22 = vand.u32 31, %v4227_v23  ;;  %vm3132_vm5 = vcmp.lt.s32.totalorder %v7485_v4, 0 }
 0x407   : > { %v7724_v28 = vshrl.u32 %v4227_v23, 5  ;;  %vm2350_vm4 = vcmp.eq.s32.totalorder %v7715_v3, 2  ;;  %vm2347_vm6 = vcmp.eq.s32.totalorder %v7715_v3, 0  ;;  %vm2346_vm7 = vcmp.lt.s32.totalorder %v7715_v3, 2 }
 0x408   : > { %v2329_v61 = vmul.f32 -0.001358992, %v2328_v26  ;;  %v2336_v33 = vmul.f32 -0.00019511016, %v2328_v26  ;;  %v3229_v31 = vadd.s32 536870912, %v3228_v47  ;;  %v7713_v17 = vsub.s32 32, %v4229_v22 }
 0x409   : > { %v4232_v44 = vshll.u32 %v4964_v7, %v4229_v22  ;;  %v4235_v37 = vshll.u32 %v4965_v9, %v4229_v22  ;;  %v4238_v19 = vshll.u32 %v4966_v11, %v4229_v22  ;;  %v4241_v42 = vshll.u32 %v4967_v13, %v4229_v22 }
 0x40a   : > { %v2330_v34 = vadd.f32 0.041655596, %v2329_v61  ;;  %v2337_v0 = vadd.f32 0.008332121, %v2336_v33  ;;  %v3230_v21 = vshrl.u32 %v3229_v31, 30  ;;  %v4233_v40 = vshrl.u32 %v4965_v9, %v7713_v17 }
 0x40b   : > { %v4236_v6 = vshrl.u32 %v4966_v11, %v7713_v17  ;;  %v4242_v56 = vshrl.u32 %v4968_v15, %v7713_v17  ;;  %v4239_v25 = vshrl.u32 %v4967_v13, %v7713_v17  ;;  %v4245_v32 = vshrl.u32 %v4969_v24, %v7713_v17 }
 0x40c   : > { %v2331_v16 = vmul.f32 %v2330_v34, %v2328_v26  ;;  %v2338_v41 = vmul.f32 %v2337_v0, %v2328_v26  ;;  %v3231_v12 = vshll.u32 %v3230_v21, 30  ;;  %vm2343_vm9 = vweird.f32 %v7455_v2 }
 0x40d   : > { %v3254_v10 = vsub.s32 4, %v3230_v21  ;;  %v4234_v60 = vor.u32 %v4233_v40, %v4232_v44  ;;  %v4237_v1 = vor.u32 %v4236_v6, %v4235_v37  ;;  %v4243_v50 = vor.u32 %v4242_v56, %v4241_v42 }
 0x40e   : > { %v2332_v54 = vadd.f32 -0.4999988, %v2331_v16  ;;  %v2339_v59 = vadd.f32 -0.16666654, %v2338_v41  ;;  %v7734_v35 = vsub.s32 %v3228_v47, %v3231_v12  ;;  %v4244_v8 = vshll.u32 %v4968_v15, %v4229_v22 }
 0x40f   : > { %v4240_v52 = vor.u32 %v4239_v25, %v4238_v19  ;;  %v4265_v20 = vshrl.u32 %v7711_v58, 16  ;;  %v7751_v62 = vadd.s32 1, %v4760_v29  ;;  %vm7755_vm11 = vcmp.le.f32.partialorder %v3130_v46, 0.7853982 }
 0x410   : > { %v2333_v5 = vmul.f32 %v2332_v54, %v2328_v26  ;;  %v2340_v43 = vmul.f32 %v2339_v59, %v2328_v26  ;;  %vm3233_vm8 = vcmp.lt.s32.totalorder %v7734_v35, 0  ;;  %v3234_v53 = vsub.s32 0, %v7734_v35 }
 0x411   : > { %v4246_v23 = vor.u32 %v4245_v32, %v4244_v8  ;;  %vm4247_vm10 = vcmp.lt.s32.totalorder %v7724_v28, 1  ;;  %v7762_v22 = vsel %vm3132_vm5, %v3254_v10, %v3230_v21  ;;  %vm4250_vm14 = vcmp.lt.s32.totalorder %v7724_v28, 4 }
 0x412   : > { %v2334_v48 = vadd.f32 1.0, %v2333_v5  ;;  %v2341_v45 = vadd.f32 1.0, %v2340_v43  ;;  %v3235_v39 = vsel %vm3233_vm8, %v3234_v53, %v7734_v35  ;;  %vm4248_vm12 = vcmp.lt.s32.totalorder %v7724_v28, 2 }
 0x413   : > { %v3236_v51 = vclz %v3235_v39  ;;  %vm4249_vm13 = vcmp.lt.s32.totalorder %v7724_v28, 3  ;;  %v4256_v46 = vsel %vm4250_vm14, %v4243_v50, 920167782  ;;  %v4259_v34 = vsel %vm4247_vm10, %v4237_v1, %v4240_v52 }
 0x414   : > { %v2342_v26 = vmul.f32 %v2341_v45, %v2326_v36  ;;  %v2351_v38 = vxor.u32 2147483648, %v2334_v48  ;;  %v4255_v36 = vsel %vm4247_vm10, %v4234_v60, %v4237_v1  ;;  %v4257_v31 = vsel %vm4249_vm13, %v4240_v52, %v4256_v46 }
 0x415   : > { %v4758_v18 = vadd.s32 4294967294, %v3236_v51  ;;  %v4258_v29 = vsel %vm4248_vm12, %v4255_v36, %v4257_v31  ;;  %v4260_v16 = vsel %vm4250_vm14, %v4246_v23, 1326507024  ;;  %v4252_v40 = vsel %vm4250_vm14, %v4240_v52, 2102212464 }
 0x416   : > { %v2348_v61 = vxor.u32 2147483648, %v2342_v26  ;;  %v2352_v33 = vsel %vm2350_vm4, %v2351_v38, %v2342_v26  ;;  %v4261_v56 = vsel %vm4249_vm13, %v4243_v50, %v4260_v16  ;;  %v4288_v54 = vand.u32 65535, %v4258_v29 }
 0x417   : > { %vm4759_vm15 = vcmp.lt.s32.totalorder %v4758_v18, 0  ;;  %v4289_v59 = vshrl.u32 %v4258_v29, 16  ;;  %v4262_v25 = vsel %vm4248_vm12, %v4259_v34, %v4261_v56  ;;  %v4231_v42 = vshrl.u32 %v4964_v7, %v7713_v17 }
 0x418   : > { %v2349_v0 = vsel %vm2347_vm6, %v2334_v48, %v2348_v61  ;;  %v3239_v21 = vsel %vm4759_vm15, 0, %v4758_v18  ;;  %v4266_v32 = vand.u32 65535, %v4262_v25  ;;  %v4267_v2 = vshrl.u32 %v4262_v25, 16 }
 0x419   : > { %v2353_v41 = vsel %vm2346_vm7, %v2349_v0, %v2352_v33  ;;  %v3240_v12 = vsub.s32 32, %v3239_v21  ;;  %v3244_v44 = vsub.s32 4294967266, %v3239_v21  ;;  %v3241_v37 = vshll.u32 %v7734_v35, %v3239_v21 }
 0x41a   : > { %v2354_v6 = vsel %vm2343_vm9, nan, %v2353_v41  ;;  %v4291_v5 = vmul.u32 %v4289_v59, %v7720_v14  ;;  %v3257_v10 = vsel %vm7755_vm11, 0, %v7762_v22  ;;  %v4292_v35 = vmul.u32 %v4288_v54, %v4265_v20 }
 0x41b   : > { %4536 = vst [vmem:[%s5494_s4 + $0x58] sm:$0xff] %v2354_v6  ;;  %v3242_v19 = vshrl.u32 %v7717_v55, %v3240_v12  ;;  %v3245_v3 = vadd.s32 127, %v3244_v44  ;;  %v4251_v55 = vsel %vm4247_vm10, %v4231_v42, %v4234_v60  ;;  %v4253_v50 = vsel %vm4249_vm13, %v4237_v1, %v4252_v40 }
 0x41c   : > { %v4269_v48 = vmul.u32 %v4267_v2, %v7720_v14  ;;  %v4270_v17 = vmul.u32 %v4266_v32, %v4265_v20  ;;  %v4290_v39 = vmul.u32 %v4288_v54, %v7720_v14  ;;  %v4293_v8 = vmul.u32 %v4289_v59, %v4265_v20 }
 0x41d   : > { %v3243_v43 = vor.u32 %v3242_v19, %v3241_v37  ;;  %v3246_v53 = vshll.u32 %v3245_v3, 23  ;;  %v4294_v51 = vshll.u32 %v4291_v5, 16  ;;  %v4268_v26 = vmul.u32 %v4266_v32, %v7720_v14 }
 0x41e   : > { %v4271_v38 = vmul.u32 %v4267_v2, %v4265_v20  ;;  %v4272_v23 = vshll.u32 %v4269_v48, 16  ;;  %v4274_v22 = vshll.u32 %v4270_v17, 16  ;;  %v4296_v36 = vshll.u32 %v4292_v35, 16 }
 0x41f   : > { %v3247_v45 = vor.u32 4788187, %v3246_v53  ;;  %v3250_v52 = vcvt.s32.f32 %v3243_v43  ;;  %vm4298_vm2 = vc.u32 %v4290_v39, %v4294_v51  ;;  %v4300_v61 = vadd.s32 %v4294_v51, %v4290_v39 }
 0x420   : > { %vm4276_vm0 = vc.u32 %v4268_v26, %v4272_v23  ;;  %v4278_v60 = vadd.s32 %v4272_v23, %v4268_v26  ;;  %v4299_v1 = vsel %vm4298_vm2, 1, %v4970_v30  ;;  %vm3296_vm1 = vcmp.gt.s32.totalorder %v7751_v62, 0 }
 0x421   : > { %v3248_v18 = vand.u32 2147483647, %v3247_v45  ;;  %v4277_v33 = vsel %vm4276_vm0, 1, %v4970_v30  ;;  %v4301_v31 = vadd.s32 %v4299_v1, %v4293_v8  ;;  %v4295_v14 = vshrl.u32 %v4291_v5, 16 }
 0x422   : > { %v4279_v34 = vadd.s32 %v4277_v33, %v4271_v38  ;;  %vm4280_vm3 = vc.u32 %v4278_v60, %v4274_v22  ;;  %vm4302_vm4 = vc.u32 %v4300_v61, %v4296_v36  ;;  %v3297_v29 = vsel %vm3296_vm1, %v7751_v62, 0 }
 0x423   : > { %v3251_v46 = vmul.f32 %v3250_v52, %v3248_v18  ;;  %v4281_v0 = vsel %vm4280_vm3, 1, %v4970_v30  ;;  %v4303_v21 = vsel %vm4302_vm4, 1, %v4970_v30  ;;  %v4273_v16 = vshrl.u32 %v4269_v48, 16 }
 0x424   : > { %v4283_v41 = vadd.s32 %v4281_v0, %v4279_v34  ;;  %v4305_v12 = vadd.s32 %v4303_v21, %v4301_v31  ;;  %v3299_v44 = vand.u32 31, %v3297_v29  ;;  %v4254_v6 = vsel %vm4248_vm12, %v4251_v55, %v4253_v50 }
 0x425   : > { %v3252_v20 = vxor.u32 2147483648, %v3251_v46  ;;  %v4275_v56 = vshrl.u32 %v4270_v17, 16  ;;  %v4297_v54 = vshrl.u32 %v4292_v35, 16  ;;  %v3274_v25 = vadd.s32 3, %v3257_v10 }
 0x426   : > { %v4284_v37 = vadd.s32 %v4283_v41, %v4273_v16  ;;  %v4306_v19 = vadd.s32 %v4305_v12, %v4295_v14  ;;  %v7822_v3 = vsub.s32 32, %v3299_v44  ;;  %v3292_v42 = vand.u32 8388607, %v3285_v57 }
 0x427   : > { %v3253_v40 = vsel %vm3132_vm5, %v3252_v20, %v3251_v46  ;;  %v7828_v2 = vadd.s32 %v4300_v61, %v4296_v36  ;;  %v4308_v5 = vmul.u32 %v7711_v58, %v4254_v6  ;;  %v7831_v47 = vshrl.u32 %v3297_v29, 5 }
 0x428   : > { %v3256_v59 = vsel %vm7755_vm11, %v7485_v4, %v3253_v40  ;;  %v7826_v32 = vadd.s32 %v4284_v37, %v4275_v56  ;;  %v4307_v28 = vadd.s32 %v4306_v19, %v4297_v54  ;;  %v3305_v35 = vshll.u32 %v4965_v9, %v3299_v44 }
 0x429   : > { %v3258_v62 = vmul.f32 %v3256_v59, %v3256_v59  ;;  %v3306_v55 = vshrl.u32 %v4966_v11, %v7822_v3  ;;  %v3309_v50 = vshrl.u32 %v4967_v13, %v7822_v3  ;;  %v3303_v58 = vshrl.u32 %v4965_v9, %v7822_v3 }
 0x42a   : > { %vm4310_vm5 = vc.u32 %v7826_v32, %v7828_v2  ;;  %v4311_v10 = vadd.s32 1, %v4307_v28  ;;  %v3308_v45 = vshll.u32 %v4966_v11, %v3299_v44  ;;  %v3311_v8 = vshll.u32 %v4967_v13, %v3299_v44 }
 0x42b   : > { %v3259_v43 = vmul.f32 -0.001358992, %v3258_v62  ;;  %v3266_v53 = vmul.f32 -0.00019511016, %v3258_v62  ;;  %v3312_v51 = vshrl.u32 %v4968_v15, %v7822_v3  ;;  %v3314_v52 = vshll.u32 %v4968_v15, %v3299_v44 }
 0x42c   : > { %v4312_v39 = vsel %vm4310_vm5, %v4311_v10, %v4307_v28  ;;  %v3315_v18 = vshrl.u32 %v4969_v24, %v7822_v3  ;;  %v3302_v22 = vshll.u32 %v4964_v7, %v3299_v44  ;;  %v7850_v36 = vor.u32 %v3306_v55, %v3305_v35 }
 0x42d   : > { %v3260_v48 = vadd.f32 0.041655596, %v3259_v43  ;;  %v3267_v17 = vadd.f32 0.008332121, %v3266_v53  ;;  %v4313_v23 = vadd.s32 %v4312_v39, %v4308_v5  ;;  %v7852_v60 = vor.u32 %v3309_v50, %v3308_v45 }
 0x42e   : > { %v3313_v1 = vor.u32 %v3312_v51, %v3311_v8  ;;  %v3316_v31 = vor.u32 %v3315_v18, %v3314_v52  ;;  %v3275_v34 = vand.u32 3, %v3274_v25  ;;  %v3293_v14 = vor.u32 8388608, %v3292_v42  ;;  %v4883_v18 = vld [vmem:[%s5072_s18] ss:$0 sm:$0xff]  ;;  %s4784_s18 = sshll.u32 %s4954_s15, 3  ;;  %s4552_s15 = scalar_lea.sflag [#allocation4], %s5059_s6 }
 0x42f   : > { %v3261_v26 = vmul.f32 %v3260_v48, %v3258_v62  ;;  %v3268_v38 = vmul.f32 %v3267_v17, %v3258_v62  ;;  %v4314_v33 = vadd.s32 536870912, %v4313_v23  ;;  %v7854_v20 = vor.u32 %v3303_v58, %v3302_v22  ;;  %v492_v58 = vpop.f32.mrf.mxu3  ;;  %s4565_s8 = scalar_lea.hbm %s8085_s3, %s4784_s18 }
 0x430   : > { %vm3320_vm6 = vcmp.lt.s32.totalorder %v7831_v47, 4  ;;  %vm3317_vm7 = vcmp.lt.s32.totalorder %v7831_v47, 1  ;;  %vm3319_vm8 = vcmp.lt.s32.totalorder %v7831_v47, 3  ;;  %v7879_v19 = vshll.u32 %v3293_v14, 8  ;;  %s4568_s10 = sshll.u32 %s4565_s8, 4  ;;  %s4569_s10 = int_to_ptr.hbm [resolvable:$true] %s4568_s10 }
 0x431   : > { %v3262_v61 = vadd.f32 -0.4999988, %v3261_v26  ;;  %v3269_v46 = vadd.f32 -0.16666654, %v3268_v38  ;;  %v7856_v29 = vshrl.u32 %v4314_v33, 30  ;;  %v3329_v6 = vsel %vm3317_vm7, %v7850_v36, %v7852_v60  ;;  %s4898_s11 = sshra.s32 %s4569_s10, 4  ;;  %s4899_s11 = int_to_ptr.hbm [resolvable:$true] %s4898_s11 }
 0x432   : > { %v3326_v16 = vsel %vm3320_vm6, %v3313_v1, 920167782  ;;  %v3330_v41 = vsel %vm3320_vm6, %v3316_v31, 1326507024  ;;  %v3325_v56 = vsel %vm3317_vm7, %v7854_v20, %v7850_v36  ;;  %vm3318_vm9 = vcmp.lt.s32.totalorder %v7831_v47, 2  ;;  %s4900_s19 = scalar_lea.hbm %s4899_s11, 208  ;;  %p4905_p4 = scmp.lt.s32.totalorder %s4899_s11, %s8085_s3 }
 0x433   : > { %v3263_v0 = vmul.f32 %v3262_v61, %v3258_v62  ;;  %v3270_v21 = vmul.f32 %v3269_v46, %v3258_v62  ;;  %v4316_v40 = vshll.u32 %v7856_v29, 30  ;;  %v3327_v54 = vsel %vm3319_vm8, %v7852_v60, %v3326_v16  ;;  %p4901_p1 = scmp.ne.s32.totalorder %s4899_s11, %s4900_s19  ;;  %p4906_p6 = scmp.lt.s32.totalorder %s4904_s26, %s4900_s19 }
 0x434   : > { %v3331_v37 = vsel %vm3319_vm8, %v3313_v1, %v3330_v41  ;;  %vm3276_vm11 = vcmp.lt.s32.totalorder %v3275_v34, 2  ;;  %vm3277_vm10 = vcmp.eq.s32.totalorder %v3275_v34, 0  ;;  %v3328_v53 = vsel %vm3318_vm9, %v3325_v56, %v3327_v54 }
 0x435   : > { %v3264_v12 = vadd.f32 1.0, %v3263_v0  ;;  %v3271_v44 = vadd.f32 1.0, %v3270_v21  ;;  %v4317_v42 = vsub.s32 %v4313_v23, %v4316_v40  ;;  %v3332_v28 = vsel %vm3318_vm9, %v3329_v6, %v3331_v37  ;;  %p4902_p2 = pnand %p4901_p1, %p5033_p5  ;;  %p4907_p7 = por %p4906_p6, %p4905_p4 }
 0x436   : > { %vm3280_vm12 = vcmp.eq.s32.totalorder %v3275_v34, 2  ;;  %v3334_v35 = vand.u32 65535, %v7879_v19  ;;  %v3337_v10 = vshrl.u32 %v3332_v28, 16  ;;  %v3335_v17 = vshrl.u32 %v7879_v19, 16 }
 0x437   : > { %v3272_v62 = vmul.f32 %v3271_v44, %v3256_v59  ;;  %v3281_v25 = vxor.u32 2147483648, %v3264_v12  ;;  %vm4318_vm14 = vcmp.lt.s32.totalorder %v4317_v42, 0  ;;  %v4319_v43 = vsub.s32 0, %v4317_v42  ;;  %p4903_p3 = pneg %p4902_p2 }
 0x438   : > { %v3336_v59 = vand.u32 65535, %v3332_v28  ;;  %vm3273_vm13 = vweird.f32 %v7485_v4  ;;  %v3359_v8 = vshrl.u32 %v3328_v53, 16  ;;  %v3339_v52 = vmul.u32 %v3337_v10, %v3334_v35 }
 0x439   : > { %v3278_v5 = vxor.u32 2147483648, %v3272_v62  ;;  %v3282_v50 = vsel %vm3280_vm12, %v3281_v25, %v3272_v62  ;;  %v4320_v48 = vsel %vm4318_vm14, %v4319_v43, %v4317_v42  ;;  %v3358_v38 = vand.u32 65535, %v3328_v53  ;;  %p4908_p8 = pnand %p4907_p7, %p4903_p3 }
 0x43a   : > { %v4321_v39 = vclz %v4320_v48  ;;  %v3340_v26 = vmul.u32 %v3336_v59, %v3335_v17  ;;  %v7892_v22 = vadd.f32 %v4883_v18, %v492_v58  ;;  %v4309_v1 = vadd.s32 %v7828_v2, %v7826_v32 }
 0x43b   : > { %v3279_v55 = vsel %vm3277_vm10, %v3264_v12, %v3278_v5  ;;  %v3338_v61 = vmul.u32 %v3336_v59, %v3334_v35  ;;  %v3341_v46 = vmul.u32 %v3337_v10, %v3335_v17  ;;  %v3342_v33 = vshll.u32 %v3339_v52, 16 }
 0x43c   : > { %v3283_v45 = vsel %vm3276_vm11, %v3279_v55, %v3282_v50  ;;  %v4779_v23 = vadd.s32 4294967294, %v4321_v39  ;;  %v3343_v4 = vshrl.u32 %v3339_v52, 16  ;;  %v3344_v31 = vshll.u32 %v3340_v26, 16 }
 0x43d   : > { %v3284_v51 = vsel %vm3273_vm13, nan, %v3283_v45  ;;  %v3361_v34 = vmul.u32 %v3359_v8, %v3334_v35  ;;  %vm3346_vm2 = vc.u32 %v3338_v61, %v3342_v33  ;;  %v3348_v0 = vadd.s32 %v3342_v33, %v3338_v61 }
 0x43e   : > { %4542 = vst [vmem:[%s5494_s4 + $0x88] sm:$0xff] %v3284_v51  ;;  %vm4780_vm15 = vcmp.lt.s32.totalorder %v4779_v23, 0  ;;  %v3362_v21 = vmul.u32 %v3358_v38, %v3335_v17  ;;  %v3347_v12 = vsel %vm3346_vm2, 1, %v4970_v30  ;;  %v3360_v44 = vmul.u32 %v3358_v38, %v3334_v35 }
 0x43f   : > { %v4324_v14 = vsel %vm4780_vm15, 0, %v4779_v23  ;;  %v3349_v40 = vadd.s32 %v3347_v12, %v3341_v46  ;;  %vm3350_vm0 = vc.u32 %v3348_v0, %v3344_v31  ;;  %v3363_v6 = vmul.u32 %v3359_v8, %v3335_v17 }
 0x440   : > { %v4325_v16 = vsub.s32 32, %v4324_v14  ;;  %v4329_v41 = vsub.s32 4294967266, %v4324_v14  ;;  %v3364_v32 = vshll.u32 %v3361_v34, 16  ;;  %v4326_v2 = vshll.u32 %v4317_v42, %v4324_v14 }
 0x441   : > { %v3351_v37 = vsel %vm3350_vm0, 1, %v4970_v30  ;;  %v3366_v25 = vshll.u32 %v3362_v21, 16  ;;  %v3301_v53 = vshrl.u32 %v4964_v7, %v7822_v3  ;;  %v3322_v59 = vsel %vm3320_vm6, %v7852_v60, 2102212464 }
 0x442   : > { %v4327_v56 = vshrl.u32 %v4309_v1, %v4325_v16  ;;  %v4330_v54 = vadd.s32 127, %v4329_v41  ;;  %v3353_v62 = vadd.s32 %v3351_v37, %v3349_v40  ;;  %vm3368_vm1 = vc.u32 %v3360_v44, %v3364_v32 }
 0x443   : > { %v3370_v28 = vadd.s32 %v3364_v32, %v3360_v44  ;;  %v3369_v35 = vsel %vm3368_vm1, 1, %v4970_v30  ;;  %v3321_v50 = vsel %vm3317_vm7, %v3301_v53, %v7854_v20  ;;  %v3345_v48 = vshrl.u32 %v3340_v26, 16 }
 0x444   : > { %v4328_v5 = vor.u32 %v4327_v56, %v4326_v2  ;;  %v4331_v43 = vshll.u32 %v4330_v54, 23  ;;  %v3354_v42 = vadd.s32 %v3353_v62, %v3343_v4  ;;  %v3371_v10 = vadd.s32 %v3369_v35, %v3363_v6 }
 0x445   : > { %vm3372_vm3 = vc.u32 %v3370_v28, %v3366_v25  ;;  %v4339_v58 = vsub.s32 4, %v7856_v29  ;;  %v3365_v3 = vshrl.u32 %v3361_v34, 16  ;;  %v4373_v39 = vand.u32 2139095040, %v7892_v22 }
 0x446   : > { %v4332_v55 = vor.u32 4788187, %v4331_v43  ;;  %v3373_v17 = vsel %vm3372_vm3, 1, %v4970_v30  ;;  %v4335_v51 = vcvt.s32.f32 %v4328_v5  ;;  %v3323_v60 = vsel %vm3319_vm8, %v7850_v36, %v3322_v59 }
 0x447   : > { %v3375_v45 = vadd.s32 %v3373_v17, %v3371_v10  ;;  %v7913_v52 = vadd.s32 %v3354_v42, %v3345_v48  ;;  %v3367_v38 = vshrl.u32 %v3362_v21, 16  ;;  %v4374_v20 = vshrl.u32 %v4373_v39, 23 }
 0x448   : > { %v4333_v8 = vand.u32 2147483647, %v4332_v55  ;;  %vm4217_vm4 = vcmp.lt.s32.totalorder %v7661_v63, 0  ;;  %v7916_v18 = vadd.s32 %v3370_v28, %v3366_v25  ;;  %v4370_v1 = vand.u32 2147483647, %v7892_v22 }
 0x449   : > { %v3376_v23 = vadd.s32 %v3375_v45, %v3365_v3  ;;  %v4340_v61 = vsel %vm4217_vm4, %v4339_v58, %v7856_v29  ;;  %v3324_v46 = vsel %vm3318_vm9, %v3321_v50, %v3323_v60  ;;  %v4781_v4 = vadd.s32 4294967169, %v4374_v20 }
 0x44a   : > { %v4336_v26 = vmul.f32 %v4335_v51, %v4333_v8  ;;  %vm3380_vm5 = vc.u32 %v7913_v52, %v7916_v18  ;;  %vm4216_vm6 = vcmp.le.f32.partialorder %v4215_v49, 0.7853982  ;;  %v3378_v21 = vmul.u32 %v7879_v19, %v3324_v46 }
 0x44b   : > { %v3377_v33 = vadd.s32 %v3376_v23, %v3367_v38  ;;  %v4380_v34 = vadd.s32 1, %v4781_v4  ;;  %v4342_v0 = vsel %vm4216_vm6, 0, %v4340_v61  ;;  %v4377_v29 = vand.u32 8388607, %v4370_v1 }
 0x44c   : > { %v4337_v36 = vxor.u32 2147483648, %v4336_v26  ;;  %v4359_v40 = vadd.s32 3, %v4342_v0  ;;  %vm4358_vm10 = vweird.f32 %v7661_v63  ;;  %vm3287_vm1 = vcmp.lt.s32.totalorder %v7692_v27, 0 }
 0x44d   : > { %v3381_v31 = vadd.s32 1, %v3377_v33  ;;  %vm4381_vm7 = vcmp.gt.s32.totalorder %v4380_v34, 0  ;;  %v4378_v56 = vor.u32 8388608, %v4377_v29  ;;  %vm7999_vm3 = vcmp.le.f32.partialorder %v3285_v57, 0.7853982 }
 0x44e   : > { %v4338_v14 = vsel %vm4217_vm4, %v4337_v36, %v4336_v26  ;;  %v4382_v44 = vsel %vm4381_vm7, %v4380_v34, 0  ;;  %v4360_v25 = vand.u32 3, %v4359_v40 }
 0x44f   : > { %v4341_v47 = vsel %vm4216_vm6, %v7661_v63, %v4338_v14  ;;  %v3382_v16 = vsel %vm3380_vm5, %v3381_v31, %v3377_v33  ;;  %v4384_v6 = vand.u32 31, %v4382_v44  ;;  %v7935_v53 = vshll.u32 %v4378_v56, 8 }
 0x450   : > { %v4343_v41 = vmul.f32 %v4341_v47, %v4341_v47  ;;  %v3383_v12 = vadd.s32 %v3382_v16, %v3378_v21  ;;  %v7937_v35 = vshrl.u32 %v4382_v44, 5  ;;  %vm4362_vm8 = vcmp.eq.s32.totalorder %v4360_v25, 0 }
 0x451   : > { %v7930_v54 = vsub.s32 32, %v4384_v6  ;;  %v4387_v17 = vshll.u32 %v4964_v7, %v4384_v6  ;;  %v4390_v58 = vshll.u32 %v4965_v9, %v4384_v6  ;;  %v4396_v45 = vshll.u32 %v4967_v13, %v4384_v6 }
 0x452   : > { %v4344_v32 = vmul.f32 -0.001358992, %v4343_v41  ;;  %v4351_v49 = vmul.f32 -0.00019511016, %v4343_v41  ;;  %v3384_v2 = vadd.s32 536870912, %v3383_v12  ;;  %vm4361_vm9 = vcmp.lt.s32.totalorder %v4360_v25, 2 }
 0x453   : > { %v4388_v59 = vshrl.u32 %v4965_v9, %v7930_v54  ;;  %v4391_v42 = vshrl.u32 %v4966_v11, %v7930_v54  ;;  %v4397_v10 = vshrl.u32 %v4968_v15, %v7930_v54  ;;  %v4394_v3 = vshrl.u32 %v4967_v13, %v7930_v54 }
 0x454   : > { %v4345_v37 = vadd.f32 0.041655596, %v4344_v32  ;;  %v4352_v19 = vadd.f32 0.008332121, %v4351_v49  ;;  %v7932_v62 = vshrl.u32 %v3384_v2, 30  ;;  %v4400_v39 = vshrl.u32 %v4969_v24, %v7930_v54 }
 0x455   : > { %v7953_v38 = vor.u32 %v4388_v59, %v4387_v17  ;;  %v7955_v23 = vor.u32 %v4391_v42, %v4390_v58  ;;  %v4393_v9 = vshll.u32 %v4966_v11, %v4384_v6  ;;  %v4398_v20 = vor.u32 %v4397_v10, %v4396_v45 }
 0x456   : > { %v4346_v28 = vmul.f32 %v4345_v37, %v4343_v41  ;;  %v4353_v5 = vmul.f32 %v4352_v19, %v4343_v41  ;;  %v3386_v43 = vshll.u32 %v7932_v62, 30  ;;  %v4399_v46 = vshll.u32 %v4968_v15, %v4384_v6 }
 0x457   : > { %vm4365_vm14 = vcmp.eq.s32.totalorder %v4360_v25, 2  ;;  %v3379_v24 = vadd.s32 %v7916_v18, %v7913_v52  ;;  %v7961_v4 = vor.u32 %v4394_v3, %v4393_v9  ;;  %vm4402_vm12 = vcmp.lt.s32.totalorder %v7937_v35, 1 }
 0x458   : > { %v4347_v55 = vadd.f32 -0.4999988, %v4346_v28  ;;  %v4354_v50 = vadd.f32 -0.16666654, %v4353_v5  ;;  %v3387_v48 = vsub.s32 %v3383_v12, %v3386_v43  ;;  %v4401_v34 = vor.u32 %v4400_v39, %v4399_v46 }
 0x459   : > { %vm4405_vm13 = vcmp.lt.s32.totalorder %v7937_v35, 4  ;;  %v4410_v11 = vsel %vm4402_vm12, %v7953_v38, %v7955_v23  ;;  %v4419_v15 = vand.u32 65535, %v7935_v53  ;;  %vm4403_vm15 = vcmp.lt.s32.totalorder %v7937_v35, 2 }
 0x45a   : > { %v4348_v8 = vmul.f32 %v4347_v55, %v4343_v41  ;;  %v4355_v51 = vmul.f32 %v4354_v50, %v4343_v41  ;;  %vm3388_vm11 = vcmp.lt.s32.totalorder %v3387_v48, 0  ;;  %v3389_v60 = vsub.s32 0, %v3387_v48 }
 0x45b   : > { %vm4404_vm2 = vcmp.lt.s32.totalorder %v7937_v35, 3  ;;  %v4411_v52 = vsel %vm4405_vm13, %v4398_v20, 920167782  ;;  %v4414_v29 = vsel %vm4402_vm12, %v7955_v23, %v7961_v4  ;;  %v4415_v12 = vsel %vm4405_vm13, %v4401_v34, 1326507024 }
 0x45c   : > { %v4349_v26 = vadd.f32 1.0, %v4348_v8  ;;  %v4356_v61 = vadd.f32 1.0, %v4355_v51  ;;  %v3390_v13 = vsel %vm3388_vm11, %v3389_v60, %v3387_v48  ;;  %v4412_v21 = vsel %vm4404_vm2, %v7961_v4, %v4411_v52 }
 0x45d   : > { %v3391_v33 = vclz %v3390_v13  ;;  %v4413_v41 = vsel %vm4403_vm15, %v4410_v11, %v4412_v21  ;;  %v4420_v32 = vshrl.u32 %v7935_v53, 16  ;;  %v4416_v2 = vsel %vm4404_vm2, %v4398_v20, %v4415_v12 }
 0x45e   : > { %v4357_v36 = vmul.f32 %v4356_v61, %v4341_v47  ;;  %v4366_v31 = vxor.u32 2147483648, %v4349_v26  ;;  %v4443_v56 = vand.u32 65535, %v4413_v41  ;;  %v4444_v37 = vshrl.u32 %v4413_v41, 16 }
 0x45f   : > { %v4761_v14 = vadd.s32 4294967294, %v3391_v33  ;;  %v4417_v25 = vsel %vm4403_vm15, %v4414_v29, %v4416_v2  ;;  %v4386_v33 = vshrl.u32 %v4964_v7, %v7930_v54  ;;  %v4407_v34 = vsel %vm4405_vm13, %v7961_v4, 2102212464 }
 0x460   : > { %v4363_v0 = vxor.u32 2147483648, %v4357_v36  ;;  %v4367_v18 = vsel %vm4365_vm14, %v4366_v31, %v4357_v36  ;;  %v4421_v43 = vand.u32 65535, %v4417_v25  ;;  %v4422_v59 = vshrl.u32 %v4417_v25, 16 }
 0x461   : > { %vm4762_vm0 = vcmp.lt.s32.totalorder %v4761_v14, 0  ;;  %v4446_v42 = vmul.u32 %v4444_v37, %v4419_v15  ;;  %v4447_v50 = vmul.u32 %v4443_v56, %v4420_v32  ;;  %v4445_v3 = vmul.u32 %v4443_v56, %v4419_v15 }
 0x462   : > { %v4364_v47 = vsel %vm4362_vm8, %v4349_v26, %v4363_v0  ;;  %v3394_v16 = vsel %vm4762_vm0, 0, %v4761_v14  ;;  %v4424_v63 = vmul.u32 %v4422_v59, %v4419_v15  ;;  %v4425_v17 = vmul.u32 %v4421_v43, %v4420_v32 }
 0x463   : > { %v4368_v44 = vsel %vm4361_vm9, %v4364_v47, %v4367_v18  ;;  %v3395_v40 = vsub.s32 32, %v3394_v16  ;;  %v3399_v6 = vsub.s32 4294967266, %v3394_v16  ;;  %v3396_v19 = vshll.u32 %v3387_v48, %v3394_v16 }
 0x464   : > { %v4369_v49 = vsel %vm4358_vm10, nan, %v4368_v44  ;;  %v4448_v45 = vmul.u32 %v4444_v37, %v4420_v32  ;;  %v4449_v39 = vshll.u32 %v4446_v42, 16  ;;  %v4423_v51 = vmul.u32 %v4421_v43, %v4419_v15 }
 0x465   : > { %4549 = vst [vmem:[%s5494_s4 + $0xc0] sm:$0xff] %v4369_v49  ;;  %v3397_v28 = vshrl.u32 %v3379_v24, %v3395_v40  ;;  %v3400_v5 = vadd.s32 127, %v3399_v6  ;;  %v4426_v60 = vmul.u32 %v4422_v59, %v4420_v32  ;;  %v4427_v9 = vshll.u32 %v4424_v63, 16 }
 0x466   : > { %v4429_v26 = vshll.u32 %v4425_v17, 16  ;;  %v4451_v61 = vshll.u32 %v4447_v50, 16  ;;  %vm4453_vm4 = vc.u32 %v4445_v3, %v4449_v39  ;;  %v4455_v57 = vadd.s32 %v4449_v39, %v4445_v3 }
 0x467   : > { %v3398_v10 = vor.u32 %v3397_v28, %v3396_v19  ;;  %v3401_v55 = vshll.u32 %v3400_v5, 23  ;;  %vm4431_vm5 = vc.u32 %v4423_v51, %v4427_v9  ;;  %v4433_v13 = vadd.s32 %v4427_v9, %v4423_v51 }
 0x468   : > { %v4454_v46 = vsel %vm4453_vm4, 1, %v4970_v30  ;;  %v4432_v36 = vsel %vm4431_vm5, 1, %v4970_v30  ;;  %vm4457_vm7 = vc.u32 %v4455_v57, %v4451_v61  ;;  %v3409_v15 = vsub.s32 4, %v7932_v62 }
 0x469   : > { %v3402_v48 = vor.u32 4788187, %v3401_v55  ;;  %v3405_v8 = vcvt.s32.f32 %v3398_v10  ;;  %v4456_v31 = vadd.s32 %v4454_v46, %v4448_v45  ;;  %v4434_v14 = vadd.s32 %v4432_v36, %v4426_v60 }
 0x46a   : > { %vm4435_vm6 = vc.u32 %v4433_v13, %v4429_v26  ;;  %v4458_v52 = vsel %vm4457_vm7, 1, %v4970_v30  ;;  %v4428_v18 = vshrl.u32 %v4424_v63, 16  ;;  %v4450_v7 = vshrl.u32 %v4446_v42, 16 }
 0x46b   : > { %v3403_v20 = vand.u32 2147483647, %v3402_v48  ;;  %v4436_v0 = vsel %vm4435_vm6, 1, %v4970_v30  ;;  %v4460_v54 = vadd.s32 %v4458_v52, %v4456_v31  ;;  %v4406_v4 = vsel %vm4402_vm12, %v4386_v33, %v7953_v38 }
 0x46c   : > { %v4438_v21 = vadd.s32 %v4436_v0, %v4434_v14  ;;  %v4408_v47 = vsel %vm4404_vm2, %v7955_v23, %v4407_v34  ;;  %v4430_v16 = vshrl.u32 %v4425_v17, 16  ;;  %v4452_v12 = vshrl.u32 %v4447_v50, 16 }
 0x46d   : > { %v3406_v24 = vmul.f32 %v3405_v8, %v3403_v20  ;;  %v4461_v44 = vadd.s32 %v4460_v54, %v4450_v7  ;;  %v4409_v6 = vsel %vm4403_vm15, %v4406_v4, %v4408_v47  ;;  %v4459_v49 = vadd.s32 %v4455_v57, %v4451_v61 }
 0x46e   : > { %v4439_v41 = vadd.s32 %v4438_v21, %v4428_v18  ;;  %v3410_v23 = vsel %vm3287_vm1, %v3409_v15, %v7932_v62  ;;  %v4463_v5 = vmul.u32 %v7935_v53, %v4409_v6  ;;  %vm3428_vm12 = vweird.f32 %v7692_v27 }
 0x46f   : > { %v3407_v11 = vxor.u32 2147483648, %v3406_v24  ;;  %v4462_v2 = vadd.s32 %v4461_v44, %v4452_v12  ;;  %v3412_v35 = vsel %vm7999_vm3, 0, %v3410_v23  ;;  %vm4372_vm15 = vcmp.lt.s32.totalorder %v7892_v22, 0 }
 0x470   : > { %v4440_v32 = vadd.s32 %v4439_v41, %v4430_v16  ;;  %v3429_v63 = vadd.s32 3, %v3412_v35  ;;  %vm4371_vm2 = vcmp.le.f32.partialorder %v4370_v1, 0.7853982  ;;  %vm4513_vm4 = vweird.f32 %v7892_v22 }
 0x471   : > { %v3408_v29 = vsel %vm3287_vm1, %v3407_v11, %v3406_v24  ;;  %v4466_v37 = vadd.s32 1, %v4462_v2 }
 0x472   : > { %v3411_v30 = vsel %vm7999_vm3, %v7692_v27, %v3408_v29  ;;  %vm4465_vm8 = vc.u32 %v4440_v32, %v4459_v49  ;;  %v3430_v8 = vand.u32 3, %v3429_v63  ;;  %v4464_v36 = vadd.s32 %v4459_v49, %v4440_v32 }
 0x473   : > { %v3413_v40 = vmul.f32 %v3411_v30, %v3411_v30  ;;  %v4467_v25 = vsel %vm4465_vm8, %v4466_v37, %v4462_v2 }
 0x474   : > { %v4468_v42 = vadd.s32 %v4467_v25, %v4463_v5  ;;  %vm3432_vm11 = vcmp.eq.s32.totalorder %v3430_v8, 0  ;;  %vm3435_vm10 = vcmp.eq.s32.totalorder %v3430_v8, 2  ;;  %vm3431_vm14 = vcmp.lt.s32.totalorder %v3430_v8, 2 }
 0x475   : > { %v3414_v38 = vmul.f32 -0.001358992, %v3413_v40  ;;  %v3421_v56 = vmul.f32 -0.00019511016, %v3413_v40 }
 0x476   : > { %v4469_v50 = vadd.s32 536870912, %v4468_v42 }
 0x477   : > { %v3415_v19 = vadd.f32 0.041655596, %v3414_v38  ;;  %v3422_v28 = vadd.f32 0.008332121, %v3421_v56 }
 0x478   : > { %v4470_v62 = vshrl.u32 %v4469_v50, 30 }
 0x479   : > { %v3416_v43 = vmul.f32 %v3415_v19, %v3413_v40  ;;  %v3423_v59 = vmul.f32 %v3422_v28, %v3413_v40 }
 0x47a   : > { %v4471_v39 = vshll.u32 %v4470_v62, 30  ;;  %v4494_v4 = vsub.s32 4, %v4470_v62 }
 0x47b   : > { %v3417_v10 = vadd.f32 -0.4999988, %v3416_v43  ;;  %v3424_v55 = vadd.f32 -0.16666654, %v3423_v59 }
 0x47c   : > { %v4472_v60 = vsub.s32 %v4468_v42, %v4471_v39  ;;  %v4495_v12 = vsel %vm4372_vm15, %v4494_v4, %v4470_v62 }
 0x47d   : > { %v3418_v17 = vmul.f32 %v3417_v10, %v3413_v40  ;;  %v3425_v48 = vmul.f32 %v3424_v55, %v3413_v40  ;;  %v4497_v6 = vsel %vm4371_vm2, 0, %v4495_v12 }
 0x47e   : > { %vm4473_vm9 = vcmp.lt.s32.totalorder %v4472_v60, 0  ;;  %v4474_v9 = vsub.s32 0, %v4472_v60  ;;  %v4514_v56 = vadd.s32 3, %v4497_v6 }
 0x47f   : > { %v3419_v3 = vadd.f32 1.0, %v3418_v17  ;;  %v3426_v45 = vadd.f32 1.0, %v3425_v48 }
 0x480   : > { %v4475_v61 = vsel %vm4473_vm9, %v4474_v9, %v4472_v60  ;;  %v4515_v28 = vand.u32 3, %v4514_v56 }
 0x481   : > { %v3427_v51 = vmul.f32 %v3426_v45, %v3411_v30  ;;  %v3436_v53 = vxor.u32 2147483648, %v3419_v3  ;;  %v4476_v46 = vclz %v4475_v61 }
 0x482   : > { %vm4517_vm0 = vcmp.eq.s32.totalorder %v4515_v28, 0  ;;  %vm4520_vm1 = vcmp.eq.s32.totalorder %v4515_v28, 2  ;;  %vm4516_vm3 = vcmp.lt.s32.totalorder %v4515_v28, 2 }
 0x483   : > { %v3433_v58 = vxor.u32 2147483648, %v3427_v51  ;;  %v3437_v26 = vsel %vm3435_vm10, %v3436_v53, %v3427_v51  ;;  %v4782_v24 = vadd.s32 4294967294, %v4476_v46 }
 0x485   : > { %v3434_v20 = vsel %vm3432_vm11, %v3419_v3, %v3433_v58  ;;  %vm4783_vm13 = vcmp.lt.s32.totalorder %v4782_v24, 0 }
 0x486   : > { %v3438_v13 = vsel %vm3431_vm14, %v3434_v20, %v3437_v26  ;;  %v4479_v33 = vsel %vm4783_vm13, 0, %v4782_v24 }
 0x487   : > { %v3439_v57 = vsel %vm3428_vm12, nan, %v3438_v13  ;;  %v4480_v31 = vsub.s32 32, %v4479_v33  ;;  %v4484_v34 = vsub.s32 4294967266, %v4479_v33  ;;  %v4481_v14 = vshll.u32 %v4472_v60, %v4479_v33 }
 0x488   : > { %4543 = vst [vmem:[%s5494_s4 + $0x90] sm:$0xff] %v3439_v57 }
 0x489   : > { %v4482_v11 = vshrl.u32 %v4464_v36, %v4480_v31  ;;  %v4485_v15 = vadd.s32 127, %v4484_v34 }
 0x48b   : > { %v4483_v0 = vor.u32 %v4482_v11, %v4481_v14  ;;  %v4486_v52 = vshll.u32 %v4485_v15, 23 }
 0x48d   : > { %v4487_v18 = vor.u32 4788187, %v4486_v52  ;;  %v4490_v7 = vcvt.s32.f32 %v4483_v0 }
 0x48f   : > { %v4488_v21 = vand.u32 2147483647, %v4487_v18 }
 0x491   : > { %v4491_v54 = vmul.f32 %v4490_v7, %v4488_v21 }
 0x493   : > { %v4492_v27 = vxor.u32 2147483648, %v4491_v54 }
 0x495   : > { %v4493_v29 = vsel %vm4372_vm15, %v4492_v27, %v4491_v54 }
 0x496   : > { %v4496_v47 = vsel %vm4371_vm2, %v7892_v22, %v4493_v29 }
 0x497   : > { %v4498_v16 = vmul.f32 %v4496_v47, %v4496_v47 }
 0x499   : > { %v4499_v30 = vmul.f32 -0.001358992, %v4498_v16  ;;  %v4506_v41 = vmul.f32 -0.00019511016, %v4498_v16 }
 0x49b   : > { %v4500_v44 = vadd.f32 0.041655596, %v4499_v30  ;;  %v4507_v40 = vadd.f32 0.008332121, %v4506_v41 }
 0x49d   : > { %v4501_v32 = vmul.f32 %v4500_v44, %v4498_v16  ;;  %v4508_v49 = vmul.f32 %v4507_v40, %v4498_v16 }
 0x49f   : > { %v4502_v2 = vadd.f32 -0.4999988, %v4501_v32  ;;  %v4509_v38 = vadd.f32 -0.16666654, %v4508_v49 }
 0x4a1   : > { %v4503_v1 = vmul.f32 %v4502_v2, %v4498_v16  ;;  %v4510_v23 = vmul.f32 %v4509_v38, %v4498_v16 }
 0x4a3   : > { %v4504_v37 = vadd.f32 1.0, %v4503_v1  ;;  %v4511_v19 = vadd.f32 1.0, %v4510_v23 }
 0x4a5   : > { %v4512_v5 = vmul.f32 %v4511_v19, %v4496_v47  ;;  %v4521_v25 = vxor.u32 2147483648, %v4504_v37 }
 0x4a7   : > { %v4518_v35 = vxor.u32 2147483648, %v4512_v5  ;;  %v4522_v59 = vsel %vm4520_vm1, %v4521_v25, %v4512_v5 }
 0x4a9   : > { %v4519_v43 = vsel %vm4517_vm0, %v4504_v37, %v4518_v35 }
 0x4aa   : > { %v4523_v42 = vsel %vm4516_vm3, %v4519_v43, %v4522_v59 }
 0x4ab   : > { %v4524_v10 = vsel %vm4513_vm4, nan, %v4523_v42 }
 0x4ac   : > { %4550 = vst [vmem:[%s5494_s4 + $0xc8] sm:$0xff] %v4524_v10 }
 0x4ad   : > { %4911 = shalt.err (!%p4908_p8)
}
 0x4ae   : > { %s4971_s6 = smov 128   ;;  %s4972_s29 = smov 256  }
 0x4af   : > { %s4973_s30 = smov 8  }
 0x4b0   : > { %4812 = dma.vmem_to_hbm [thread:$0]  (%p5033_p5), %s8043_s9, 3328, %s4569_s10, %s4552_s15, %s4971_s6, %s4972_s29, %s4973_s30  }
 0x4b1 PF: > { %s4583_s4 = sand.u32 1, %s4942_s12   ;;  %p4815_p11 = pnand %p4675_p10, %p5044_p9 }
 0x4b2   : > { %s4584_s18 = scalar_lea.sflag [#allocation4], %s4583_s4 }
 0x4b3   : > { %p4816_p12 = pneg %p4815_p11 }
 0x4b5   : > { %4937 = dma.done.wait (%p4816_p12), %s4584_s18, 3328  }
 0x4b6   : > { %4939 = vsyncadd (%p4816_p12), %s4584_s18, 4294963968  ;;  %s16_s17 = sadd.s32 1, %s4962_s17   ;;  %s8126_s12 = smov %s4946_s13 }
 0x4b7   : > { %p13_p13 = scmp.ge.s32.totalorder %s16_s17, 4   ;;  %s8127_s13 = smov %s4950_s14 }
 0x4b8   : > { %s8128_s14 = smov %s5042_s24  ;;  %s8129_s15 = smov %s4958_s16 }
 0x4b9   : > { %s8130_s16 = smov %s8132_s20  ;;  %15 = sbr.rel (!%p13_p13) target bundleno = 4 (0x4), region = 116 }
 0x4be   :  { %4590 = vsyncpa [#allocation4], 1 }
 0x4bf   :  { %4592 = vsyncpa [#allocation4 + $0x1], 1 }

</bundles_post_ra>
